<compile_context>
chip_gen: v6e
topology: v6e:2x2x1
jax: 0.10.0
libtpu: 0.0.40
codegen_flags: <defaults>
</compile_context>

<pallas_src>
import jax
import jax.numpy as jnp
from jax.experimental import pallas as pl
from jax.experimental.pallas import tpu as pltpu


# ---------------------------------------------------------------------------
# Weight lowering: 5x5 conv -> 5 W-direction Toeplitz matrices (built once).
# ---------------------------------------------------------------------------
def _toeplitz_bank(conv_w, in_w, out_w):
    """conv_w: (C_out, C_in, KH, KW) PyTorch layout.

    Returns (KH, in_w*C_in, out_w*C_out).  bank[i] maps a lane-packed input
    row (lane = w*C_in + ci) to output columns ordered parity-major:
        col = p*(out_w//2)*C_out + wp*C_out + co   with   ow = 2*wp + p,
    so a 2-wide W-max-pool is just max(out[:, :half], out[:, half:]).
    """
    c_out, c_in, kh, kw = conv_w.shape
    half = out_w // 2
    ow = 2 * jnp.arange(half)[None, :] + jnp.arange(2)[:, None]        # (2, half)
    delta = jnp.arange(in_w)[:, None, None] - ow[None]                 # (in_w,2,half)
    valid = (delta >= 0) & (delta < kw)
    delta_c = jnp.clip(delta, 0, kw - 1)
    banks = []
    for i in range(kh):
        taps = jnp.transpose(conv_w[:, :, i, :], (1, 0, 2))            # (c_in,c_out,kw)
        g = jnp.where(valid[None, None], taps[:, :, delta_c], 0.0)     # (c_in,c_out,in_w,2,half)
        g = jnp.transpose(g, (2, 0, 3, 4, 1))                          # (in_w,c_in,2,half,c_out)
        banks.append(g.reshape(in_w * c_in, out_w * c_out))
    return jnp.stack(banks, axis=0).astype(jnp.float32)


# ---------------------------------------------------------------------------
# Fused Pallas kernel: one batch tile per grid step, everything in VMEM.
# ---------------------------------------------------------------------------
def _cnn_mnist_kernel(x_ref, w1t_ref, b1_ref, w2t_ref, b2_ref,
                      fw1_ref, fb1_ref, fw2_ref, fb2_ref, o_ref):
    f32 = jnp.float32
    bt = x_ref.shape[0]
    kwc = x_ref.shape[2]                                  # 28 * C

    # ---- conv1: 5 row-tap matmuls against the W-Toeplitz bank (N=240) ------
    x = x_ref[...]                                        # (bt, 28, 28*C)
    acc1 = jnp.dot(x[:, 0:24, :].reshape(bt * 24, kwc), w1t_ref[0],
                   preferred_element_type=f32)
    for i in range(1, 5):
        acc1 = acc1 + jnp.dot(x[:, i:i + 24, :].reshape(bt * 24, kwc),
                              w1t_ref[i], preferred_element_type=f32)
    c1 = acc1 + b1_ref[...]                               # (bt*24, 240)

    # ---- maxpool 2x2 + relu (W-pool = lane-half max, H-pool = row-pair max) -
    c1 = jnp.maximum(c1[:, :120], c1[:, 120:])            # (bt*24, 120)
    c1 = c1.reshape(bt, 12, 2, 120)
    a1 = jnp.maximum(jnp.maximum(c1[:, :, 0, :], c1[:, :, 1, :]), 0.0)
    # a1: (bt, 12, 120), lanes = w*10 + c

    # ---- conv2: 5 row-tap matmuls (K=120, N=160) ----------------------------
    acc2 = jnp.dot(a1[:, 0:8, :].reshape(bt * 8, 120), w2t_ref[0],
                   preferred_element_type=f32)
    for i in range(1, 5):
        acc2 = acc2 + jnp.dot(a1[:, i:i + 8, :].reshape(bt * 8, 120),
                              w2t_ref[i], preferred_element_type=f32)
    # TODO(synk): conv2_drop (Dropout2d) is identity in eval mode.
    c2 = acc2 + b2_ref[...]                               # (bt*8, 160)

    # ---- maxpool 2x2 + relu -------------------------------------------------
    c2 = jnp.maximum(c2[:, :80], c2[:, 80:])              # (bt*8, 80)
    c2 = c2.reshape(bt, 4, 2, 80)
    a2 = jnp.maximum(jnp.maximum(c2[:, :, 0, :], c2[:, :, 1, :]), 0.0)
    # a2: (bt, 4, 80), lanes = w*20 + c

    # ---- fc1 + relu: single K=320 matmul (flatten folded into the weight) ---
    feat = jnp.concatenate(
        [a2[:, 0, :], a2[:, 1, :], a2[:, 2, :], a2[:, 3, :]], axis=-1)  # (bt,320)
    h = jnp.maximum(jnp.dot(feat, fw1_ref[...], preferred_element_type=f32)
                    + fb1_ref[...], 0.0)
    # TODO(synk): F.dropout is identity in eval mode.

    # ---- fc2 ----------------------------------------------------------------
    out = jnp.dot(h, fw2_ref[...], preferred_element_type=f32) + fb2_ref[...]
    o_ref[...] = out.astype(o_ref.dtype)


# ---------------------------------------------------------------------------
# Wrapper: weight re-layout (once, tiny) + single fused pallas_call.
# ---------------------------------------------------------------------------
def cnn_mnist_forward(x_nchw, params, *, tile_b=128):
    n, c, hh, ww = x_nchw.shape
    assert (hh, ww) == (28, 28), "CNNMnist expects 28x28 inputs (fc1 is 320-wide)"
    f32 = jnp.float32
    hid = params["fc1_w"].shape[0]                        # 50
    nc = params["fc2_w"].shape[0]                         # num_classes

    # --- weight prep (tiny, once) --------------------------------------------
    w1t = _toeplitz_bank(params["conv1_w"].astype(f32), 28, 24)   # (5, 28*c, 240)
    w2t = _toeplitz_bank(params["conv2_w"].astype(f32), 12, 8)    # (5, 120, 160)
    b1 = jnp.tile(params["conv1_b"].astype(f32), 24).reshape(1, 240)
    b2 = jnp.tile(params["conv2_b"].astype(f32), 8).reshape(1, 160)
    # fc1: PyTorch flattens (c, h, w); kernel features are ordered (h, w, c).
    fw1 = jnp.transpose(params["fc1_w"].astype(f32).reshape(hid, 20, 4, 4),
                        (2, 3, 1, 0)).reshape(320, hid)
    fb1 = params["fc1_b"].astype(f32).reshape(1, hid)
    fw2 = params["fc2_w"].astype(f32).T                            # (hid, nc)
    fb2 = params["fc2_b"].astype(f32).reshape(1, nc)

    # --- lane-dense input: NHWC with (W, C) packed on the lane axis ----------
    x = jnp.transpose(x_nchw.astype(f32), (0, 2, 3, 1)).reshape(n, 28, 28 * c)

    # --- batch tiling: multiple of 8, >= 2 grid steps when possible ----------
    tb = max(8, (min(int(tile_b), 256) // 8) * 8)
    if tb >= n and n > 8:
        tb = max(8, ((n + 15) // 16) * 8)     # split so v7x's 2nd TC gets work
    tb = min(tb, max(8, -(-n // 8) * 8))
    num_tiles = -(-n // tb)
    n_pad = num_tiles * tb
    if n_pad != n:
        x = jnp.pad(x, ((0, n_pad - n), (0, 0), (0, 0)))

    out = pl.pallas_call(
        _cnn_mnist_kernel,
        out_shape=jax.ShapeDtypeStruct((n_pad, nc), f32),
        grid_spec=pltpu.PrefetchScalarGridSpec(
            num_scalar_prefetch=0,
            grid=(num_tiles,),
            in_specs=[
                pl.BlockSpec((tb, 28, 28 * c), lambda i: (i, 0, 0)),
                pl.BlockSpec((5, 28 * c, 240), lambda i: (0, 0, 0)),
                pl.BlockSpec((1, 240), lambda i: (0, 0)),
                pl.BlockSpec((5, 120, 160), lambda i: (0, 0, 0)),
                pl.BlockSpec((1, 160), lambda i: (0, 0)),
                pl.BlockSpec((320, hid), lambda i: (0, 0)),
                pl.BlockSpec((1, hid), lambda i: (0, 0)),
                pl.BlockSpec((hid, nc), lambda i: (0, 0)),
                pl.BlockSpec((1, nc), lambda i: (0, 0)),
            ],
            out_specs=pl.BlockSpec((tb, nc), lambda i: (i, 0)),
        ),
        compiler_params=pltpu.CompilerParams(
            dimension_semantics=("parallel",),
            vmem_limit_bytes=32 * 1024 * 1024,
        ),
    )(x, w1t, b1, w2t, b2, fw1, fb1, fw2, fb2)
    return out[:n]


# ---------------------------------------------------------------------------
# Pure-JAX reference (correctness check against the Pallas path)
# ---------------------------------------------------------------------------
def cnn_mnist_reference(x, p):
    dn = ("NCHW", "OIHW", "NCHW")

    def conv(x, w, b):
        y = jax.lax.conv_general_dilated(x, w, (1, 1), "VALID",
                                         dimension_numbers=dn)
        return y + b.reshape(1, -1, 1, 1)

    def pool(x):
        return jax.lax.reduce_window(x, -jnp.inf, jax.lax.max,
                                     (1, 1, 2, 2), (1, 1, 2, 2), "VALID")

    x = jax.nn.relu(pool(conv(x, p["conv1_w"], p["conv1_b"])))
    x = jax.nn.relu(pool(conv(x, p["conv2_w"], p["conv2_b"])))
    x = x.reshape(x.shape[0], -1)
    x = jax.nn.relu(x @ p["fc1_w"].T + p["fc1_b"])
    return x @ p["fc2_w"].T + p["fc2_b"]


# ---------------------------------------------------------------------------
# Deterministic parameter construction (PyTorch shapes)
# ---------------------------------------------------------------------------
def init_params(key, num_channels=1, num_classes=10):
    ks = jax.random.split(key, 8)
    f32 = jnp.float32
    return {
        "conv1_w": 0.1 * jax.random.normal(ks[0], (10, num_channels, 5, 5), f32),
        "conv1_b": 0.1 * jax.random.normal(ks[1], (10,), f32),
        "conv2_w": 0.1 * jax.random.normal(ks[2], (20, 10, 5, 5), f32),
        "conv2_b": 0.1 * jax.random.normal(ks[3], (20,), f32),
        "fc1_w":   0.1 * jax.random.normal(ks[4], (50, 320), f32),   # (out, in)
        "fc1_b":   0.1 * jax.random.normal(ks[5], (50,), f32),
        "fc2_w":   0.1 * jax.random.normal(ks[6], (num_classes, 50), f32),
        "fc2_b":   0.1 * jax.random.normal(ks[7], (num_classes,), f32),
    }


if __name__ == "__main__":
    key = jax.random.PRNGKey(0)
    k_params, k_x = jax.random.split(key)

    # MNIST-like input: fc1(320) requires 28x28 spatial.
    batch, num_channels, num_classes = 16, 1, 10
    x = jax.random.normal(k_x, (batch, num_channels, 28, 28), jnp.float32)
    params = init_params(k_params, num_channels, num_classes)

    fwd = jax.jit(cnn_mnist_forward)
    out = jax.block_until_ready(fwd(x, params))
    assert out.shape == (batch, num_classes), out.shape

    ref = jax.block_until_ready(cnn_mnist_reference(x, params))
    err = float(jnp.max(jnp.abs(out - ref)))
    assert jnp.allclose(out, ref, atol=2e-3, rtol=2e-3), f"max abs err {err}"

    print("KERNEL_OK")
</pallas_src>

<mosaic_0001>
module attributes {stable_mosaic.version = 11 : i64} {
  func.func @_cnn_mnist_kernel(%arg0: i32, %arg1: memref<8x28x28xf32, #tpu.memory_space<vmem>>, %arg2: memref<5x28x240xf32, #tpu.memory_space<vmem>>, %arg3: memref<1x240xf32, #tpu.memory_space<vmem>>, %arg4: memref<5x120x160xf32, #tpu.memory_space<vmem>>, %arg5: memref<1x160xf32, #tpu.memory_space<vmem>>, %arg6: memref<320x50xf32, #tpu.memory_space<vmem>>, %arg7: memref<1x50xf32, #tpu.memory_space<vmem>>, %arg8: memref<50x10xf32, #tpu.memory_space<vmem>>, %arg9: memref<1x10xf32, #tpu.memory_space<vmem>>, %arg10: memref<8x10xf32, #tpu.memory_space<vmem>>) attributes {dimension_semantics = [#tpu.dimension_semantics<parallel>], iteration_bounds = array<i64: 2>, scalar_prefetch = 0 : i64, scratch_operands = 0 : i64, tpu.core_type = #tpu.core_type<tc>, window_params = [{transform_indices = @transform_0, window_bounds = array<i64: 8, 28, 28>}, {pipeline_mode = #tpu.pipeline_mode<synchronous>, transform_indices = @transform_1, window_bounds = array<i64: 5, 28, 240>}, {pipeline_mode = #tpu.pipeline_mode<synchronous>, transform_indices = @transform_2, window_bounds = array<i64: 1, 240>}, {pipeline_mode = #tpu.pipeline_mode<synchronous>, transform_indices = @transform_3, window_bounds = array<i64: 5, 120, 160>}, {pipeline_mode = #tpu.pipeline_mode<synchronous>, transform_indices = @transform_4, window_bounds = array<i64: 1, 160>}, {pipeline_mode = #tpu.pipeline_mode<synchronous>, transform_indices = @transform_5, window_bounds = array<i64: 320, 50>}, {pipeline_mode = #tpu.pipeline_mode<synchronous>, transform_indices = @transform_6, window_bounds = array<i64: 1, 50>}, {pipeline_mode = #tpu.pipeline_mode<synchronous>, transform_indices = @transform_7, window_bounds = array<i64: 50, 10>}, {pipeline_mode = #tpu.pipeline_mode<synchronous>, transform_indices = @transform_8, window_bounds = array<i64: 1, 10>}, {transform_indices = @transform_9, window_bounds = array<i64: 8, 10>}]} {
    %c0 = arith.constant 0 : index
    %c0_0 = arith.constant 0 : index
    %c0_1 = arith.constant 0 : index
    %0 = vector.load %arg1[%c0, %c0_0, %c0_1] : memref<8x28x28xf32, #tpu.memory_space<vmem>>, vector<8x28x28xf32>
    %1 = vector.extract_strided_slice %0 {offsets = [0, 0, 0], sizes = [8, 24, 28], strides = [1, 1, 1]} : vector<8x28x28xf32> to vector<8x24x28xf32>
    %2 = vector.shape_cast %1 : vector<8x24x28xf32> to vector<192x28xf32>
    %c0_2 = arith.constant 0 : index
    %c0_3 = arith.constant 0 : index
    %c0_4 = arith.constant 0 : index
    %3 = vector.load %arg2[%c0_2, %c0_3, %c0_4] : memref<5x28x240xf32, #tpu.memory_space<vmem>>, vector<1x28x240xf32>
    %4 = vector.shape_cast %3 : vector<1x28x240xf32> to vector<28x240xf32>
    %cst = arith.constant dense<0.000000e+00> : vector<192x240xf32>
    %5 = tpu.matmul %2, %4, %cst {dimension_numbers = #tpu.dot_dimension_numbers<[1], [0], [0], [1], [0, 0, 1, 1], [], []>} : vector<192x28xf32>, vector<28x240xf32>, vector<192x240xf32> -> vector<192x240xf32>
    %6 = vector.extract_strided_slice %0 {offsets = [0, 1, 0], sizes = [8, 24, 28], strides = [1, 1, 1]} : vector<8x28x28xf32> to vector<8x24x28xf32>
    %7 = vector.shape_cast %6 : vector<8x24x28xf32> to vector<192x28xf32>
    %c1 = arith.constant 1 : index
    %c0_5 = arith.constant 0 : index
    %c0_6 = arith.constant 0 : index
    %8 = vector.load %arg2[%c1, %c0_5, %c0_6] : memref<5x28x240xf32, #tpu.memory_space<vmem>>, vector<1x28x240xf32>
    %9 = vector.shape_cast %8 : vector<1x28x240xf32> to vector<28x240xf32>
    %cst_7 = arith.constant dense<0.000000e+00> : vector<192x240xf32>
    %10 = tpu.matmul %7, %9, %cst_7 {dimension_numbers = #tpu.dot_dimension_numbers<[1], [0], [0], [1], [0, 0, 1, 1], [], []>} : vector<192x28xf32>, vector<28x240xf32>, vector<192x240xf32> -> vector<192x240xf32>
    %11 = arith.addf %5, %10 : vector<192x240xf32>
    %12 = vector.extract_strided_slice %0 {offsets = [0, 2, 0], sizes = [8, 24, 28], strides = [1, 1, 1]} : vector<8x28x28xf32> to vector<8x24x28xf32>
    %13 = vector.shape_cast %12 : vector<8x24x28xf32> to vector<192x28xf32>
    %c2 = arith.constant 2 : index
    %c0_8 = arith.constant 0 : index
    %c0_9 = arith.constant 0 : index
    %14 = vector.load %arg2[%c2, %c0_8, %c0_9] : memref<5x28x240xf32, #tpu.memory_space<vmem>>, vector<1x28x240xf32>
    %15 = vector.shape_cast %14 : vector<1x28x240xf32> to vector<28x240xf32>
    %cst_10 = arith.constant dense<0.000000e+00> : vector<192x240xf32>
    %16 = tpu.matmul %13, %15, %cst_10 {dimension_numbers = #tpu.dot_dimension_numbers<[1], [0], [0], [1], [0, 0, 1, 1], [], []>} : vector<192x28xf32>, vector<28x240xf32>, vector<192x240xf32> -> vector<192x240xf32>
    %17 = arith.addf %11, %16 : vector<192x240xf32>
    %18 = vector.extract_strided_slice %0 {offsets = [0, 3, 0], sizes = [8, 24, 28], strides = [1, 1, 1]} : vector<8x28x28xf32> to vector<8x24x28xf32>
    %19 = vector.shape_cast %18 : vector<8x24x28xf32> to vector<192x28xf32>
    %c3 = arith.constant 3 : index
    %c0_11 = arith.constant 0 : index
    %c0_12 = arith.constant 0 : index
    %20 = vector.load %arg2[%c3, %c0_11, %c0_12] : memref<5x28x240xf32, #tpu.memory_space<vmem>>, vector<1x28x240xf32>
    %21 = vector.shape_cast %20 : vector<1x28x240xf32> to vector<28x240xf32>
    %cst_13 = arith.constant dense<0.000000e+00> : vector<192x240xf32>
    %22 = tpu.matmul %19, %21, %cst_13 {dimension_numbers = #tpu.dot_dimension_numbers<[1], [0], [0], [1], [0, 0, 1, 1], [], []>} : vector<192x28xf32>, vector<28x240xf32>, vector<192x240xf32> -> vector<192x240xf32>
    %23 = arith.addf %17, %22 : vector<192x240xf32>
    %24 = vector.extract_strided_slice %0 {offsets = [0, 4, 0], sizes = [8, 24, 28], strides = [1, 1, 1]} : vector<8x28x28xf32> to vector<8x24x28xf32>
    %25 = vector.shape_cast %24 : vector<8x24x28xf32> to vector<192x28xf32>
    %c4 = arith.constant 4 : index
    %c0_14 = arith.constant 0 : index
    %c0_15 = arith.constant 0 : index
    %26 = vector.load %arg2[%c4, %c0_14, %c0_15] : memref<5x28x240xf32, #tpu.memory_space<vmem>>, vector<1x28x240xf32>
    %27 = vector.shape_cast %26 : vector<1x28x240xf32> to vector<28x240xf32>
    %cst_16 = arith.constant dense<0.000000e+00> : vector<192x240xf32>
    %28 = tpu.matmul %25, %27, %cst_16 {dimension_numbers = #tpu.dot_dimension_numbers<[1], [0], [0], [1], [0, 0, 1, 1], [], []>} : vector<192x28xf32>, vector<28x240xf32>, vector<192x240xf32> -> vector<192x240xf32>
    %29 = arith.addf %23, %28 : vector<192x240xf32>
    %c0_17 = arith.constant 0 : index
    %c0_18 = arith.constant 0 : index
    %30 = vector.load %arg3[%c0_17, %c0_18] : memref<1x240xf32, #tpu.memory_space<vmem>>, vector<1x240xf32>
    %31 = vector.broadcast %30 : vector<1x240xf32> to vector<192x240xf32>
    %32 = arith.addf %29, %31 : vector<192x240xf32>
    %33 = vector.extract_strided_slice %32 {offsets = [0, 0], sizes = [192, 120], strides = [1, 1]} : vector<192x240xf32> to vector<192x120xf32>
    %34 = vector.extract_strided_slice %32 {offsets = [0, 120], sizes = [192, 120], strides = [1, 1]} : vector<192x240xf32> to vector<192x120xf32>
    %35 = arith.maximumf %33, %34 : vector<192x120xf32>
    %36 = vector.shape_cast %35 : vector<192x120xf32> to vector<8x12x2x120xf32>
    %37 = vector.extract_strided_slice %36 {offsets = [0, 0, 0, 0], sizes = [8, 12, 1, 120], strides = [1, 1, 1, 1]} : vector<8x12x2x120xf32> to vector<8x12x1x120xf32>
    %38 = vector.shape_cast %37 : vector<8x12x1x120xf32> to vector<8x12x120xf32>
    %39 = vector.extract_strided_slice %36 {offsets = [0, 0, 1, 0], sizes = [8, 12, 1, 120], strides = [1, 1, 1, 1]} : vector<8x12x2x120xf32> to vector<8x12x1x120xf32>
    %40 = vector.shape_cast %39 : vector<8x12x1x120xf32> to vector<8x12x120xf32>
    %41 = arith.maximumf %38, %40 : vector<8x12x120xf32>
    %cst_19 = arith.constant 0.000000e+00 : f32
    %42 = vector.broadcast %cst_19 : f32 to vector<8x12x120xf32>
    %43 = arith.maximumf %41, %42 : vector<8x12x120xf32>
    %44 = vector.extract_strided_slice %43 {offsets = [0, 0, 0], sizes = [8, 8, 120], strides = [1, 1, 1]} : vector<8x12x120xf32> to vector<8x8x120xf32>
    %45 = vector.shape_cast %44 : vector<8x8x120xf32> to vector<64x120xf32>
    %c0_20 = arith.constant 0 : index
    %c0_21 = arith.constant 0 : index
    %c0_22 = arith.constant 0 : index
    %46 = vector.load %arg4[%c0_20, %c0_21, %c0_22] : memref<5x120x160xf32, #tpu.memory_space<vmem>>, vector<1x120x160xf32>
    %47 = vector.shape_cast %46 : vector<1x120x160xf32> to vector<120x160xf32>
    %cst_23 = arith.constant dense<0.000000e+00> : vector<64x160xf32>
    %48 = tpu.matmul %45, %47, %cst_23 {dimension_numbers = #tpu.dot_dimension_numbers<[1], [0], [0], [1], [0, 0, 1, 1], [], []>} : vector<64x120xf32>, vector<120x160xf32>, vector<64x160xf32> -> vector<64x160xf32>
    %49 = vector.extract_strided_slice %43 {offsets = [0, 1, 0], sizes = [8, 8, 120], strides = [1, 1, 1]} : vector<8x12x120xf32> to vector<8x8x120xf32>
    %50 = vector.shape_cast %49 : vector<8x8x120xf32> to vector<64x120xf32>
    %c1_24 = arith.constant 1 : index
    %c0_25 = arith.constant 0 : index
    %c0_26 = arith.constant 0 : index
    %51 = vector.load %arg4[%c1_24, %c0_25, %c0_26] : memref<5x120x160xf32, #tpu.memory_space<vmem>>, vector<1x120x160xf32>
    %52 = vector.shape_cast %51 : vector<1x120x160xf32> to vector<120x160xf32>
    %cst_27 = arith.constant dense<0.000000e+00> : vector<64x160xf32>
    %53 = tpu.matmul %50, %52, %cst_27 {dimension_numbers = #tpu.dot_dimension_numbers<[1], [0], [0], [1], [0, 0, 1, 1], [], []>} : vector<64x120xf32>, vector<120x160xf32>, vector<64x160xf32> -> vector<64x160xf32>
    %54 = arith.addf %48, %53 : vector<64x160xf32>
    %55 = vector.extract_strided_slice %43 {offsets = [0, 2, 0], sizes = [8, 8, 120], strides = [1, 1, 1]} : vector<8x12x120xf32> to vector<8x8x120xf32>
    %56 = vector.shape_cast %55 : vector<8x8x120xf32> to vector<64x120xf32>
    %c2_28 = arith.constant 2 : index
    %c0_29 = arith.constant 0 : index
    %c0_30 = arith.constant 0 : index
    %57 = vector.load %arg4[%c2_28, %c0_29, %c0_30] : memref<5x120x160xf32, #tpu.memory_space<vmem>>, vector<1x120x160xf32>
    %58 = vector.shape_cast %57 : vector<1x120x160xf32> to vector<120x160xf32>
    %cst_31 = arith.constant dense<0.000000e+00> : vector<64x160xf32>
    %59 = tpu.matmul %56, %58, %cst_31 {dimension_numbers = #tpu.dot_dimension_numbers<[1], [0], [0], [1], [0, 0, 1, 1], [], []>} : vector<64x120xf32>, vector<120x160xf32>, vector<64x160xf32> -> vector<64x160xf32>
    %60 = arith.addf %54, %59 : vector<64x160xf32>
    %61 = vector.extract_strided_slice %43 {offsets = [0, 3, 0], sizes = [8, 8, 120], strides = [1, 1, 1]} : vector<8x12x120xf32> to vector<8x8x120xf32>
    %62 = vector.shape_cast %61 : vector<8x8x120xf32> to vector<64x120xf32>
    %c3_32 = arith.constant 3 : index
    %c0_33 = arith.constant 0 : index
    %c0_34 = arith.constant 0 : index
    %63 = vector.load %arg4[%c3_32, %c0_33, %c0_34] : memref<5x120x160xf32, #tpu.memory_space<vmem>>, vector<1x120x160xf32>
    %64 = vector.shape_cast %63 : vector<1x120x160xf32> to vector<120x160xf32>
    %cst_35 = arith.constant dense<0.000000e+00> : vector<64x160xf32>
    %65 = tpu.matmul %62, %64, %cst_35 {dimension_numbers = #tpu.dot_dimension_numbers<[1], [0], [0], [1], [0, 0, 1, 1], [], []>} : vector<64x120xf32>, vector<120x160xf32>, vector<64x160xf32> -> vector<64x160xf32>
    %66 = arith.addf %60, %65 : vector<64x160xf32>
    %67 = vector.extract_strided_slice %43 {offsets = [0, 4, 0], sizes = [8, 8, 120], strides = [1, 1, 1]} : vector<8x12x120xf32> to vector<8x8x120xf32>
    %68 = vector.shape_cast %67 : vector<8x8x120xf32> to vector<64x120xf32>
    %c4_36 = arith.constant 4 : index
    %c0_37 = arith.constant 0 : index
    %c0_38 = arith.constant 0 : index
    %69 = vector.load %arg4[%c4_36, %c0_37, %c0_38] : memref<5x120x160xf32, #tpu.memory_space<vmem>>, vector<1x120x160xf32>
    %70 = vector.shape_cast %69 : vector<1x120x160xf32> to vector<120x160xf32>
    %cst_39 = arith.constant dense<0.000000e+00> : vector<64x160xf32>
    %71 = tpu.matmul %68, %70, %cst_39 {dimension_numbers = #tpu.dot_dimension_numbers<[1], [0], [0], [1], [0, 0, 1, 1], [], []>} : vector<64x120xf32>, vector<120x160xf32>, vector<64x160xf32> -> vector<64x160xf32>
    %72 = arith.addf %66, %71 : vector<64x160xf32>
    %c0_40 = arith.constant 0 : index
    %c0_41 = arith.constant 0 : index
    %73 = vector.load %arg5[%c0_40, %c0_41] : memref<1x160xf32, #tpu.memory_space<vmem>>, vector<1x160xf32>
    %74 = vector.broadcast %73 : vector<1x160xf32> to vector<64x160xf32>
    %75 = arith.addf %72, %74 : vector<64x160xf32>
    %76 = vector.extract_strided_slice %75 {offsets = [0, 0], sizes = [64, 80], strides = [1, 1]} : vector<64x160xf32> to vector<64x80xf32>
    %77 = vector.extract_strided_slice %75 {offsets = [0, 80], sizes = [64, 80], strides = [1, 1]} : vector<64x160xf32> to vector<64x80xf32>
    %78 = arith.maximumf %76, %77 : vector<64x80xf32>
    %79 = vector.shape_cast %78 : vector<64x80xf32> to vector<8x4x2x80xf32>
    %80 = vector.extract_strided_slice %79 {offsets = [0, 0, 0, 0], sizes = [8, 4, 1, 80], strides = [1, 1, 1, 1]} : vector<8x4x2x80xf32> to vector<8x4x1x80xf32>
    %81 = vector.shape_cast %80 : vector<8x4x1x80xf32> to vector<8x4x80xf32>
    %82 = vector.extract_strided_slice %79 {offsets = [0, 0, 1, 0], sizes = [8, 4, 1, 80], strides = [1, 1, 1, 1]} : vector<8x4x2x80xf32> to vector<8x4x1x80xf32>
    %83 = vector.shape_cast %82 : vector<8x4x1x80xf32> to vector<8x4x80xf32>
    %84 = arith.maximumf %81, %83 : vector<8x4x80xf32>
    %cst_42 = arith.constant 0.000000e+00 : f32
    %85 = vector.broadcast %cst_42 : f32 to vector<8x4x80xf32>
    %86 = arith.maximumf %84, %85 : vector<8x4x80xf32>
    %87 = vector.extract_strided_slice %86 {offsets = [0, 0, 0], sizes = [8, 1, 80], strides = [1, 1, 1]} : vector<8x4x80xf32> to vector<8x1x80xf32>
    %88 = vector.shape_cast %87 : vector<8x1x80xf32> to vector<8x80xf32>
    %89 = vector.extract_strided_slice %86 {offsets = [0, 1, 0], sizes = [8, 1, 80], strides = [1, 1, 1]} : vector<8x4x80xf32> to vector<8x1x80xf32>
    %90 = vector.shape_cast %89 : vector<8x1x80xf32> to vector<8x80xf32>
    %91 = vector.extract_strided_slice %86 {offsets = [0, 2, 0], sizes = [8, 1, 80], strides = [1, 1, 1]} : vector<8x4x80xf32> to vector<8x1x80xf32>
    %92 = vector.shape_cast %91 : vector<8x1x80xf32> to vector<8x80xf32>
    %93 = vector.extract_strided_slice %86 {offsets = [0, 3, 0], sizes = [8, 1, 80], strides = [1, 1, 1]} : vector<8x4x80xf32> to vector<8x1x80xf32>
    %94 = vector.shape_cast %93 : vector<8x1x80xf32> to vector<8x80xf32>
    %95 = tpu.concatenate %88, %90, %92, %94 in 1 : vector<8x80xf32>, vector<8x80xf32>, vector<8x80xf32>, vector<8x80xf32> -> vector<8x320xf32>
    %c0_43 = arith.constant 0 : index
    %c0_44 = arith.constant 0 : index
    %96 = vector.load %arg6[%c0_43, %c0_44] : memref<320x50xf32, #tpu.memory_space<vmem>>, vector<320x50xf32>
    %cst_45 = arith.constant dense<0.000000e+00> : vector<8x50xf32>
    %97 = tpu.matmul %95, %96, %cst_45 {dimension_numbers = #tpu.dot_dimension_numbers<[1], [0], [0], [1], [0, 0, 1, 1], [], []>} : vector<8x320xf32>, vector<320x50xf32>, vector<8x50xf32> -> vector<8x50xf32>
    %c0_46 = arith.constant 0 : index
    %c0_47 = arith.constant 0 : index
    %98 = vector.load %arg7[%c0_46, %c0_47] : memref<1x50xf32, #tpu.memory_space<vmem>>, vector<1x50xf32>
    %99 = vector.broadcast %98 : vector<1x50xf32> to vector<8x50xf32>
    %100 = arith.addf %97, %99 : vector<8x50xf32>
    %cst_48 = arith.constant 0.000000e+00 : f32
    %101 = vector.broadcast %cst_48 : f32 to vector<8x50xf32>
    %102 = arith.maximumf %100, %101 : vector<8x50xf32>
    %c0_49 = arith.constant 0 : index
    %c0_50 = arith.constant 0 : index
    %103 = vector.load %arg8[%c0_49, %c0_50] : memref<50x10xf32, #tpu.memory_space<vmem>>, vector<50x10xf32>
    %cst_51 = arith.constant dense<0.000000e+00> : vector<8x10xf32>
    %104 = tpu.matmul %102, %103, %cst_51 {dimension_numbers = #tpu.dot_dimension_numbers<[1], [0], [0], [1], [0, 0, 1, 1], [], []>} : vector<8x50xf32>, vector<50x10xf32>, vector<8x10xf32> -> vector<8x10xf32>
    %c0_52 = arith.constant 0 : index
    %c0_53 = arith.constant 0 : index
    %105 = vector.load %arg9[%c0_52, %c0_53] : memref<1x10xf32, #tpu.memory_space<vmem>>, vector<1x10xf32>
    %106 = vector.broadcast %105 : vector<1x10xf32> to vector<8x10xf32>
    %107 = arith.addf %104, %106 : vector<8x10xf32>
    %c0_54 = arith.constant 0 : index
    %c0_55 = arith.constant 0 : index
    %108 = vector.load %arg10[%c0_54, %c0_55] : memref<8x10xf32, #tpu.memory_space<vmem>>, vector<8x10xf32>
    tpu.vector_store %arg10[%c0_54, %c0_55], %107 {strides = array<i32>} : memref<8x10xf32, #tpu.memory_space<vmem>>, vector<8x10xf32>,
    return
  }
  func.func @transform_0(%arg0: i32) -> (i32, i32, i32) {
    %c0_i32 = arith.constant 0 : i32
    %c0_i32_0 = arith.constant 0 : i32
    %c0_i32_1 = arith.constant 0 : i32
    return %arg0, %c0_i32, %c0_i32_0 : i32, i32, i32
  }
  func.func @transform_1(%arg0: i32) -> (i32, i32, i32) {
    %c0_i32 = arith.constant 0 : i32
    %c0_i32_0 = arith.constant 0 : i32
    %c0_i32_1 = arith.constant 0 : i32
    %c0_i32_2 = arith.constant 0 : i32
    return %c0_i32, %c0_i32_0, %c0_i32_1 : i32, i32, i32
  }
  func.func @transform_2(%arg0: i32) -> (i32, i32) {
    %c0_i32 = arith.constant 0 : i32
    %c0_i32_0 = arith.constant 0 : i32
    %c0_i32_1 = arith.constant 0 : i32
    return %c0_i32, %c0_i32_0 : i32, i32
  }
  func.func @transform_3(%arg0: i32) -> (i32, i32, i32) {
    %c0_i32 = arith.constant 0 : i32
    %c0_i32_0 = arith.constant 0 : i32
    %c0_i32_1 = arith.constant 0 : i32
    %c0_i32_2 = arith.constant 0 : i32
    return %c0_i32, %c0_i32_0, %c0_i32_1 : i32, i32, i32
  }
  func.func @transform_4(%arg0: i32) -> (i32, i32) {
    %c0_i32 = arith.constant 0 : i32
    %c0_i32_0 = arith.constant 0 : i32
    %c0_i32_1 = arith.constant 0 : i32
    return %c0_i32, %c0_i32_0 : i32, i32
  }
  func.func @transform_5(%arg0: i32) -> (i32, i32) {
    %c0_i32 = arith.constant 0 : i32
    %c0_i32_0 = arith.constant 0 : i32
    %c0_i32_1 = arith.constant 0 : i32
    return %c0_i32, %c0_i32_0 : i32, i32
  }
  func.func @transform_6(%arg0: i32) -> (i32, i32) {
    %c0_i32 = arith.constant 0 : i32
    %c0_i32_0 = arith.constant 0 : i32
    %c0_i32_1 = arith.constant 0 : i32
    return %c0_i32, %c0_i32_0 : i32, i32
  }
  func.func @transform_7(%arg0: i32) -> (i32, i32) {
    %c0_i32 = arith.constant 0 : i32
    %c0_i32_0 = arith.constant 0 : i32
    %c0_i32_1 = arith.constant 0 : i32
    return %c0_i32, %c0_i32_0 : i32, i32
  }
  func.func @transform_8(%arg0: i32) -> (i32, i32) {
    %c0_i32 = arith.constant 0 : i32
    %c0_i32_0 = arith.constant 0 : i32
    %c0_i32_1 = arith.constant 0 : i32
    return %c0_i32, %c0_i32_0 : i32, i32
  }
  func.func @transform_9(%arg0: i32) -> (i32, i32) {
    %c0_i32 = arith.constant 0 : i32
    %c0_i32_0 = arith.constant 0 : i32
    return %arg0, %c0_i32 : i32, i32
  }
}

</mosaic_0001>

<bundles_post_ra>
// kernel: tile.13
= control target key start
LH: loop header
LB: loop body
LE: loop exit
PB: predicated region body
PF: predicated region fallthrough
CT: control target
= control target key end

     0   :  { %s34_s0 = inlined_call_operand.vmem [shape: f32[10], index: 0, kind: input, shape index: {}]   ;;  %s35_s1 = inlined_call_operand.vmem [shape: f32[24,10], index: 1, kind: output, shape index: {}]  }
   0x1   :  { %v4_v0 = vld [vmem:[%s34_s0] ss:$0 sm:$0xff] }
   0x2   :  { %5 = vst [vmem:[%s35_s1] sm:$0xff] %v4_v0  ;;  %10 = vst [vmem:[%s35_s1 + $0x8] sm:$0xff] %v4_v0 }
   0x3   :  { %11 = vst [vmem:[%s35_s1 + $0x10] sm:$0xff] %v4_v0 }

// kernel: tile.14
= control target key start
LH: loop header
LB: loop body
LE: loop exit
PB: predicated region body
PF: predicated region fallthrough
CT: control target
= control target key end

     0   :  { %vm9_vm0 = vcmask 64512   ;;  %s223_s12 = smov 120   ;;  %s224_s13 = smov 102   ;;  %vm3_vm1 = vcmask 80896   ;;  %vm13_vm2 = vcmask 15360   ;;  %vm16_vm3 = vcmask 1048512   ;;  %s337_s0 = inlined_call_operand.vmem [shape: f32[24,10], index: 0, kind: input, shape index: {}]   ;;  %s338_s1 = inlined_call_operand.vmem [shape: f32[1,240], index: 1, kind: output, shape index: {}]  }
   0x1   :  { %v175_v0 = vld [vmem:[%s337_s0 + $0xc] sm:$0x1]   ;;  %v178_v3 = vld [vmem:[%s337_s0 + $0x17] sm:$0x1]   ;;  %v177_v4 = vld [vmem:[%s337_s0 + $0xb] sm:$0x1]  }
   0x2   :  { %v176_v1 = vld [vmem:[%s337_s0 + $0xc] sm:$0x1]   ;;  %26 = vrot.lane.b32.xlu1 %v178_v3, %s224_s13  ;;  %v179_v5 = vld [vmem:[%s337_s0 + $0xa] sm:$0x1]   ;;  %s225_s18 = smov 110   ;;  %s226_s19 = smov 100  }
   0x3   :  { %v10_v2 = vsel %vm9_vm0, %v176_v1, %v175_v0  ;;  %v180_v6 = vld [vmem:[%s337_s0 + $0x16] sm:$0x1]   ;;  %v181_v7 = vld [vmem:[%s337_s0 + $0x9] sm:$0x1]   ;;  %s227_s24 = smov 92   ;;  %s228_s25 = smov 90  }
   0x4   :  { %11 = vrot.lane.b32.xlu0 %v10_v2, %s223_s12  ;;  %v182_v8 = vld [vmem:[%s337_s0 + $0x15] sm:$0x1]   ;;  %v183_v9 = vld [vmem:[%s337_s0 + $0x8] sm:$0x1]   ;;  %v2_v10 = vld [vmem:[%s337_s0] sm:$0x1]  }
   0x5   :  { %4 = vst.msk [vmem:[#allocation0] sm:$0x1] %vm3_vm1, %v2_v10   ;;  %s229_s3 = smov 82   ;;  %s230_s4 = smov 80   ;;  %v184_v11 = vld [vmem:[%s337_s0 + $0x14] sm:$0x1]  }
   0x6   :  { %33 = vrot.lane.b32.xlu1 %v179_v5, %s226_s19  ;;  %v185_v12 = vld [vmem:[%s337_s0 + $0x7] sm:$0x1]   ;;  %s231_s9 = smov 72   ;;  %s232_s10 = smov 70   ;;  %v186_v13 = vld [vmem:[%s337_s0 + $0x13] sm:$0x1]  }
   0x7   :  { %v187_v14 = vld [vmem:[%s337_s0 + $0x6] sm:$0x1]   ;;  %s233_s15 = smov 62   ;;  %s234_s16 = smov 60   ;;  %v188_v15 = vld [vmem:[%s337_s0 + $0x12] sm:$0x1]  }
   0x8   :  { %20 = vrot.lane.b32.xlu0 %v177_v4, %s225_s18  ;;  %v189_v16 = vld [vmem:[%s337_s0 + $0x5] sm:$0x1]   ;;  %s235_s21 = smov 52   ;;  %s236_s22 = smov 50   ;;  %v190_v17 = vld [vmem:[%s337_s0 + $0x11] sm:$0x1]  }
   0x9   :  { %v191_v18 = vld [vmem:[%s337_s0 + $0x4] sm:$0x1]   ;;  %s237_s27 = smov 42   ;;  %s238_s28 = smov 40   ;;  %v192_v19 = vld [vmem:[%s337_s0 + $0x10] sm:$0x1]  }
   0xa   :  { %46 = vrot.lane.b32.xlu1 %v181_v7, %s228_s25  ;;  %v193_v20 = vld [vmem:[%s337_s0 + $0x3] sm:$0x1]   ;;  %s240_s5 = smov 30   ;;  %v194_v21 = vld [vmem:[%s337_s0 + $0xf] sm:$0x1]   ;;  %s242_s11 = smov 20  }
   0xb   :  { %v195_v22 = vld [vmem:[%s337_s0 + $0x2] sm:$0x1]   ;;  %v196_v23 = vld [vmem:[%s337_s0 + $0xe] sm:$0x1]   ;;  %v197_v24 = vld [vmem:[%s337_s0 + $0x1] sm:$0x1]  }
   0xc   :  { %39 = vrot.lane.b32.xlu0 %v180_v6, %s227_s24  ;;  %s244_s17 = smov 10   ;;  %v198_v25 = vld [vmem:[%s337_s0 + $0xd] sm:$0x1]   ;;  %s245_s0 = smov 2   ;;  %vm28_vm4 = vcmask 917296   ;;  %vm22_vm5 = vcmask 982896  }
   0xd   :  { %vm35_vm6 = vcmask 900896   ;;  %vm41_vm7 = vcmask 835296   ;;  %vm48_vm8 = vcmask 818896   ;;  %vm54_vm9 = vcmask 753296  }
   0xe   :  { %59 = vrot.lane.b32.xlu1 %v183_v9, %s230_s4  ;;  %s239_s4 = smov 32   ;;  %vm61_vm10 = vcmask 736896   ;;  %vm67_vm11 = vcmask 671296   ;;  %vm74_vm12 = vcmask 654896   ;;  %vm80_vm13 = vcmask 589296  }
   0xf   :  { %vm87_vm14 = vcmask 572896   ;;  %vm93_vm15 = vcmask 507296   ;;  %vm100_vm0 = vcmask 490896   ;;  %vm106_vm1 = vcmask 425296  }
  0x10   :  { %52 = vrot.lane.b32.xlu0 %v182_v8, %s229_s3 }
  0x12   :  { %72 = vrot.lane.b32.xlu1 %v185_v12, %s232_s10  ;;  %s241_s10 = smov 22  }
  0x14   :  { %65 = vrot.lane.b32.xlu0 %v184_v11, %s231_s9 }
  0x16   :  { %85 = vrot.lane.b32.xlu1 %v187_v14, %s234_s16  ;;  %s243_s16 = smov 12  }
  0x18   :  { %78 = vrot.lane.b32.xlu0 %v186_v13, %s233_s15 }
  0x1a   :  { %98 = vrot.lane.b32.xlu1 %v189_v16, %s236_s22 }
  0x1c   :  { %91 = vrot.lane.b32.xlu0 %v188_v15, %s235_s21 }
  0x1e   :  { %111 = vrot.lane.b32.xlu1 %v191_v18, %s238_s28 }
  0x20   :  { %104 = vrot.lane.b32.xlu0 %v190_v17, %s237_s27 }
  0x22   :  { %124 = vrot.lane.b32.xlu1 %v193_v20, %s240_s5 }
  0x24   :  { %117 = vrot.lane.b32.xlu0 %v192_v19, %s239_s4 }
  0x26   :  { %137 = vrot.lane.b32.xlu1 %v195_v22, %s242_s11 }
  0x28   :  { %130 = vrot.lane.b32.xlu0 %v194_v21, %s241_s10 }
  0x2a   :  { %150 = vrot.lane.b32.xlu1 %v197_v24, %s244_s17 }
  0x2c   :  { %143 = vrot.lane.b32.xlu0 %v196_v23, %s243_s16 }
  0x30   :  { %156 = vrot.lane.b32.xlu0 %v198_v25, %s245_s0 }
  0x74   :  { %v27_v27 = vpop.permute.xlu1 %26  }
  0x76   :  { %v12_v26 = vpop.permute.xlu0 %11  }
  0x77   :  { %15 = vst.msk [vmem:[#allocation0 + $0x8] sm:$0x1] %vm13_vm2, %v12_v26   ;;  %vm113_vm2 = vcmask 408896  }
  0x78   :  { %17 = vst.msk [vmem:[#allocation0] sm:$0x1] %vm16_vm3, %v12_v26   ;;  %v34_v29 = vpop.permute.xlu1 %33   ;;  %vm119_vm3 = vcmask 343296  }
  0x79   :  { %30 = vst.msk [vmem:[#allocation0 + $0x8] sm:$0x1] %vm28_vm4, %v27_v27   ;;  %vm126_vm4 = vcmask 326896  }
  0x7a   :  { %v21_v28 = vpop.permute.xlu0 %20  }
  0x7b   :  { %23 = vst.msk [vmem:[#allocation0] sm:$0x1] %vm22_vm5, %v21_v28   ;;  %vm132_vm5 = vcmask 261296  }
  0x7c   :  { %36 = vst.msk [vmem:[#allocation0] sm:$0x1] %vm35_vm6, %v34_v29   ;;  %v47_v31 = vpop.permute.xlu1 %46   ;;  %vm139_vm6 = vcmask 244896  }
  0x7d   :  { %49 = vst.msk [vmem:[#allocation0] sm:$0x1] %vm48_vm8, %v47_v31   ;;  %vm152_vm8 = vcmask 162896  }
  0x7e   :  { %v40_v30 = vpop.permute.xlu0 %39  }
  0x7f   :  { %43 = vst.msk [vmem:[#allocation0 + $0x8] sm:$0x1] %vm41_vm7, %v40_v30   ;;  %vm145_vm7 = vcmask 179296  }
  0x80   :  { %v60_v33 = vpop.permute.xlu1 %59  }
  0x81   :  { %62 = vst.msk [vmem:[#allocation0] sm:$0x1] %vm61_vm10, %v60_v33  }
  0x82   :  { %v53_v32 = vpop.permute.xlu0 %52  }
  0x83   :  { %56 = vst.msk [vmem:[#allocation0 + $0x8] sm:$0x1] %vm54_vm9, %v53_v32   ;;  %vm158_vm9 = vcmask 97296  }
  0x84   :  { %v73_v35 = vpop.permute.xlu1 %72  }
  0x85   :  { %75 = vst.msk [vmem:[#allocation0] sm:$0x1] %vm74_vm12, %v73_v35  }
  0x86   :  { %v66_v34 = vpop.permute.xlu0 %65  }
  0x87   :  { %69 = vst.msk [vmem:[#allocation0 + $0x8] sm:$0x1] %vm67_vm11, %v66_v34  }
  0x88   :  { %v86_v37 = vpop.permute.xlu1 %85  }
  0x89   :  { %88 = vst.msk [vmem:[#allocation0] sm:$0x1] %vm87_vm14, %v86_v37  }
  0x8a   :  { %v79_v36 = vpop.permute.xlu0 %78  }
  0x8b   :  { %82 = vst.msk [vmem:[#allocation0 + $0x8] sm:$0x1] %vm80_vm13, %v79_v36  }
  0x8c   :  { %v99_v39 = vpop.permute.xlu1 %98  }
  0x8d   :  { %101 = vst.msk [vmem:[#allocation0] sm:$0x1] %vm100_vm0, %v99_v39  }
  0x8e   :  { %v92_v38 = vpop.permute.xlu0 %91  }
  0x8f   :  { %95 = vst.msk [vmem:[#allocation0 + $0x8] sm:$0x1] %vm93_vm15, %v92_v38  }
  0x90   :  { %v112_v41 = vpop.permute.xlu1 %111  }
  0x91   :  { %114 = vst.msk [vmem:[#allocation0] sm:$0x1] %vm113_vm2, %v112_v41  }
  0x92   :  { %v105_v40 = vpop.permute.xlu0 %104  }
  0x93   :  { %108 = vst.msk [vmem:[#allocation0 + $0x8] sm:$0x1] %vm106_vm1, %v105_v40  }
  0x94   :  { %v125_v43 = vpop.permute.xlu1 %124  }
  0x95   :  { %127 = vst.msk [vmem:[#allocation0] sm:$0x1] %vm126_vm4, %v125_v43  }
  0x96   :  { %v118_v42 = vpop.permute.xlu0 %117  }
  0x97   :  { %121 = vst.msk [vmem:[#allocation0 + $0x8] sm:$0x1] %vm119_vm3, %v118_v42  }
  0x98   :  { %v138_v45 = vpop.permute.xlu1 %137  }
  0x99   :  { %140 = vst.msk [vmem:[#allocation0] sm:$0x1] %vm139_vm6, %v138_v45  }
  0x9a   :  { %v131_v44 = vpop.permute.xlu0 %130  }
  0x9b   :  { %134 = vst.msk [vmem:[#allocation0 + $0x8] sm:$0x1] %vm132_vm5, %v131_v44  }
  0x9c   :  { %v151_v47 = vpop.permute.xlu1 %150  }
  0x9d   :  { %153 = vst.msk [vmem:[#allocation0] sm:$0x1] %vm152_vm8, %v151_v47  }
  0x9e   :  { %v144_v46 = vpop.permute.xlu0 %143  }
  0x9f   :  { %147 = vst.msk [vmem:[#allocation0 + $0x8] sm:$0x1] %vm145_vm7, %v144_v46  }
  0xa2   :  { %v157_v48 = vpop.permute.xlu0 %156  }
  0xa3   :  { %160 = vst.msk [vmem:[#allocation0 + $0x8] sm:$0x1] %vm158_vm9, %v157_v48  }
  0xa4   :  { %v165_v49 = vld [vmem:[#allocation0] sm:$0x1] }
  0xa5   :  { %168 = vst [vmem:[%s338_s1] sm:$0x1] %v165_v49 }
  0xaa   :  { %v170_v50 = vld [vmem:[#allocation0 + $0x8] sm:$0x1] }
  0xab   :  { %199 = vst [vmem:[%s338_s1 + $0x1] sm:$0x1] %v170_v50 }

// kernel: tile.18
= control target key start
LH: loop header
LB: loop body
LE: loop exit
PB: predicated region body
PF: predicated region fallthrough
CT: control target
= control target key end

     0   :  { %s22_s0 = inlined_call_operand.vmem [shape: f32[20], index: 0, kind: input, shape index: {}]   ;;  %s23_s1 = inlined_call_operand.vmem [shape: f32[8,20], index: 1, kind: output, shape index: {}]  }
   0x1   :  { %v4_v0 = vld [vmem:[%s22_s0] ss:$0 sm:$0xff] }
   0x2   :  { %5 = vst [vmem:[%s23_s1] sm:$0xff] %v4_v0 }

// kernel: tile.19
= control target key start
LH: loop header
LB: loop body
LE: loop exit
PB: predicated region body
PF: predicated region fallthrough
CT: control target
= control target key end

     0   :  { %vm9_vm0 = vcmask 64512   ;;  %s85_s12 = smov 120   ;;  %s86_s13 = smov 80   ;;  %vm3_vm1 = vcmask 162816   ;;  %vm13_vm2 = vcmask 97280   ;;  %vm16_vm3 = vcmask 1048512   ;;  %s135_s0 = inlined_call_operand.vmem [shape: f32[8,20], index: 0, kind: input, shape index: {}]   ;;  %s136_s1 = inlined_call_operand.vmem [shape: f32[1,160], index: 1, kind: output, shape index: {}]  }
   0x1   :  { %v69_v0 = vld [vmem:[%s135_s0 + $0x6] sm:$0x1]   ;;  %v72_v3 = vld [vmem:[%s135_s0 + $0x4] sm:$0x1]   ;;  %v71_v4 = vld [vmem:[%s135_s0 + $0x5] sm:$0x1]  }
   0x2   :  { %v70_v1 = vld [vmem:[%s135_s0 + $0x6] sm:$0x1]   ;;  %26 = vrot.lane.b32.xlu1 %v72_v3, %s86_s13  ;;  %v73_v5 = vld [vmem:[%s135_s0 + $0x3] sm:$0x1]   ;;  %v2_v6 = vld [vmem:[%s135_s0] sm:$0x1]  }
   0x3   :  { %v10_v2 = vsel %vm9_vm0, %v70_v1, %v69_v0  ;;  %4 = vst.msk [vmem:[#allocation0] sm:$0x1] %vm3_vm1, %v2_v6   ;;  %s87_s20 = smov 100   ;;  %s88_s21 = smov 60   ;;  %v74_v7 = vld [vmem:[%s135_s0 + $0x2] sm:$0x1]  }
   0x4   :  { %11 = vrot.lane.b32.xlu0 %v10_v2, %s85_s12  ;;  %v75_v8 = vld [vmem:[%s135_s0 + $0x1] sm:$0x1]   ;;  %s89_s26 = smov 40   ;;  %s90_s27 = smov 20   ;;  %v76_v9 = vld [vmem:[%s135_s0 + $0x7] sm:$0x1]  }
   0x5   :  { %s91_s0 = smov 12   ;;  %vm22_vm4 = vcmask 982816   ;;  %vm28_vm5 = vcmask 818816   ;;  %vm34_vm6 = vcmask 654816   ;;  %vm40_vm7 = vcmask 490816  }
   0x6   :  { %32 = vrot.lane.b32.xlu1 %v73_v5, %s88_s21  ;;  %vm46_vm8 = vcmask 326816   ;;  %vm52_vm9 = vcmask 261216  }
   0x8   :  { %20 = vrot.lane.b32.xlu0 %v71_v4, %s87_s20 }
   0xa   :  { %44 = vrot.lane.b32.xlu1 %v75_v8, %s90_s27 }
   0xc   :  { %38 = vrot.lane.b32.xlu0 %v74_v7, %s89_s26 }
  0x10   :  { %50 = vrot.lane.b32.xlu0 %v76_v9, %s91_s0 }
  0x74   :  { %v27_v11 = vpop.permute.xlu1 %26  }
  0x76   :  { %v12_v10 = vpop.permute.xlu0 %11  }
  0x77   :  { %15 = vst.msk [vmem:[#allocation0 + $0x8] sm:$0x1] %vm13_vm2, %v12_v10  }
  0x78   :  { %17 = vst.msk [vmem:[#allocation0] sm:$0x1] %vm16_vm3, %v12_v10   ;;  %v33_v13 = vpop.permute.xlu1 %32  }
  0x7a   :  { %v21_v12 = vpop.permute.xlu0 %20  }
  0x7b   :  { %23 = vst.msk [vmem:[#allocation0] sm:$0x1] %vm22_vm4, %v21_v12  }
  0x7c   :  { %29 = vst.msk [vmem:[#allocation0] sm:$0x1] %vm28_vm5, %v27_v11   ;;  %v45_v15 = vpop.permute.xlu1 %44  }
  0x7d   :  { %35 = vst.msk [vmem:[#allocation0] sm:$0x1] %vm34_vm6, %v33_v13  }
  0x7e   :  { %v39_v14 = vpop.permute.xlu0 %38  }
  0x7f   :  { %41 = vst.msk [vmem:[#allocation0] sm:$0x1] %vm40_vm7, %v39_v14  }
  0x80   :  { %47 = vst.msk [vmem:[#allocation0] sm:$0x1] %vm46_vm8, %v45_v15  }
  0x82   :  { %v51_v16 = vpop.permute.xlu0 %50  }
  0x83   :  { %54 = vst.msk [vmem:[#allocation0 + $0x8] sm:$0x1] %vm52_vm9, %v51_v16  }
  0x87   :  { %v59_v17 = vld [vmem:[#allocation0] sm:$0x1] }
  0x88   :  { %62 = vst [vmem:[%s136_s1] sm:$0x1] %v59_v17 }
  0x8a   :  { %v64_v18 = vld [vmem:[#allocation0 + $0x8] sm:$0x1] }
  0x8b   :  { %77 = vst [vmem:[%s136_s1 + $0x1] sm:$0x1] %v64_v18 }

// kernel: cnn_mnist_forward.1
= control target key start
LH: loop header
LB: loop body
LE: loop exit
PB: predicated region body
PF: predicated region fallthrough
CT: control target
= control target key end

     0   :  { %14 = vsyncpa [#allocation3], 0  ;;  %s10406_s0 = inlined_call_operand.vmem [shape: f32[16,28,28], index: 0, kind: input, shape index: {}]   ;;  %s10407_s1 = inlined_call_operand.vmem [shape: f32[5,28,240], index: 1, kind: input, shape index: {}]   ;;  %s10408_s2 = inlined_call_operand.vmem [shape: f32[1,240], index: 2, kind: input, shape index: {}]   ;;  %s10409_s3 = inlined_call_operand.vmem [shape: f32[5,120,160], index: 3, kind: input, shape index: {}]   ;;  %s10410_s4 = inlined_call_operand.vmem [shape: f32[1,160], index: 4, kind: input, shape index: {}]   ;;  %s10411_s5 = inlined_call_operand.vmem [shape: f32[320,50], index: 5, kind: input, shape index: {}]   ;;  %s10412_s6 = inlined_call_operand.vmem [shape: f32[1,50], index: 6, kind: input, shape index: {}]   ;;  %s10413_s7 = inlined_call_operand.vmem [shape: f32[50,10], index: 7, kind: input, shape index: {}]   ;;  %s10414_s8 = inlined_call_operand.vmem [shape: f32[1,10], index: 8, kind: input, shape index: {}]   ;;  %s10415_s9 = inlined_call_operand.hbm [shape: f32[16,10], index: 9, kind: output, shape index: {}]  }
   0x1   :  { %16 = vsyncpa [#allocation3 + $0x1], 0  ;;  %s6755_s30 = smov 0   ;;  %s6757_s10 = smov 0  }
   0x2   :  { %s6759_s11 = smov 0   ;;  %s6761_s12 = smov 0  }
   0x3 LB: > { %s6776_s13 = sadd.s32 4294967295, %s6694_s12   ;;  %s6031_s14 = sadd.s32 4294967294, %s6694_s12   ;;  %s6694_s12 = sphi %s6761_s12, %s10725_s12   ;;  %s6690_s11 = sphi %s6759_s11, %s10724_s11   ;;  %s6686_s10 = sphi %s6757_s10, %s10723_s10   ;;  %s6682_s30 = sphi %s6755_s30, %s10722_s30  }
   0x4   : > { %s6780_s15 = sadd.s32 1, %s6694_s12   ;;  %s223_s16 = sadd.s32 1, %s6690_s11 }
   0x5   : > { %s220_s17 = ssub.s32 %s6694_s12, %s6780_s15  ;;  %p233_p0 = scmp.ne.s32.totalorder %s6690_s11, %s6686_s10 }
   0x6   : > { %p221_p1 = scmp.eq.s32.totalorder %s220_s17, 0  ;;  %p234_p2 = scmp.eq.s32.totalorder %s6776_s13, 1 }
   0x7   : > { %p239_p3 = scmp.ne.s32.totalorder %s6686_s10, %s6682_s30  ;;  %p240_p4 = scmp.eq.s32.totalorder %s6031_s14, 1 }
   0x8   : > { %s6791_s18 = scalar_select %p221_p1, %s6690_s11, %s223_s16  }
   0x9   : > { %p6793_p5 = por %p234_p2, %p233_p0  ;;  %p6797_p6 = por %p240_p4, %p239_p3 }
   0xa   : > { %p6034_p7 = scmp.ge.s32.totalorder %s6694_s12, 1  ;;  %p292_p8 = scmp.lt.s32.totalorder %s6694_s12, 3 }
   0xc   : > { %p293_p9 = pnand %p6034_p7, %p292_p8 }
   0xe   : > { %296 = sbr.rel (%p293_p9) target bundleno = 1674 (0x68a), region = 56 }
  0x13   : > { %v6046_v0 = vld [vmem:[%s10407_s1 + $0x78] sm:$0xf]  ;;  %vm523_vm0 = vcmask 1043456   ;;  %v6045_v1 = vld [vmem:[%s10407_s1 + $0x70] sm:$0xf]  ;;  %v6044_v2 = vld [vmem:[%s10407_s1 + $0x68] sm:$0xff] }
  0x14   : > { %6047 = vmatprep.subr.msk.mxu0 %vm523_vm0, %v6046_v0  ;;  %v375_v3 = vld [vmem:[%s10407_s1 + $0x38] sm:$0xf]  ;;  %v374_v4 = vld [vmem:[%s10407_s1 + $0x30] sm:$0xf]  ;;  %v6043_v5 = vld [vmem:[%s10407_s1 + $0x60] sm:$0xff]  ;;  %s6036_s27 = sshll.u32 %s6776_s13, 3 }
  0x15   : > { %6048 = vmatpush1.msk.msra.mxu0 %vm523_vm0, %v6045_v1  ;;  %6073 = vmatprep.subr.msk.mxu1 %vm523_vm0, %v375_v3  ;;  %v373_v6 = vld [vmem:[%s10407_s1 + $0x28] sm:$0xff]  ;;  %v6042_v7 = vld [vmem:[%s10407_s1 + $0x58] sm:$0xff]  ;;  %v372_v8 = vld [vmem:[%s10407_s1 + $0x20] sm:$0xff]  ;;  %p330_p10 = scmp.lt.s32.totalorder %s6036_s27, 15  ;;  %vm474_vm1 = vcmask 228352   ;;  %v10416_v19 = vmov 0.0  }
  0x16   : > { %556 = vmatprep.subr.mxu0 %v6044_v2  ;;  %6074 = vmatpush1.msk.msra.mxu1 %vm523_vm0, %v374_v4  ;;  %v6041_v9 = vld [vmem:[%s10407_s1 + $0x50] sm:$0xff]  ;;  %v371_v10 = vld [vmem:[%s10407_s1 + $0x18] sm:$0xff]  ;;  %v6040_v11 = vld [vmem:[%s10407_s1 + $0x48] sm:$0xff]  ;;  %vm408_vm2 = vcmask 1046528   ;;  %vm1002_vm3 = vcmask 1045504   ;;  %vm1379_vm4 = vcmask 1044480  }
  0x17   : > { %557 = vmatpush1.msra.mxu0 %v6043_v5  ;;  %819 = vmatprep.subr.mxu1 %v373_v6  ;;  %v370_v12 = vld [vmem:[%s10407_s1 + $0x10] sm:$0xff]  ;;  %v6039_v13 = vld [vmem:[%s10407_s1 + $0x40] sm:$0xff]  ;;  %v369_v14 = vld [vmem:[%s10407_s1 + $0x8] sm:$0xff]  ;;  %s10727_s27 = smov (!%p330_p10, %s6036_s27), 15  ;;  %vm2336_vm5 = vcmask 64512   ;;  %vm3798_vm6 = vcmask 1041409  }
  0x18   : > { %558 = vmatprep.subr.mxu0 %v6042_v7  ;;  %820 = vmatpush1.msra.mxu1 %v372_v8  ;;  %v368_v15 = vld [vmem:[%s10407_s1] sm:$0xff]  ;;  %v6106_v16 = vld [vmem:[%s10407_s1 + $0xb8] sm:$0xf]  ;;  %s6498_s21 = sshll.u32 %s10727_s27, 5  ;;  %v6139_v18 = vld [vmem:[%s10407_s1 + $0xf0] sm:$0xf] }
  0x19   : > { %559 = vmatpush1.msra.mxu0 %v6041_v9  ;;  %821 = vmatprep.subr.mxu1 %v371_v10  ;;  %s6862_s24 = scalar_lea.vmem %s10406_s0, %s6498_s21  ;;  %v6140_v17 = vld [vmem:[%s10407_s1 + $0xf8] sm:$0xf]  ;;  %v6138_v26 = vld [vmem:[%s10407_s1 + $0xe8] sm:$0xff]  ;;  %v6105_v27 = vld [vmem:[%s10407_s1 + $0xb0] sm:$0xf]  ;;  %vm3800_vm7 = vcmask 1042434  }
  0x1a   : > { %560 = vmatprep.subr.mxu0 %v6040_v11  ;;  %822 = vmatpush1.msra.mxu1 %v370_v12  ;;  %v6872_v20 = vld [vmem:[%s6862_s24] sm:$0xff]  ;;  %v6875_v21 = vld [vmem:[%s6862_s24 + $0x8] sm:$0xff]  ;;  %v6878_v22 = vld [vmem:[%s6862_s24 + $0x10] sm:$0xff]  ;;  %vm3802_vm8 = vcmask 1043459   ;;  %vm3804_vm9 = vcmask 1044484   ;;  %vm3806_vm10 = vcmask 1045509  }
  0x1b   : > { %561 = vmatpush1.msra.mxu0 %v6039_v13  ;;  %823 = vmatprep.subr.mxu1 %v369_v14  ;;  %v409_v23 = vrot.slane %v6872_v20, 1  ;;  %v410_v24 = vrot.slane %v6875_v21, 1  ;;  %v412_v25 = vrot.slane %v6878_v22, 1  ;;  %v6894_v28 = vld [vmem:[%s6862_s24 + $0x18] sm:$0xf]  ;;  %v6104_v30 = vld [vmem:[%s10407_s1 + $0xa8] sm:$0xff] }
  0x1c   : > { %594 = vmatprep.mubr.f32.mxu0 %v10416_v19  ;;  %824 = vmatpush1.msra.mxu1 %v368_v15  ;;  %v6103_v31 = vld [vmem:[%s10407_s1 + $0xa0] sm:$0xff]  ;;  %v414_v33 = vrot.slane %v6894_v28, 1  ;;  %v6102_v34 = vld [vmem:[%s10407_s1 + $0x98] sm:$0xff]  ;;  %v6920_v36 = vld [vmem:[%s6862_s24 + $0x28] sm:$0xff]  ;;  %v1003_v52 = vrot.slane %v6872_v20, 2  ;;  %v1004_v53 = vrot.slane %v6875_v21, 2 }
  0x1d   : > { %857 = vmatprep.mubr.f32.mxu1 %v10416_v19  ;;  %6107 = vmatprep.subr.msk.mxu0 %vm523_vm0, %v6106_v16  ;;  %v411_v29 = vsel %vm408_vm2, %v409_v23, %v410_v24  ;;  %v413_v32 = vsel %vm408_vm2, %v410_v24, %v412_v25  ;;  %v6917_v35 = vld [vmem:[%s6862_s24 + $0x20] sm:$0xff]  ;;  %v6101_v37 = vld [vmem:[%s10407_s1 + $0x90] sm:$0xff]  ;;  %v6100_v38 = vld [vmem:[%s10407_s1 + $0x88] sm:$0xff]  ;;  %v417_v42 = vrot.slane %v6920_v36, 1  ;;  %v1380_v54 = vrot.slane %v6872_v20, 3  ;;  %s6699_s22 = smov 48  }
  0x1e   : > { %6075 = vmatmul.mubr.msk.f32.vlgmr.msra.gmra.mxu1 %vm474_vm1, %v6872_v20  ;;  %6141 = vmatprep.subr.msk.mxu1 %vm523_vm0, %v6140_v17  ;;  %v6099_v39 = vld [vmem:[%s10407_s1 + $0x80] sm:$0xff]  ;;  %v415_v40 = vsel %vm408_vm2, %v412_v25, %v414_v33  ;;  %v416_v41 = vrot.slane %v6917_v35, 1  ;;  %v6940_v43 = vld [vmem:[%s6862_s24 + $0x30] sm:$0xff]  ;;  %v6136_v45 = vld [vmem:[%s10407_s1 + $0xd8] sm:$0xff]  ;;  %v1381_v56 = vrot.slane %v6875_v21, 3  ;;  %v6983_v59 = vsel %vm1002_vm3, %v1003_v52, %v1004_v53  ;;  %s6700_s17 = smov 80  }
  0x1f   : > { %863 = vmatprep.mubr.f32.mxu1 %v10416_v19  ;;  %6142 = vmatpush1.msk.msra.mxu1 %vm523_vm0, %v6139_v18  ;;  %v6137_v44 = vld [vmem:[%s10407_s1 + $0xe0] sm:$0xff]  ;;  %v6135_v46 = vld [vmem:[%s10407_s1 + $0xd0] sm:$0xff]  ;;  %v419_v48 = vrot.slane %v6940_v43, 1  ;;  %v6174_v49 = vld [vmem:[%s10407_s1 + $0x138] sm:$0xf]  ;;  %vm3808_vm11 = vcmask 1046534  }
  0x20   : > { %6049 = vmatmul.mubr.msk.f32.vlgmr.msra.gmra.mxu0 %vm474_vm1, %v411_v29  ;;  %1525 = vmatprep.subr.mxu1 %v6138_v26  ;;  %v418_v47 = vsel %vm408_vm2, %v416_v41, %v417_v42  ;;  %v6962_v50 = vld [vmem:[%s6862_s24 + $0x38] sm:$0xf]  ;;  %v6134_v51 = vld [vmem:[%s10407_s1 + $0xc8] sm:$0xff]  ;;  %v6133_v55 = vld [vmem:[%s10407_s1 + $0xc0] sm:$0xff]  ;;  %v6996_v62 = vsel %vm1379_vm4, %v1380_v54, %v1381_v56  ;;  %vm3810_vm12 = vcmask 1047559   ;;  %vm3861_vm13 = vcmask 982016  }
  0x21   : > { %6108 = vmatpush1.msk.msra.mxu0 %vm523_vm0, %v6105_v27  ;;  %600 = vmatprep.mubr.f32.mxu0 %v10416_v19  ;;  %v420_v57 = vsel %vm408_vm2, %v417_v42, %v419_v48  ;;  %v421_v58 = vrot.slane %v6962_v50, 1  ;;  %v6988_v60 = vld [vmem:[%s6862_s24 + $0x40] sm:$0xff]  ;;  %v6991_v61 = vld [vmem:[%s6862_s24 + $0x48] sm:$0xff]  ;;  %v7007_v2 = vld [vmem:[%s6862_s24 + $0x50] sm:$0xff]  ;;  %vm5108_vm14 = vcmask 392192   ;;  %vm6702_vm15 = vmmov 0  }
  0x22   : > { %6076 = vmatmul.mubr.msk.f32.gmra.mxu1 %vm474_vm1, %v6875_v21  ;;  %1148 = vmatprep.subr.mxu0 %v6104_v30  ;;  %v423_v0 = vrot.slane %v6988_v60, 1  ;;  %v424_v1 = vrot.slane %v6991_v61, 1  ;;  %v426_v4 = vrot.slane %v7007_v2, 1  ;;  %v7017_v5 = vld [vmem:[%s6862_s24 + $0x58] sm:$0xf]  ;;  %v7027_v8 = vld [vmem:[%s6862_s24 + $0x60] sm:$0xff] }
  0x23   : > { %869 = vmatprep.mubr.f32.mxu1 %v10416_v19  ;;  %1149 = vmatpush1.msra.mxu0 %v6103_v31  ;;  %v422_v63 = vsel %vm408_vm2, %v419_v48, %v421_v58  ;;  %v428_v7 = vrot.slane %v7017_v5, 1  ;;  %v7030_v9 = vld [vmem:[%s6862_s24 + $0x68] sm:$0xff]  ;;  %v430_v11 = vrot.slane %v7027_v8, 1  ;;  %v7041_v13 = vld [vmem:[%s6862_s24 + $0x70] sm:$0xff]  ;;  %v7051_v16 = vld [vmem:[%s6862_s24 + $0x78] sm:$0xf] }
  0x24   : > { %6050 = vmatmul.mubr.msk.f32.gmra.mxu0 %vm474_vm1, %v413_v32  ;;  %1150 = vmatprep.subr.mxu0 %v6102_v34  ;;  %v425_v3 = vsel %vm408_vm2, %v423_v0, %v424_v1  ;;  %v427_v6 = vsel %vm408_vm2, %v424_v1, %v426_v4  ;;  %v431_v12 = vrot.slane %v7030_v9, 1  ;;  %v433_v15 = vrot.slane %v7041_v13, 1  ;;  %v7061_v23 = vld [vmem:[%s6862_s24 + $0x80] sm:$0xff]  ;;  %v7064_v24 = vld [vmem:[%s6862_s24 + $0x88] sm:$0xff]  ;;  %v7075_v29 = vld [vmem:[%s6862_s24 + $0x90] sm:$0xff]  ;;  %s6703_s21 = smov 112  }
  0x25   : > { %606 = vmatprep.mubr.f32.mxu0 %v10416_v19  ;;  %1151 = vmatpush1.msra.mxu0 %v6101_v37  ;;  %v429_v10 = vsel %vm408_vm2, %v426_v4, %v428_v7  ;;  %v435_v18 = vrot.slane %v7051_v16, 1  ;;  %v437_v26 = vrot.slane %v7061_v23, 1  ;;  %v438_v27 = vrot.slane %v7064_v24, 1  ;;  %v7085_v32 = vld [vmem:[%s6862_s24 + $0x98] sm:$0xf]  ;;  %v7095_v37 = vld [vmem:[%s6862_s24 + $0xa0] sm:$0xff] }
  0x26   : > { %6077 = vmatmul.mubr.msk.f32.gmra.mxu1 %vm474_vm1, %v6878_v22  ;;  %1152 = vmatprep.subr.mxu0 %v6100_v38  ;;  %v432_v14 = vsel %vm408_vm2, %v430_v11, %v431_v12  ;;  %v434_v17 = vsel %vm408_vm2, %v431_v12, %v433_v15  ;;  %v440_v31 = vrot.slane %v7075_v29, 1  ;;  %v442_v34 = vrot.slane %v7085_v32, 1  ;;  %v7098_v38 = vld [vmem:[%s6862_s24 + $0xa8] sm:$0xff]  ;;  %v7109_v42 = vld [vmem:[%s6862_s24 + $0xb0] sm:$0xff]  ;;  %v7131_v52 = vld [vmem:[%s6862_s24 + $0xc0] sm:$0xff]  ;;  %s326_s28 = sand.u32 1, %s6686_s10  }
  0x27   : > { %875 = vmatprep.mubr.f32.mxu1 %v10416_v19  ;;  %1153 = vmatpush1.msra.mxu0 %v6099_v39  ;;  %v436_v25 = vsel %vm408_vm2, %v433_v15, %v435_v18  ;;  %v439_v30 = vsel %vm408_vm2, %v437_v26, %v438_v27  ;;  %v445_v41 = vrot.slane %v7098_v38, 1  ;;  %v7134_v54 = vld [vmem:[%s6862_s24 + $0xc8] sm:$0xff]  ;;  %v7170_v7 = vld [vmem:[%s6862_s24 + $0xe0] sm:$0xff]  ;;  %v7184_v15 = vld [vmem:[%s6862_s24 + $0xf0] sm:$0xff]  ;;  %s6035_s29 = sshll.u32 %s326_s28, 3  ;;  %s6495_s16 = sshll.u32 %s6776_s13, 7 }
  0x28   : > { %6051 = vmatmul.mubr.msk.f32.gmra.mxu0 %vm474_vm1, %v415_v40  ;;  %1526 = vmatpush1.msra.mxu1 %v6137_v44  ;;  %v441_v33 = vsel %vm408_vm2, %v438_v27, %v440_v31  ;;  %v443_v39 = vsel %vm408_vm2, %v440_v31, %v442_v34  ;;  %v444_v40 = vrot.slane %v7095_v37, 1  ;;  %v452_v58 = vrot.slane %v7134_v54, 1  ;;  %v6173_v34 = vld [vmem:[%s10407_s1 + $0x130] sm:$0xf]  ;;  %s10371_s23 = scalar_lea.hbm %s10415_s9, %s6495_s16  ;;  %s5959_s25 = scalar_lea.sflag [#allocation3], %s326_s28 }
  0x29   : > { %612 = vmatprep.mubr.f32.mxu0 %v10416_v19  ;;  %1527 = vmatprep.subr.mxu1 %v6136_v45  ;;  %v447_v45 = vrot.slane %v7109_v42, 1  ;;  %v458_v12 = vrot.slane %v7170_v7, 1  ;;  %v461_v18 = vrot.slane %v7184_v15, 1  ;;  %v1383_v31 = vrot.slane %v6878_v22, 3  ;;  %s6704_s13 = smov [#allocation2]  }
  0x2a   : > { %6078 = vmatmul.mubr.msk.f32.gmra.mxu1 %vm474_vm1, %v6917_v35  ;;  %6175 = vmatprep.subr.msk.mxu0 %vm523_vm0, %v6174_v49  ;;  %v446_v44 = vsel %vm408_vm2, %v444_v40, %v445_v41  ;;  %v1756_v49 = vrot.slane %v6872_v20, 4  ;;  %v1385_v40 = vrot.slane %v6894_v28, 3 }
  0x2b   : > { %881 = vmatprep.mubr.f32.mxu1 %v10416_v19  ;;  %1528 = vmatpush1.msra.mxu1 %v6135_v46  ;;  %v7119_v46 = vld [vmem:[%s6862_s24 + $0xb8] sm:$0xf] }
  0x2c   : > { %6052 = vmatmul.mubr.msk.f32.gmra.mxu0 %vm474_vm1, %v418_v47  ;;  %1529 = vmatprep.subr.mxu1 %v6134_v51  ;;  %v448_v47 = vsel %vm408_vm2, %v445_v41, %v447_v45  ;;  %v449_v48 = vrot.slane %v7119_v46, 1  ;;  %v1757_v51 = vrot.slane %v6875_v21, 4  ;;  %v6172_v41 = vld [vmem:[%s10407_s1 + $0x128] sm:$0xff]  ;;  %v1763_v21 = vrot.slane %v6917_v35, 4 }
  0x2d   : > { %618 = vmatprep.mubr.f32.mxu0 %v10416_v19  ;;  %1530 = vmatpush1.msra.mxu1 %v6133_v55 }
  0x2e   : > { %6079 = vmatmul.mubr.msk.f32.gmra.mxu1 %vm474_vm1, %v6920_v36  ;;  %v7140_v55 = vsel %vm523_vm0, %v1756_v49, %v1757_v51  ;;  %v450_v20 = vsel %vm408_vm2, %v447_v45, %v449_v48  ;;  %v6170_v45 = vld [vmem:[%s10407_s1 + $0x118] sm:$0xff]  ;;  %v1387_v48 = vrot.slane %v6917_v35, 3  ;;  %v6168_v49 = vld [vmem:[%s10407_s1 + $0x108] sm:$0xff] }
  0x2f   : > { %887 = vmatprep.mubr.f32.mxu1 %v10416_v19 }
  0x30   : > { %6053 = vmatmul.mubr.msk.f32.gmra.mxu0 %vm474_vm1, %v420_v57  ;;  %v451_v57 = vrot.slane %v7131_v52, 1 }
  0x31   : > { %624 = vmatprep.mubr.f32.mxu0 %v10416_v19 }
  0x32   : > { %6080 = vmatmul.mubr.msk.f32.gmra.mxu1 %vm474_vm1, %v6940_v43  ;;  %v453_v0 = vsel %vm408_vm2, %v451_v57, %v452_v58 }
  0x33   : > { %893 = vmatprep.mubr.f32.mxu1 %v10416_v19 }
  0x34   : > { %6054 = vmatmul.mubr.msk.f32.gmra.mxu0 %vm474_vm1, %v422_v63  ;;  %v7150_v63 = vld [vmem:[%s6862_s24 + $0xd0] sm:$0xff] }
  0x35   : > { %630 = vmatprep.mubr.f32.mxu0 %v10416_v19  ;;  %v454_v1 = vrot.slane %v7150_v63, 1 }
  0x36   : > { %6081 = vmatmul.mubr.msk.f32.gmra.mxu1 %vm474_vm1, %v6988_v60 }
  0x37   : > { %899 = vmatprep.mubr.f32.mxu1 %v10416_v19  ;;  %v455_v4 = vsel %vm408_vm2, %v452_v58, %v454_v1  ;;  %v1010_v58 = vrot.slane %v6917_v35, 2 }
  0x38   : > { %6055 = vmatmul.mubr.msk.f32.gmra.mxu0 %vm474_vm1, %v425_v3  ;;  %v7160_v3 = vld [vmem:[%s6862_s24 + $0xd8] sm:$0xf] }
  0x39   : > { %636 = vmatprep.mubr.f32.mxu0 %v10416_v19 }
  0x3a   : > { %6082 = vmatmul.mubr.msk.f32.gmra.mxu1 %vm474_vm1, %v6991_v61 }
  0x3b   : > { %905 = vmatprep.mubr.f32.mxu1 %v10416_v19 }
  0x3c   : > { %6056 = vmatmul.mubr.msk.f32.gmra.mxu0 %vm474_vm1, %v427_v6  ;;  %v456_v6 = vrot.slane %v7160_v3, 1 }
  0x3d   : > { %642 = vmatprep.mubr.f32.mxu0 %v10416_v19 }
  0x3e   : > { %6083 = vmatmul.mubr.msk.f32.gmra.mxu1 %vm474_vm1, %v7007_v2  ;;  %v457_v11 = vsel %vm408_vm2, %v454_v1, %v456_v6 }
  0x3f   : > { %911 = vmatprep.mubr.f32.mxu1 %v10416_v19 }
  0x40   : > { %6057 = vmatmul.mubr.msk.f32.gmra.mxu0 %vm474_vm1, %v429_v10  ;;  %v7173_v10 = vld [vmem:[%s6862_s24 + $0xe8] sm:$0xff] }
  0x41   : > { %648 = vmatprep.mubr.f32.mxu0 %v10416_v19 }
  0x42   : > { %6084 = vmatmul.mubr.msk.f32.gmra.mxu1 %vm474_vm1, %v7027_v8 }
  0x43   : > { %917 = vmatprep.mubr.f32.mxu1 %v10416_v19 }
  0x44   : > { %6058 = vmatmul.mubr.msk.f32.gmra.mxu0 %vm474_vm1, %v432_v14  ;;  %v459_v14 = vrot.slane %v7173_v10, 1 }
  0x45   : > { %654 = vmatprep.mubr.f32.mxu0 %v10416_v19 }
  0x46   : > { %6085 = vmatmul.mubr.msk.f32.gmra.mxu1 %vm474_vm1, %v7030_v9  ;;  %v462_v26 = vsel %vm408_vm2, %v459_v14, %v461_v18 }
  0x47   : > { %923 = vmatprep.mubr.f32.mxu1 %v10416_v19 }
  0x48   : > { %6059 = vmatmul.mubr.msk.f32.gmra.mxu0 %vm474_vm1, %v434_v17  ;;  %v460_v17 = vsel %vm408_vm2, %v458_v12, %v459_v14  ;;  %v1392_v14 = vrot.slane %v6962_v50, 3 }
  0x49   : > { %660 = vmatprep.mubr.f32.mxu0 %v10416_v19 }
  0x4a   : > { %6086 = vmatmul.mubr.msk.f32.gmra.mxu1 %vm474_vm1, %v7041_v13 }
  0x4b   : > { %929 = vmatprep.mubr.f32.mxu1 %v10416_v19 }
  0x4c   : > { %6060 = vmatmul.mubr.msk.f32.gmra.mxu0 %vm474_vm1, %v436_v25  ;;  %v7194_v25 = vld [vmem:[%s6862_s24 + $0xf8] sm:$0xf]  ;;  %s6697_s24 = smov 8  }
  0x4d   : > { %666 = vmatprep.mubr.f32.mxu0 %v10416_v19  ;;  %v463_v27 = vrot.slane %v7194_v25, 1 }
  0x4e   : > { %6087 = vmatmul.mubr.msk.f32.gmra.mxu1 %vm474_vm1, %v7061_v23 }
  0x4f   : > { %935 = vmatprep.mubr.f32.mxu1 %v10416_v19 }
  0x50   : > { %6061 = vmatmul.mubr.msk.f32.gmra.mxu0 %vm474_vm1, %v439_v30  ;;  %v464_v30 = vsel %vm408_vm2, %v461_v18, %v463_v27  ;;  %v1015_v18 = vrot.slane %v6962_v50, 2  ;;  %v1394_v27 = vrot.slane %v6988_v60, 3  ;;  %vm5671_vm2 = vcmask 916480  }
  0x51   : > { %672 = vmatprep.mubr.f32.mxu0 %v10416_v19 }
  0x52   : > { %6088 = vmatmul.mubr.msk.f32.gmra.mxu1 %vm474_vm1, %v7064_v24 }
  0x53   : > { %941 = vmatprep.mubr.f32.mxu1 %v10416_v19 }
  0x54   : > { %6062 = vmatmul.mubr.msk.f32.gmra.mxu0 %vm474_vm1, %v441_v33  ;;  %v1006_v33 = vrot.slane %v6878_v22, 2 }
  0x55   : > { %678 = vmatprep.mubr.f32.mxu0 %v10416_v19 }
  0x56   : > { %6089 = vmatmul.mubr.msk.f32.gmra.mxu1 %vm474_vm1, %v7075_v29 }
  0x57   : > { %947 = vmatprep.mubr.f32.mxu1 %v10416_v19 }
  0x58   : > { %6063 = vmatmul.mubr.msk.f32.gmra.mxu0 %vm474_vm1, %v443_v39  ;;  %v1384_v39 = vsel %vm1379_vm4, %v1381_v56, %v1383_v31  ;;  %v1007_v56 = vsel %vm1002_vm3, %v1004_v53, %v1006_v33  ;;  %v1388_v53 = vrot.slane %v6920_v36, 3 }
  0x59   : > { %684 = vmatprep.mubr.f32.mxu0 %v10416_v19 }
  0x5a   : > { %6090 = vmatmul.mubr.msk.f32.gmra.mxu1 %vm474_vm1, %v7095_v37  ;;  %v1389_v1 = vsel %vm1379_vm4, %v1387_v48, %v1388_v53  ;;  %v1401_v48 = vrot.slane %v7027_v8, 3 }
  0x5b   : > { %953 = vmatprep.mubr.f32.mxu1 %v10416_v19 }
  0x5c   : > { %6064 = vmatmul.mubr.msk.f32.gmra.mxu0 %vm474_vm1, %v446_v44  ;;  %v6171_v44 = vld [vmem:[%s10407_s1 + $0x120] sm:$0xff] }
  0x5d   : > { %690 = vmatprep.mubr.f32.mxu0 %v10416_v19 }
  0x5e   : > { %6091 = vmatmul.mubr.msk.f32.gmra.mxu1 %vm474_vm1, %v7098_v38 }
  0x5f   : > { %959 = vmatprep.mubr.f32.mxu1 %v10416_v19 }
  0x60   : > { %6065 = vmatmul.mubr.msk.f32.gmra.mxu0 %vm474_vm1, %v448_v47  ;;  %v1386_v47 = vsel %vm1379_vm4, %v1383_v31, %v1385_v40  ;;  %v1397_v40 = vrot.slane %v7007_v2, 3 }
  0x61   : > { %696 = vmatprep.mubr.f32.mxu0 %v10416_v19 }
  0x62   : > { %6092 = vmatmul.mubr.msk.f32.gmra.mxu1 %vm474_vm1, %v7109_v42 }
  0x63   : > { %965 = vmatprep.mubr.f32.mxu1 %v10416_v19 }
  0x64   : > { %6066 = vmatmul.mubr.msk.f32.gmra.mxu0 %vm474_vm1, %v450_v20  ;;  %v6167_v20 = vld [vmem:[%s10407_s1 + $0x100] sm:$0xff] }
  0x65   : > { %702 = vmatprep.mubr.f32.mxu0 %v10416_v19 }
  0x66   : > { %6093 = vmatmul.mubr.msk.f32.gmra.mxu1 %vm474_vm1, %v7131_v52 }
  0x67   : > { %971 = vmatprep.mubr.f32.mxu1 %v10416_v19 }
  0x68   : > { %6067 = vmatmul.mubr.msk.f32.gmra.mxu0 %vm474_vm1, %v453_v0  ;;  %v1011_v0 = vrot.slane %v6920_v36, 2 }
  0x69   : > { %708 = vmatprep.mubr.f32.mxu0 %v10416_v19 }
  0x6a   : > { %6094 = vmatmul.mubr.msk.f32.gmra.mxu1 %vm474_vm1, %v7134_v54  ;;  %v1012_v6 = vsel %vm1002_vm3, %v1010_v58, %v1011_v0 }
  0x6b   : > { %977 = vmatprep.mubr.f32.mxu1 %v10416_v19 }
  0x6c   : > { %6068 = vmatmul.mubr.msk.f32.gmra.mxu0 %vm474_vm1, %v455_v4  ;;  %v1390_v4 = vrot.slane %v6940_v43, 3 }
  0x6d   : > { %714 = vmatprep.mubr.f32.mxu0 %v10416_v19 }
  0x6e   : > { %6095 = vmatmul.mubr.msk.f32.gmra.mxu1 %vm474_vm1, %v7150_v63  ;;  %v1391_v12 = vsel %vm1379_vm4, %v1388_v53, %v1390_v4  ;;  %v1402_v53 = vrot.slane %v7030_v9, 3 }
  0x6f   : > { %983 = vmatprep.mubr.f32.mxu1 %v10416_v19 }
  0x70   : > { %6069 = vmatmul.mubr.msk.f32.gmra.mxu0 %vm474_vm1, %v457_v11  ;;  %v1013_v11 = vrot.slane %v6940_v43, 2  ;;  %v1403_v58 = vsel %vm1379_vm4, %v1401_v48, %v1402_v53 }
  0x71   : > { %720 = vmatprep.mubr.f32.mxu0 %v10416_v19 }
  0x72   : > { %6096 = vmatmul.mubr.msk.f32.gmra.mxu1 %vm474_vm1, %v7170_v7  ;;  %v1016_v31 = vsel %vm1002_vm3, %v1013_v11, %v1015_v18  ;;  %v1408_v18 = vrot.slane %v7061_v23, 3 }
  0x73   : > { %989 = vmatprep.mubr.f32.mxu1 %v10416_v19 }
  0x74   : > { %6070 = vmatmul.mubr.msk.f32.gmra.mxu0 %vm474_vm1, %v460_v17  ;;  %v1014_v17 = vsel %vm1002_vm3, %v1011_v0, %v1013_v11  ;;  %v1404_v0 = vrot.slane %v7041_v13, 3  ;;  %v1406_v11 = vrot.slane %v7051_v16, 3 }
  0x75   : > { %726 = vmatprep.mubr.f32.mxu0 %v10416_v19 }
  0x76   : > { %6097 = vmatmul.mubr.msk.f32.gmra.mxu1 %vm474_vm1, %v7173_v10 }
  0x77   : > { %995 = vmatprep.mubr.f32.mxu1 %v10416_v19 }
  0x78   : > { %6071 = vmatmul.mubr.msk.f32.gmra.mxu0 %vm474_vm1, %v462_v26  ;;  %v1393_v26 = vsel %vm1379_vm4, %v1390_v4, %v1392_v14  ;;  %v1027_v4 = vrot.slane %v7041_v13, 2  ;;  %v1029_v14 = vrot.slane %v7051_v16, 2 }
  0x79   : > { %732 = vmatprep.mubr.f32.mxu0 %v10416_v19 }
  0x7a   : > { %6098 = vmatmul.mubr.msk.f32.gmra.mxu1 %vm474_vm1, %v7184_v15 }
  0x7b   : > { %1563 = vmatprep.mubr.f32.mxu1 %v10416_v19 }
  0x7c   : > { %6072 = vmatmul.mubr.msk.f32.gmra.mxu0 %vm474_vm1, %v464_v30  ;;  %v1395_v30 = vrot.slane %v6991_v61, 3 }
  0x7d   : > { %1186 = vmatprep.mubr.f32.mxu0 %v10416_v19 }
  0x7e   : > { %6143 = vmatmul.mubr.msk.f32.vlgmr.msra.gmra.mxu1 %vm474_vm1, %v6996_v62  ;;  %v1008_v62 = vrot.slane %v6894_v28, 2 }
  0x7f   : > { %1569 = vmatprep.mubr.f32.mxu1 %v10416_v19 }
  0x80   : > { %6109 = vmatmul.mubr.msk.f32.vlgmr.msra.gmra.mxu0 %vm474_vm1, %v6983_v59  ;;  %v6169_v59 = vld [vmem:[%s10407_s1 + $0x110] sm:$0xff]  ;;  %v1009_v57 = vsel %vm1002_vm3, %v1006_v33, %v1008_v62  ;;  %v1017_v33 = vrot.slane %v6988_v60, 2  ;;  %v1399_v62 = vrot.slane %v7017_v5, 3 }
  0x81   : > { %6176 = vmatpush1.msk.msra.mxu0 %vm523_vm0, %v6173_v34  ;;  %1192 = vmatprep.mubr.f32.mxu0 %v10416_v19  ;;  %v1018_v34 = vrot.slane %v6991_v61, 2 }
  0x82   : > { %6144 = vmatmul.mubr.msk.f32.gmra.mxu1 %vm474_vm1, %v1384_v39  ;;  %1901 = vmatprep.subr.mxu0 %v6172_v41  ;;  %v1396_v39 = vsel %vm1379_vm4, %v1394_v27, %v1395_v30  ;;  %v1030_v27 = vsel %vm1002_vm3, %v1027_v4, %v1029_v14  ;;  %v1422_v14 = vrot.slane %v7131_v52, 3 }
  0x83   : > { %1575 = vmatprep.mubr.f32.mxu1 %v10416_v19  ;;  %1902 = vmatpush1.msra.mxu0 %v6171_v44  ;;  %v1019_v41 = vsel %vm1002_vm3, %v1017_v33, %v1018_v34  ;;  %v1020_v44 = vrot.slane %v7007_v2, 2 }
  0x84   : > { %6110 = vmatmul.mubr.msk.f32.gmra.mxu0 %vm474_vm1, %v1007_v56  ;;  %1903 = vmatprep.subr.mxu0 %v6170_v45  ;;  %v1398_v56 = vsel %vm1379_vm4, %v1395_v30, %v1397_v40  ;;  %v1031_v30 = vrot.slane %v7061_v23, 2 }
  0x85   : > { %1198 = vmatprep.mubr.f32.mxu0 %v10416_v19  ;;  %1904 = vmatpush1.msra.mxu0 %v6169_v59  ;;  %v1021_v45 = vsel %vm1002_vm3, %v1018_v34, %v1020_v44  ;;  %v1022_v59 = vrot.slane %v7017_v5, 2  ;;  %v1411_v34 = vrot.slane %v7075_v29, 3 }
  0x86   : > { %6145 = vmatmul.mubr.msk.f32.gmra.mxu1 %vm474_vm1, %v1386_v47  ;;  %1905 = vmatprep.subr.mxu0 %v6168_v49  ;;  %v1400_v47 = vsel %vm1379_vm4, %v1397_v40, %v1399_v62  ;;  %v1034_v40 = vrot.slane %v7075_v29, 2  ;;  %v1036_v62 = vrot.slane %v7085_v32, 2 }
  0x87   : > { %1581 = vmatprep.mubr.f32.mxu1 %v10416_v19  ;;  %1906 = vmatpush1.msra.mxu0 %v6167_v20  ;;  %v1023_v49 = vsel %vm1002_vm3, %v1020_v44, %v1022_v59  ;;  %v1024_v20 = vrot.slane %v7027_v8, 2  ;;  %v1413_v44 = vrot.slane %v7085_v32, 3  ;;  %v1415_v59 = vrot.slane %v7095_v37, 3 }
  0x88   : > { %6111 = vmatmul.mubr.msk.f32.gmra.mxu0 %vm474_vm1, %v1009_v57  ;;  %v1025_v57 = vrot.slane %v7030_v9, 2  ;;  %v1037_v48 = vsel %vm1002_vm3, %v1034_v40, %v1036_v62  ;;  %v1429_v62 = vrot.slane %v7170_v7, 3 }
  0x89   : > { %1204 = vmatprep.mubr.f32.mxu0 %v10416_v19 }
  0x8a   : > { %6146 = vmatmul.mubr.msk.f32.gmra.mxu1 %vm474_vm1, %v1389_v1  ;;  %v1026_v1 = vsel %vm1002_vm3, %v1024_v20, %v1025_v57 }
  0x8b   : > { %1587 = vmatprep.mubr.f32.mxu1 %v10416_v19 }
  0x8c   : > { %6112 = vmatmul.mubr.msk.f32.gmra.mxu0 %vm474_vm1, %v1012_v6  ;;  %v1405_v6 = vsel %vm1379_vm4, %v1402_v53, %v1404_v0  ;;  %v1038_v53 = vrot.slane %v7095_v37, 2 }
  0x8d   : > { %1210 = vmatprep.mubr.f32.mxu0 %v10416_v19 }
  0x8e   : > { %6147 = vmatmul.mubr.msk.f32.gmra.mxu1 %vm474_vm1, %v1391_v12  ;;  %v1028_v12 = vsel %vm1002_vm3, %v1025_v57, %v1027_v4  ;;  %v1418_v57 = vrot.slane %v7109_v42, 3  ;;  %v1420_v4 = vrot.slane %v7119_v46, 3 }
  0x8f   : > { %1593 = vmatprep.mubr.f32.mxu1 %v10416_v19 }
  0x90   : > { %6113 = vmatmul.mubr.msk.f32.gmra.mxu0 %vm474_vm1, %v1014_v17  ;;  %v1407_v17 = vsel %vm1379_vm4, %v1404_v0, %v1406_v11  ;;  %v1041_v0 = vrot.slane %v7109_v42, 2  ;;  %v1043_v11 = vrot.slane %v7119_v46, 2 }
  0x91   : > { %1216 = vmatprep.mubr.f32.mxu0 %v10416_v19 }
  0x92   : > { %6148 = vmatmul.mubr.msk.f32.gmra.mxu1 %vm474_vm1, %v1393_v26  ;;  %v1409_v26 = vrot.slane %v7064_v24, 3 }
  0x93   : > { %1599 = vmatprep.mubr.f32.mxu1 %v10416_v19 }
  0x94   : > { %6114 = vmatmul.mubr.msk.f32.gmra.mxu0 %vm474_vm1, %v1016_v31  ;;  %v1032_v31 = vrot.slane %v7064_v24, 2  ;;  %v1410_v33 = vsel %vm1379_vm4, %v1408_v18, %v1409_v26  ;;  %v1044_v18 = vsel %vm1002_vm3, %v1041_v0, %v1043_v11 }
  0x95   : > { %1222 = vmatprep.mubr.f32.mxu0 %v10416_v19 }
  0x96   : > { %6149 = vmatmul.mubr.msk.f32.gmra.mxu1 %vm474_vm1, %v1396_v39  ;;  %v1033_v39 = vsel %vm1002_vm3, %v1031_v30, %v1032_v31 }
  0x97   : > { %1605 = vmatprep.mubr.f32.mxu1 %v10416_v19 }
  0x98   : > { %6115 = vmatmul.mubr.msk.f32.gmra.mxu0 %vm474_vm1, %v1019_v41  ;;  %v1412_v41 = vsel %vm1379_vm4, %v1409_v26, %v1411_v34  ;;  %v1045_v26 = vrot.slane %v7131_v52, 2 }
  0x99   : > { %1228 = vmatprep.mubr.f32.mxu0 %v10416_v19 }
  0x9a   : > { %6150 = vmatmul.mubr.msk.f32.gmra.mxu1 %vm474_vm1, %v1398_v56  ;;  %v1035_v56 = vsel %vm1002_vm3, %v1032_v31, %v1034_v40  ;;  %v1425_v31 = vrot.slane %v7150_v63, 3  ;;  %v1427_v40 = vrot.slane %v7160_v3, 3 }
  0x9b   : > { %1611 = vmatprep.mubr.f32.mxu1 %v10416_v19 }
  0x9c   : > { %6116 = vmatmul.mubr.msk.f32.gmra.mxu0 %vm474_vm1, %v1021_v45  ;;  %v1414_v45 = vsel %vm1379_vm4, %v1411_v34, %v1413_v44  ;;  %v1048_v34 = vrot.slane %v7150_v63, 2  ;;  %v1050_v44 = vrot.slane %v7160_v3, 2 }
  0x9d   : > { %1234 = vmatprep.mubr.f32.mxu0 %v10416_v19 }
  0x9e   : > { %6151 = vmatmul.mubr.msk.f32.gmra.mxu1 %vm474_vm1, %v1400_v47  ;;  %v1416_v47 = vrot.slane %v7098_v38, 3 }
  0x9f   : > { %1617 = vmatprep.mubr.f32.mxu1 %v10416_v19 }
  0xa0   : > { %6117 = vmatmul.mubr.msk.f32.gmra.mxu0 %vm474_vm1, %v1023_v49  ;;  %v1039_v49 = vrot.slane %v7098_v38, 2  ;;  %v1417_v20 = vsel %vm1379_vm4, %v1415_v59, %v1416_v47  ;;  %v1051_v59 = vsel %vm1002_vm3, %v1048_v34, %v1050_v44 }
  0xa1   : > { %1240 = vmatprep.mubr.f32.mxu0 %v10416_v19 }
  0xa2   : > { %6152 = vmatmul.mubr.msk.f32.gmra.mxu1 %vm474_vm1, %v1403_v58  ;;  %v1040_v58 = vsel %vm1002_vm3, %v1038_v53, %v1039_v49 }
  0xa3   : > { %1623 = vmatprep.mubr.f32.mxu1 %v10416_v19 }
  0xa4   : > { %6118 = vmatmul.mubr.msk.f32.gmra.mxu0 %vm474_vm1, %v1026_v1  ;;  %v1419_v1 = vsel %vm1379_vm4, %v1416_v47, %v1418_v57  ;;  %v1052_v47 = vrot.slane %v7170_v7, 2 }
  0xa5   : > { %1246 = vmatprep.mubr.f32.mxu0 %v10416_v19 }
  0xa6   : > { %6153 = vmatmul.mubr.msk.f32.gmra.mxu1 %vm474_vm1, %v1405_v6  ;;  %v1042_v6 = vsel %vm1002_vm3, %v1039_v49, %v1041_v0  ;;  %v1432_v49 = vrot.slane %v7184_v15, 3  ;;  %v1434_v0 = vrot.slane %v7194_v25, 3 }
  0xa7   : > { %1629 = vmatprep.mubr.f32.mxu1 %v10416_v19 }
  0xa8   : > { %6119 = vmatmul.mubr.msk.f32.gmra.mxu0 %vm474_vm1, %v1028_v12  ;;  %v1421_v12 = vsel %vm1379_vm4, %v1418_v57, %v1420_v4  ;;  %v1055_v57 = vrot.slane %v7184_v15, 2  ;;  %v1057_v4 = vrot.slane %v7194_v25, 2 }
  0xa9   : > { %1252 = vmatprep.mubr.f32.mxu0 %v10416_v19 }
  0xaa   : > { %6154 = vmatmul.mubr.msk.f32.gmra.mxu1 %vm474_vm1, %v1407_v17  ;;  %v1423_v17 = vrot.slane %v7134_v54, 3  ;;  %v1058_v11 = vsel %vm1002_vm3, %v1055_v57, %v1057_v4  ;;  %v1770_v4 = vrot.slane %v6988_v60, 4 }
  0xab   : > { %1635 = vmatprep.mubr.f32.mxu1 %v10416_v19 }
  0xac   : > { %6120 = vmatmul.mubr.msk.f32.gmra.mxu0 %vm474_vm1, %v1030_v27  ;;  %v1046_v27 = vrot.slane %v7134_v54, 2  ;;  %v1424_v30 = vsel %vm1379_vm4, %v1422_v14, %v1423_v17 }
  0xad   : > { %1258 = vmatprep.mubr.f32.mxu0 %v10416_v19 }
  0xae   : > { %6155 = vmatmul.mubr.msk.f32.gmra.mxu1 %vm474_vm1, %v1410_v33  ;;  %v1047_v33 = vsel %vm1002_vm3, %v1045_v26, %v1046_v27 }
  0xaf   : > { %1641 = vmatprep.mubr.f32.mxu1 %v10416_v19 }
  0xb0   : > { %6121 = vmatmul.mubr.msk.f32.gmra.mxu0 %vm474_vm1, %v1033_v39  ;;  %v1426_v39 = vsel %vm1379_vm4, %v1423_v17, %v1425_v31 }
  0xb1   : > { %1264 = vmatprep.mubr.f32.mxu0 %v10416_v19 }
  0xb2   : > { %6156 = vmatmul.mubr.msk.f32.gmra.mxu1 %vm474_vm1, %v1412_v41  ;;  %v1049_v41 = vsel %vm1002_vm3, %v1046_v27, %v1048_v34 }
  0xb3   : > { %1647 = vmatprep.mubr.f32.mxu1 %v10416_v19 }
  0xb4   : > { %6122 = vmatmul.mubr.msk.f32.gmra.mxu0 %vm474_vm1, %v1035_v56  ;;  %v1428_v56 = vsel %vm1379_vm4, %v1425_v31, %v1427_v40 }
  0xb5   : > { %1270 = vmatprep.mubr.f32.mxu0 %v10416_v19 }
  0xb6   : > { %6157 = vmatmul.mubr.msk.f32.gmra.mxu1 %vm474_vm1, %v1414_v45  ;;  %v1430_v45 = vrot.slane %v7173_v10, 3 }
  0xb7   : > { %1653 = vmatprep.mubr.f32.mxu1 %v10416_v19 }
  0xb8   : > { %6123 = vmatmul.mubr.msk.f32.gmra.mxu0 %vm474_vm1, %v1037_v48  ;;  %v1053_v48 = vrot.slane %v7173_v10, 2  ;;  %v1431_v53 = vsel %vm1379_vm4, %v1429_v62, %v1430_v45 }
  0xb9   : > { %1276 = vmatprep.mubr.f32.mxu0 %v10416_v19 }
  0xba   : > { %6158 = vmatmul.mubr.msk.f32.gmra.mxu1 %vm474_vm1, %v1417_v20  ;;  %v1054_v20 = vsel %vm1002_vm3, %v1052_v47, %v1053_v48 }
  0xbb   : > { %1659 = vmatprep.mubr.f32.mxu1 %v10416_v19 }
  0xbc   : > { %6124 = vmatmul.mubr.msk.f32.gmra.mxu0 %vm474_vm1, %v1040_v58  ;;  %v1433_v58 = vsel %vm1379_vm4, %v1430_v45, %v1432_v49  ;;  %v1766_v45 = vrot.slane %v6940_v43, 4 }
  0xbd   : > { %1282 = vmatprep.mubr.f32.mxu0 %v10416_v19 }
  0xbe   : > { %6159 = vmatmul.mubr.msk.f32.gmra.mxu1 %vm474_vm1, %v1419_v1  ;;  %v1056_v1 = vsel %vm1002_vm3, %v1053_v48, %v1055_v57  ;;  %vm5667_vm3 = vcmask 654336  }
  0xbf   : > { %1665 = vmatprep.mubr.f32.mxu1 %v10416_v19 }
  0xc0   : > { %6125 = vmatmul.mubr.msk.f32.gmra.mxu0 %vm474_vm1, %v1042_v6  ;;  %v1435_v6 = vsel %vm1379_vm4, %v1432_v49, %v1434_v0  ;;  %v1768_v49 = vrot.slane %v6962_v50, 4  ;;  %vm5882_vm4 = vcmask 1041408  }
  0xc1   : > { %1288 = vmatprep.mubr.f32.mxu0 %v10416_v19 }
  0xc2   : > { %6160 = vmatmul.mubr.msk.f32.gmra.mxu1 %vm474_vm1, %v1421_v12  ;;  %v1759_v12 = vrot.slane %v6878_v22, 4 }
  0xc3   : > { %1671 = vmatprep.mubr.f32.mxu1 %v10416_v19 }
  0xc4   : > { %6126 = vmatmul.mubr.msk.f32.gmra.mxu0 %vm474_vm1, %v1044_v18  ;;  %v1760_v27 = vsel %vm523_vm0, %v1757_v51, %v1759_v12  ;;  %v1764_v51 = vrot.slane %v6920_v36, 4 }
  0xc5   : > { %1294 = vmatprep.mubr.f32.mxu0 %v10416_v19 }
  0xc6   : > { %6161 = vmatmul.mubr.msk.f32.gmra.mxu1 %vm474_vm1, %v1424_v30  ;;  %v1761_v30 = vrot.slane %v6894_v28, 4  ;;  %v1765_v62 = vsel %vm523_vm0, %v1763_v21, %v1764_v51 }
  0xc7   : > { %1677 = vmatprep.mubr.f32.mxu1 %v10416_v19 }
  0xc8   : > { %6127 = vmatmul.mubr.msk.f32.gmra.mxu0 %vm474_vm1, %v1047_v33 }
  0xc9   : > { %1300 = vmatprep.mubr.f32.mxu0 %v10416_v19 }
  0xca   : > { %6162 = vmatmul.mubr.msk.f32.gmra.mxu1 %vm474_vm1, %v1426_v39  ;;  %v1762_v39 = vsel %vm523_vm0, %v1759_v12, %v1761_v30  ;;  %v1773_v30 = vrot.slane %v7007_v2, 4 }
  0xcb   : > { %1683 = vmatprep.mubr.f32.mxu1 %v10416_v19 }
  0xcc   : > { %6128 = vmatmul.mubr.msk.f32.gmra.mxu0 %vm474_vm1, %v1049_v41 }
  0xcd   : > { %1306 = vmatprep.mubr.f32.mxu0 %v10416_v19 }
  0xce   : > { %6163 = vmatmul.mubr.msk.f32.gmra.mxu1 %vm474_vm1, %v1428_v56 }
  0xcf   : > { %1689 = vmatprep.mubr.f32.mxu1 %v10416_v19 }
  0xd0   : > { %6129 = vmatmul.mubr.msk.f32.gmra.mxu0 %vm474_vm1, %v1051_v59 }
  0xd1   : > { %1312 = vmatprep.mubr.f32.mxu0 %v10416_v19 }
  0xd2   : > { %6164 = vmatmul.mubr.msk.f32.gmra.mxu1 %vm474_vm1, %v1431_v53  ;;  %v1767_v53 = vsel %vm523_vm0, %v1764_v51, %v1766_v45  ;;  %v1775_v51 = vrot.slane %v7017_v5, 4 }
  0xd3   : > { %1695 = vmatprep.mubr.f32.mxu1 %v10416_v19 }
  0xd4   : > { %6130 = vmatmul.mubr.msk.f32.gmra.mxu0 %vm474_vm1, %v1054_v20 }
  0xd5   : > { %1318 = vmatprep.mubr.f32.mxu0 %v10416_v19 }
  0xd6   : > { %6165 = vmatmul.mubr.msk.f32.gmra.mxu1 %vm474_vm1, %v1433_v58 }
  0xd7   : > { %1701 = vmatprep.mubr.f32.mxu1 %v10416_v19 }
  0xd8   : > { %6131 = vmatmul.mubr.msk.f32.gmra.mxu0 %vm474_vm1, %v1056_v1  ;;  %v1769_v1 = vsel %vm523_vm0, %v1766_v45, %v1768_v49 }
  0xd9   : > { %1324 = vmatprep.mubr.f32.mxu0 %v10416_v19 }
  0xda   : > { %6166 = vmatmul.mubr.msk.f32.gmra.mxu1 %vm474_vm1, %v1435_v6  ;;  %v1771_v6 = vrot.slane %v6991_v61, 4 }
  0xdb   : > { %3942 = vmatprep.mubr.f32.mxu1 %v10416_v19 }
  0xdc   : > { %6132 = vmatmul.mubr.msk.f32.gmra.mxu0 %vm474_vm1, %v1058_v11  ;;  %v1774_v21 = vsel %vm523_vm0, %v1771_v6, %v1773_v30 }
  0xdd   : > { %1939 = vmatprep.mubr.f32.mxu0 %v10416_v19 }
  0xde   : > { %v859_v14 = vpop.f32.mrf.mxu1 }
  0xe0   : > { %v596_v17 = vpop.f32.mrf.mxu0  ;;  %6177 = vmatmul.mubr.msk.f32.vlgmr.msra.gmra.mxu0 %vm474_vm1, %v7140_v55  ;;  %v7445_v18 = vpop.f32.mrf.mxu1 }
  0xe1   : > { %10501 = vst [vmem:[#allocation5_spill] sm:$0xff] %v7445_v18  ;;  %v7447_v26 = vadd.f32 %v859_v14, %v596_v17  ;;  %1945 = vmatprep.mubr.f32.mxu0 %v10416_v19 }
  0xe2   : > { %v7454_v31 = vpop.f32.mrf.mxu0  ;;  %v865_v22 = vpop.f32.mrf.mxu1 }
  0xe3   : > { %10502 = vst [vmem:[#allocation6_spill] sm:$0xff] %v7454_v31 }
  0xe4   : > { %v602_v33 = vpop.f32.mrf.mxu0  ;;  %6178 = vmatmul.mubr.msk.f32.gmra.mxu0 %vm474_vm1, %v1760_v27  ;;  %v7457_v34 = vpop.f32.mrf.mxu1  ;;  %v1772_v27 = vsel %vm523_vm0, %v1770_v4, %v1771_v6  ;;  %v1780_v6 = vrot.slane %v7041_v13, 4 }
  0xe5   : > { %10503 = vst [vmem:[#allocation7_spill] sm:$0xff] %v7457_v34  ;;  %v7459_v55 = vadd.f32 %v865_v22, %v602_v33  ;;  %1951 = vmatprep.mubr.f32.mxu0 %v10416_v19 }
  0xe6   : > { %v7465_v40 = vpop.f32.mrf.mxu0  ;;  %v871_v28 = vpop.f32.mrf.mxu1 }
  0xe7   : > { %10504 = vst [vmem:[#allocation8_spill] sm:$0xff] %v7465_v40 }
  0xe8   : > { %v608_v41 = vpop.f32.mrf.mxu0  ;;  %6179 = vmatmul.mubr.msk.f32.gmra.mxu0 %vm474_vm1, %v1762_v39  ;;  %v7468_v44 = vpop.f32.mrf.mxu1 }
  0xe9   : > { %v7470_v56 = vadd.f32 %v871_v28, %v608_v41  ;;  %1957 = vmatprep.mubr.f32.mxu0 %v10416_v19 }
  0xea   : > { %v7475_v59 = vpop.f32.mrf.mxu0  ;;  %v877_v35 = vpop.f32.mrf.mxu1 }
  0xec   : > { %v614_v36 = vpop.f32.mrf.mxu0  ;;  %6180 = vmatmul.mubr.msk.f32.gmra.mxu0 %vm474_vm1, %v1765_v62  ;;  %v7478_v47 = vpop.f32.mrf.mxu1 }
  0xed   : > { %v7480_v48 = vadd.f32 %v877_v35, %v614_v36  ;;  %1963 = vmatprep.mubr.f32.mxu0 %v10416_v19  ;;  %v1776_v35 = vsel %vm523_vm0, %v1773_v30, %v1775_v51  ;;  %v1777_v36 = vrot.slane %v7027_v8, 4 }
  0xee   : > { %v7485_v20 = vpop.f32.mrf.mxu0  ;;  %v883_v57 = vpop.f32.mrf.mxu1 }
  0xf0   : > { %v620_v43 = vpop.f32.mrf.mxu0  ;;  %6181 = vmatmul.mubr.msk.f32.gmra.mxu0 %vm474_vm1, %v1767_v53  ;;  %v7488_v58 = vpop.f32.mrf.mxu1  ;;  %v1778_v53 = vrot.slane %v7030_v9, 4 }
  0xf1   : > { %v7490_v0 = vadd.f32 %v883_v57, %v620_v43  ;;  %1969 = vmatprep.mubr.f32.mxu0 %v10416_v19 }
  0xf2   : > { %v7496_v11 = vpop.f32.mrf.mxu0  ;;  %v889_v50 = vpop.f32.mrf.mxu1  ;;  %v1779_v4 = vsel %vm523_vm0, %v1777_v36, %v1778_v53  ;;  %v1781_v30 = vsel %vm523_vm0, %v1778_v53, %v1780_v6  ;;  %v1785_v36 = vrot.slane %v7064_v24, 4 }
  0xf4   : > { %v626_v12 = vpop.f32.mrf.mxu0  ;;  %6182 = vmatmul.mubr.msk.f32.gmra.mxu0 %vm474_vm1, %v1769_v1  ;;  %v7499_v14 = vpop.f32.mrf.mxu1 }
  0xf5   : > { %v7501_v17 = vadd.f32 %v889_v50, %v626_v12  ;;  %1975 = vmatprep.mubr.f32.mxu0 %v10416_v19 }
  0xf6   : > { %v7506_v22 = vpop.f32.mrf.mxu0  ;;  %v895_v60 = vpop.f32.mrf.mxu1 }
  0xf8   : > { %v632_v61 = vpop.f32.mrf.mxu0  ;;  %6183 = vmatmul.mubr.msk.f32.gmra.mxu0 %vm474_vm1, %v1772_v27  ;;  %v7509_v33 = vpop.f32.mrf.mxu1 }
  0xf9   : > { %v7511_v39 = vadd.f32 %v895_v60, %v632_v61  ;;  %1981 = vmatprep.mubr.f32.mxu0 %v10416_v19  ;;  %v1782_v60 = vrot.slane %v7051_v16, 4 }
  0xfa   : > { %v7516_v28 = vpop.f32.mrf.mxu0  ;;  %v901_v41 = vpop.f32.mrf.mxu1 }
  0xfc   : > { %v638_v2 = vpop.f32.mrf.mxu0  ;;  %6184 = vmatmul.mubr.msk.f32.gmra.mxu0 %vm474_vm1, %v1774_v21  ;;  %v7519_v62 = vpop.f32.mrf.mxu1 }
  0xfd   : > { %v7521_v45 = vadd.f32 %v901_v41, %v638_v2  ;;  %1987 = vmatprep.mubr.f32.mxu0 %v10416_v19  ;;  %v1783_v2 = vsel %vm523_vm0, %v1780_v6, %v1782_v60  ;;  %v1787_v6 = vrot.slane %v7075_v29, 4 }
  0xfe   : > { %v7527_v49 = vpop.f32.mrf.mxu0  ;;  %v907_v5 = vpop.f32.mrf.mxu1 }
 0x100   : > { %v644_v57 = vpop.f32.mrf.mxu0  ;;  %6185 = vmatmul.mubr.msk.f32.gmra.mxu0 %vm474_vm1, %v1776_v35  ;;  %v7530_v43 = vpop.f32.mrf.mxu1  ;;  %v1784_v35 = vrot.slane %v7061_v23, 4 }
 0x101   : > { %v7532_v1 = vadd.f32 %v907_v5, %v644_v57  ;;  %1993 = vmatprep.mubr.f32.mxu0 %v10416_v19 }
 0x102   : > { %v7537_v50 = vpop.f32.mrf.mxu0  ;;  %v913_v8 = vpop.f32.mrf.mxu1 }
 0x104   : > { %v650_v9 = vpop.f32.mrf.mxu0  ;;  %6186 = vmatmul.mubr.msk.f32.gmra.mxu0 %vm474_vm1, %v1779_v4  ;;  %v7540_v12 = vpop.f32.mrf.mxu1 }
 0x105   : > { %v7542_v27 = vadd.f32 %v913_v8, %v650_v9  ;;  %1999 = vmatprep.mubr.f32.mxu0 %v10416_v19  ;;  %v1786_v8 = vsel %vm523_vm0, %v1784_v35, %v1785_v36 }
 0x106   : > { %v7547_v61 = vpop.f32.mrf.mxu0  ;;  %v919_v21 = vpop.f32.mrf.mxu1 }
 0x108   : > { %v656_v13 = vpop.f32.mrf.mxu0  ;;  %6187 = vmatmul.mubr.msk.f32.gmra.mxu0 %vm474_vm1, %v1781_v30  ;;  %v7550_v51 = vpop.f32.mrf.mxu1 }
 0x109   : > { %v7552_v41 = vadd.f32 %v919_v21, %v656_v13  ;;  %2005 = vmatprep.mubr.f32.mxu0 %v10416_v19  ;;  %v1788_v21 = vsel %vm523_vm0, %v1785_v36, %v1787_v6  ;;  %v1789_v13 = vrot.slane %v7085_v32, 4  ;;  %v1792_v36 = vrot.slane %v7098_v38, 4 }
 0x10a   : > { %v7558_v53 = vpop.f32.mrf.mxu0  ;;  %v925_v16 = vpop.f32.mrf.mxu1 }
 0x10c   : > { %v662_v5 = vpop.f32.mrf.mxu0  ;;  %6188 = vmatmul.mubr.msk.f32.gmra.mxu0 %vm474_vm1, %v1783_v2  ;;  %v7561_v57 = vpop.f32.mrf.mxu1 }
 0x10d   : > { %v7563_v4 = vadd.f32 %v925_v16, %v662_v5  ;;  %2011 = vmatprep.mubr.f32.mxu0 %v10416_v19 }
 0x10e   : > { %v7568_v9 = vpop.f32.mrf.mxu0  ;;  %v931_v23 = vpop.f32.mrf.mxu1 }
 0x110   : > { %v668_v24 = vpop.f32.mrf.mxu0  ;;  %6189 = vmatmul.mubr.msk.f32.gmra.mxu0 %vm474_vm1, %v1786_v8  ;;  %v7571_v30 = vpop.f32.mrf.mxu1  ;;  %v1790_v8 = vsel %vm523_vm0, %v1787_v6, %v1789_v13  ;;  %v1794_v6 = vrot.slane %v7109_v42, 4 }
 0x111   : > { %v7573_v60 = vadd.f32 %v931_v23, %v668_v24  ;;  %2017 = vmatprep.mubr.f32.mxu0 %v10416_v19  ;;  %v1791_v23 = vrot.slane %v7095_v37, 4 }
 0x112   : > { %v7578_v2 = vpop.f32.mrf.mxu0  ;;  %v937_v35 = vpop.f32.mrf.mxu1 }
 0x114   : > { %v674_v29 = vpop.f32.mrf.mxu0  ;;  %6190 = vmatmul.mubr.msk.f32.gmra.mxu0 %vm474_vm1, %v1788_v21  ;;  %v7581_v16 = vpop.f32.mrf.mxu1 }
 0x115   : > { %v7583_v5 = vadd.f32 %v937_v35, %v674_v29  ;;  %2023 = vmatprep.mubr.f32.mxu0 %v10416_v19  ;;  %v1793_v35 = vsel %vm523_vm0, %v1791_v23, %v1792_v36 }
 0x116   : > { %v7589_v24 = vpop.f32.mrf.mxu0  ;;  %v943_v32 = vpop.f32.mrf.mxu1 }
 0x118   : > { %v680_v34 = vpop.f32.mrf.mxu0  ;;  %6191 = vmatmul.mubr.msk.f32.gmra.mxu0 %vm474_vm1, %v1790_v8  ;;  %v7592_v40 = vpop.f32.mrf.mxu1  ;;  %v1796_v8 = vrot.slane %v7119_v46, 4 }
 0x119   : > { %v7594_v21 = vadd.f32 %v943_v32, %v680_v34  ;;  %2029 = vmatprep.mubr.f32.mxu0 %v10416_v19  ;;  %v1795_v34 = vsel %vm523_vm0, %v1792_v36, %v1794_v6  ;;  %v1799_v36 = vrot.slane %v7134_v54, 4 }
 0x11a   : > { %v7599_v13 = vpop.f32.mrf.mxu0  ;;  %v949_v37 = vpop.f32.mrf.mxu1 }
 0x11b   : > { %10505 = vst [vmem:[#allocation9_spill] sm:$0xff] %v7594_v21 }
 0x11c   : > { %v686_v38 = vpop.f32.mrf.mxu0  ;;  %6192 = vmatmul.mubr.msk.f32.gmra.mxu0 %vm474_vm1, %v1793_v35  ;;  %v7602_v29 = vpop.f32.mrf.mxu1  ;;  %v1797_v35 = vsel %vm523_vm0, %v1794_v6, %v1796_v8  ;;  %v1801_v6 = vrot.slane %v7150_v63, 4 }
 0x11d   : > { %10506 = vst [vmem:[#allocation10_spill] sm:$0xff] %v7602_v29  ;;  %v7604_v18 = vadd.f32 %v949_v37, %v686_v38  ;;  %2035 = vmatprep.mubr.f32.mxu0 %v10416_v19  ;;  %v1798_v37 = vrot.slane %v7131_v52, 4 }
 0x11e   : > { %v7609_v32 = vpop.f32.mrf.mxu0  ;;  %v955_v23 = vpop.f32.mrf.mxu1 }
 0x11f   : > { %10507 = vst [vmem:[#allocation11_spill] sm:$0xff] %v7604_v18 }
 0x120   : > { %v692_v42 = vpop.f32.mrf.mxu0  ;;  %6193 = vmatmul.mubr.msk.f32.gmra.mxu0 %vm474_vm1, %v1795_v34  ;;  %v7612_v31 = vpop.f32.mrf.mxu1 }
 0x121   : > { %10508 = vst [vmem:[#allocation12_spill] sm:$0xff] %v7612_v31  ;;  %v7614_v21 = vadd.f32 %v955_v23, %v692_v42  ;;  %2041 = vmatprep.mubr.f32.mxu0 %v10416_v19  ;;  %v1800_v23 = vsel %vm523_vm0, %v1798_v37, %v1799_v36 }
 0x122   : > { %v7620_v38 = vpop.f32.mrf.mxu0  ;;  %v961_v46 = vpop.f32.mrf.mxu1 }
 0x123   : > { %10509 = vst [vmem:[#allocation13_spill] sm:$0xff] %v7620_v38 }
 0x124   : > { %v698_v18 = vpop.f32.mrf.mxu0  ;;  %6194 = vmatmul.mubr.msk.f32.gmra.mxu0 %vm474_vm1, %v1797_v35  ;;  %v7623_v29 = vpop.f32.mrf.mxu1  ;;  %v1803_v35 = vrot.slane %v7160_v3, 4 }
 0x125   : > { %10510 = vst [vmem:[#allocation14_spill] sm:$0xff] %v7623_v29  ;;  %v7625_v34 = vadd.f32 %v961_v46, %v698_v18  ;;  %2047 = vmatprep.mubr.f32.mxu0 %v10416_v19  ;;  %v1802_v18 = vsel %vm523_vm0, %v1799_v36, %v1801_v6  ;;  %v1806_v36 = vrot.slane %v7173_v10, 4 }
 0x126   : > { %v7630_v8 = vpop.f32.mrf.mxu0  ;;  %v967_v52 = vpop.f32.mrf.mxu1 }
 0x127   : > { %10511 = vst [vmem:[#allocation15_spill] sm:$0xff] %v7630_v8 }
 0x128   : > { %v704_v54 = vpop.f32.mrf.mxu0  ;;  %6195 = vmatmul.mubr.msk.f32.gmra.mxu0 %vm474_vm1, %v1800_v23  ;;  %v7633_v42 = vpop.f32.mrf.mxu1  ;;  %v1804_v23 = vsel %vm523_vm0, %v1801_v6, %v1803_v35  ;;  %v1808_v6 = vrot.slane %v7184_v15, 4 }
 0x129   : > { %10512 = vst [vmem:[#allocation16_spill] sm:$0xff] %v7633_v42  ;;  %v7635_v31 = vadd.f32 %v967_v52, %v704_v54  ;;  %2053 = vmatprep.mubr.f32.mxu0 %v10416_v19  ;;  %v1805_v52 = vrot.slane %v7170_v7, 4 }
 0x12a   : > { %v7640_v46 = vpop.f32.mrf.mxu0  ;;  %v973_v37 = vpop.f32.mrf.mxu1 }
 0x12b   : > { %10513 = vst [vmem:[#allocation17_spill] sm:$0xff] %v7640_v46 }
 0x12c   : > { %v710_v63 = vpop.f32.mrf.mxu0  ;;  %6196 = vmatmul.mubr.msk.f32.gmra.mxu0 %vm474_vm1, %v1802_v18  ;;  %v7643_v29 = vpop.f32.mrf.mxu1 }
 0x12d   : > { %10514 = vst [vmem:[#allocation18_spill] sm:$0xff] %v7643_v29  ;;  %v7645_v8 = vadd.f32 %v973_v37, %v710_v63  ;;  %2059 = vmatprep.mubr.f32.mxu0 %v10416_v19  ;;  %v1807_v37 = vsel %vm523_vm0, %v1805_v52, %v1806_v36 }
 0x12e   : > { %v7651_v54 = vpop.f32.mrf.mxu0  ;;  %v979_v3 = vpop.f32.mrf.mxu1 }
 0x12f   : > { %10515 = vst [vmem:[#allocation19_spill] sm:$0xff] %v7651_v54 }
 0x130   : > { %v716_v42 = vpop.f32.mrf.mxu0  ;;  %6197 = vmatmul.mubr.msk.f32.gmra.mxu0 %vm474_vm1, %v1804_v23  ;;  %v7654_v46 = vpop.f32.mrf.mxu1  ;;  %v1810_v23 = vrot.slane %v7194_v25, 4 }
 0x131   : > { %10516 = vst [vmem:[#allocation20_spill] sm:$0xff] %v7654_v46  ;;  %v7656_v18 = vadd.f32 %v979_v3, %v716_v42  ;;  %2065 = vmatprep.mubr.f32.mxu0 %v10416_v19  ;;  %v1809_v42 = vsel %vm523_vm0, %v1806_v36, %v1808_v6 }
 0x132   : > { %v7661_v35 = vpop.f32.mrf.mxu0  ;;  %v985_v7 = vpop.f32.mrf.mxu1 }
 0x133   : > { %10517 = vst [vmem:[#allocation21_spill] sm:$0xff] %v7661_v35 }
 0x134   : > { %v722_v10 = vpop.f32.mrf.mxu0  ;;  %6198 = vmatmul.mubr.msk.f32.gmra.mxu0 %vm474_vm1, %v1807_v37  ;;  %v7664_v63 = vpop.f32.mrf.mxu1  ;;  %v1811_v37 = vsel %vm523_vm0, %v1808_v6, %v1810_v23  ;;  %vm5669_vm0 = vcmask 261120  }
 0x135   : > { %10518 = vst [vmem:[#allocation22_spill] sm:$0xff] %v7664_v63  ;;  %v7666_v29 = vadd.f32 %v985_v7, %v722_v10  ;;  %2071 = vmatprep.mubr.f32.mxu0 %v10416_v19 }
 0x136   : > { %v7671_v3 = vpop.f32.mrf.mxu0  ;;  %v991_v52 = vpop.f32.mrf.mxu1 }
 0x137   : > { %10519 = vst [vmem:[#allocation23_spill] sm:$0xff] %v7671_v3 }
 0x138   : > { %v728_v15 = vpop.f32.mrf.mxu0  ;;  %6199 = vmatmul.mubr.msk.f32.gmra.mxu0 %vm474_vm1, %v1809_v42  ;;  %v7674_v46 = vpop.f32.mrf.mxu1 }
 0x139   : > { %10520 = vst [vmem:[#allocation24_spill] sm:$0xff] %v7674_v46  ;;  %v7676_v35 = vadd.f32 %v991_v52, %v728_v15  ;;  %2077 = vmatprep.mubr.f32.mxu0 %v10416_v19 }
 0x13a   : > { %v7680_v7 = vpop.f32.mrf.mxu0  ;;  %v997_v10 = vpop.f32.mrf.mxu1 }
 0x13b   : > { %10521 = vst [vmem:[#allocation25_spill] sm:$0xff] %v7680_v7 }
 0x13c   : > { %v734_v36 = vpop.f32.mrf.mxu0  ;;  %6200 = vmatmul.mubr.msk.f32.gmra.mxu0 %vm474_vm1, %v1811_v37  ;;  %v7688_v42 = vpop.f32.mrf.mxu1  ;;  %vm5720_vm1 = vcmask 523264  }
 0x13d   : > { %v7683_v25 = vadd.f32 %v997_v10, %v734_v36  ;;  %4695 = vmatprep.mubr.f32.mxu0 %v10416_v19  ;;  %10523 = vst [vmem:[#allocation27_spill] sm:$0xff] %v7688_v42  ;;  %v874_v42 = vadd.f32 %v7468_v44, %v7475_v59 }
 0x13e   : > { %v7686_v63 = vpop.f32.mrf.mxu0  ;;  %v7690_v15 = vpop.f32.mrf.mxu1 }
 0x13f   : > { %10522 = vst [vmem:[#allocation26_spill] sm:$0xff] %v7686_v63 }
 0x140   : > { %v1188_v52 = vpop.f32.mrf.mxu0  ;;  %v7697_v7 = vpop.f32.mrf.mxu1 }
 0x141   : > { %v7693_v46 = vadd.f32 %v1188_v52, %v7447_v26 }
 0x142   : > { %v7695_v6 = vpop.f32.mrf.mxu0  ;;  %v7704_v36 = vpop.f32.mrf.mxu1 }
 0x143   : > { %10525 = vst [vmem:[#allocation29_spill] sm:$0xff] %v7704_v36 }
 0x144   : > { %v1194_v23 = vpop.f32.mrf.mxu0  ;;  %v7713_v3 = vpop.f32.mrf.mxu1 }
 0x145   : > { %v7700_v37 = vadd.f32 %v1194_v23, %v7459_v55  ;;  %v880_v55 = vadd.f32 %v7478_v47, %v7485_v20 }
 0x146   : > { %v7702_v10 = vpop.f32.mrf.mxu0 }
 0x147   : > { %10524 = vst [vmem:[#allocation28_spill] sm:$0xff] %v7700_v37  ;;  %v7722_v37 = vpop.f32.mrf.mxu1 }
 0x148   : > { %v1200_v19 = vpop.f32.mrf.mxu0 }
 0x149   : > { %v7709_v63 = vadd.f32 %v1200_v19, %v7470_v56  ;;  %v886_v19 = vadd.f32 %v7488_v58, %v7496_v11 }
 0x14a   : > { %v1202_v26 = vpop.f32.mrf.mxu0 }
 0x14b   : > { %v7711_v52 = vadd.f32 %v1202_v26, %v874_v42  ;;  %v7731_v26 = vpop.f32.mrf.mxu1 }
 0x14c   : > { %v1206_v54 = vpop.f32.mrf.mxu0 }
 0x14d   : > { %v7718_v23 = vadd.f32 %v1206_v54, %v7480_v48  ;;  %v892_v48 = vadd.f32 %v7499_v14, %v7506_v22 }
 0x14e   : > { %v1208_v38 = vpop.f32.mrf.mxu0 }
 0x14f   : > { %v7720_v36 = vadd.f32 %v1208_v38, %v880_v55  ;;  %v7740_v55 = vpop.f32.mrf.mxu1 }
 0x150   : > { %v1212_v44 = vpop.f32.mrf.mxu0 }
 0x151   : > { %v7727_v56 = vadd.f32 %v1212_v44, %v7490_v0  ;;  %v898_v0 = vadd.f32 %v7509_v33, %v7516_v28 }
 0x152   : > { %v1214_v59 = vpop.f32.mrf.mxu0 }
 0x153   : > { %v7729_v42 = vadd.f32 %v1214_v59, %v886_v19  ;;  %v7749_v59 = vpop.f32.mrf.mxu1 }
 0x154   : > { %v1218_v47 = vpop.f32.mrf.mxu0 }
 0x155   : > { %v7736_v20 = vadd.f32 %v1218_v47, %v7501_v17  ;;  %v904_v17 = vadd.f32 %v7519_v62, %v7527_v49 }
 0x156   : > { %v1220_v38 = vpop.f32.mrf.mxu0 }
 0x157   : > { %v7738_v54 = vadd.f32 %v1220_v38, %v892_v48  ;;  %v7758_v38 = vpop.f32.mrf.mxu1 }
 0x158   : > { %v1224_v58 = vpop.f32.mrf.mxu0 }
 0x159   : > { %v7745_v11 = vadd.f32 %v1224_v58, %v7511_v39  ;;  %v910_v39 = vadd.f32 %v7530_v43, %v7537_v50 }
 0x15a   : > { %v1226_v44 = vpop.f32.mrf.mxu0 }
 0x15b   : > { %v7747_v19 = vadd.f32 %v1226_v44, %v898_v0  ;;  %v7767_v44 = vpop.f32.mrf.mxu1 }
 0x15c   : > { %v1230_v14 = vpop.f32.mrf.mxu0 }
 0x15d   : > { %v7754_v22 = vadd.f32 %v1230_v14, %v7521_v45  ;;  %v916_v45 = vadd.f32 %v7540_v12, %v7547_v61 }
 0x15e   : > { %v1232_v47 = vpop.f32.mrf.mxu0 }
 0x15f   : > { %v7756_v48 = vadd.f32 %v1232_v47, %v904_v17  ;;  %v7776_v47 = vpop.f32.mrf.mxu1 }
 0x160   : > { %v1236_v33 = vpop.f32.mrf.mxu0 }
 0x161   : > { %v7763_v28 = vadd.f32 %v1236_v33, %v7532_v1  ;;  %v922_v1 = vadd.f32 %v7550_v51, %v7558_v53 }
 0x162   : > { %v1238_v58 = vpop.f32.mrf.mxu0 }
 0x163   : > { %v7765_v0 = vadd.f32 %v1238_v58, %v910_v39  ;;  %v7785_v58 = vpop.f32.mrf.mxu1 }
 0x164   : > { %v1242_v62 = vpop.f32.mrf.mxu0 }
 0x165   : > { %v7772_v49 = vadd.f32 %v1242_v62, %v7542_v27  ;;  %v928_v27 = vadd.f32 %v7561_v57, %v7568_v9 }
 0x166   : > { %v1244_v14 = vpop.f32.mrf.mxu0 }
 0x167   : > { %v7774_v17 = vadd.f32 %v1244_v14, %v916_v45  ;;  %v7794_v14 = vpop.f32.mrf.mxu1 }
 0x168   : > { %v1248_v43 = vpop.f32.mrf.mxu0 }
 0x169   : > { %v7781_v50 = vadd.f32 %v1248_v43, %v7552_v41  ;;  %v934_v41 = vadd.f32 %v7571_v30, %v7578_v2  ;;  %v10529_v2 = vld [vmem:[#allocation9_spill] sm:$0xff] }
 0x16a   : > { %v1250_v33 = vpop.f32.mrf.mxu0 }
 0x16b   : > { %v7783_v39 = vadd.f32 %v1250_v33, %v922_v1  ;;  %v7803_v33 = vpop.f32.mrf.mxu1 }
 0x16c   : > { %v1254_v12 = vpop.f32.mrf.mxu0 }
 0x16d   : > { %v7790_v61 = vadd.f32 %v1254_v12, %v7563_v4  ;;  %v940_v4 = vadd.f32 %v7581_v16, %v7589_v24 }
 0x16e   : > { %v1256_v62 = vpop.f32.mrf.mxu0 }
 0x16f   : > { %v7792_v45 = vadd.f32 %v1256_v62, %v928_v27  ;;  %v7812_v62 = vpop.f32.mrf.mxu1 }
 0x170   : > { %v1260_v51 = vpop.f32.mrf.mxu0 }
 0x171   : > { %v7799_v53 = vadd.f32 %v1260_v51, %v7573_v60  ;;  %v946_v60 = vadd.f32 %v7592_v40, %v7599_v13 }
 0x172   : > { %v1262_v43 = vpop.f32.mrf.mxu0 }
 0x173   : > { %v7801_v1 = vadd.f32 %v1262_v43, %v934_v41 }
 0x174   : > { %v1266_v57 = vpop.f32.mrf.mxu0 }
 0x175   : > { %10526 = vst [vmem:[#allocation30_spill] sm:$0xff] %v7801_v1  ;;  %v7808_v9 = vadd.f32 %v1266_v57, %v7583_v5  ;;  %v7821_v1 = vpop.f32.mrf.mxu1  ;;  %v10530_v5 = vld [vmem:[#allocation10_spill] sm:$0xff]  ;;  %v10531_v57 = vld [vmem:[#allocation11_spill] sm:$0xff] }
 0x176   : > { %v1268_v12 = vpop.f32.mrf.mxu0  ;;  %v952_v24 = vadd.f32 %v10530_v5, %v7609_v32  ;;  %v6325_v5 = vld [vmem:[%s10409_s3 + $0x1d0] sm:$0xff] }
 0x177   : > { %10527 = vst [vmem:[#allocation31_spill] sm:$0xff] %v7808_v9  ;;  %v7810_v27 = vadd.f32 %v1268_v12, %v940_v4  ;;  %v7830_v9 = vpop.f32.mrf.mxu1 }
 0x178   : > { %v1272_v30 = vpop.f32.mrf.mxu0 }
 0x179   : > { %10528 = vst [vmem:[#allocation32_spill] sm:$0xff] %v7810_v27  ;;  %v7817_v51 = vadd.f32 %v1272_v30, %v10529_v2 }
 0x17a   : > { %v1274_v41 = vpop.f32.mrf.mxu0 }
 0x17b   : > { %v7819_v43 = vadd.f32 %v1274_v41, %v946_v60  ;;  %v7837_v60 = vpop.f32.mrf.mxu1 }
 0x17c   : > { %v1278_v16 = vpop.f32.mrf.mxu0 }
 0x17d   : > { %v7826_v4 = vadd.f32 %v1278_v16, %v10531_v57  ;;  %v6326_v16 = vld [vmem:[%s10409_s3 + $0x1d8] sm:$0xff] }
 0x17e   : > { %v1280_v12 = vpop.f32.mrf.mxu0  ;;  %3880 = vmatprep.subr.mxu1 %v6326_v16 }
 0x17f   : > { %10532 = vst [vmem:[#allocation9_spill] sm:$0xff] %v7826_v4  ;;  %v7828_v27 = vadd.f32 %v1280_v12, %v952_v24  ;;  %v7853_v24 = vpop.f32.mrf.mxu1  ;;  %v6410_v12 = vld [vmem:[%s10409_s3 + $0x3b8] sm:$0xff]  ;;  %3881 = vmatpush1.msra.mxu1 %v6325_v5 }
 0x180   : > { %v1284_v40 = vpop.f32.mrf.mxu0  ;;  %4633 = vmatprep.subr.mxu0 %v6410_v12 }
 0x181   : > { %10533 = vst [vmem:[#allocation10_spill] sm:$0xff] %v7828_v27  ;;  %v7833_v13 = vadd.f32 %v1284_v40, %v7614_v21  ;;  %v6324_v21 = vld [vmem:[%s10409_s3 + $0x1c8] sm:$0xff] }
 0x182   : > { %v7835_v30 = vpop.f32.mrf.mxu0  ;;  %3882 = vmatprep.subr.mxu1 %v6324_v21 }
 0x183   : > { %10534 = vst [vmem:[#allocation11_spill] sm:$0xff] %v7833_v13  ;;  %10535 = vst [vmem:[#allocation33_spill] sm:$0xff] %v7835_v30 }
 0x184   : > { %v1290_v2 = vpop.f32.mrf.mxu0 }
 0x185   : > { %v7840_v41 = vadd.f32 %v1290_v2, %v7625_v34  ;;  %v6323_v34 = vld [vmem:[%s10409_s3 + $0x1c0] sm:$0xff] }
 0x186   : > { %v7842_v32 = vpop.f32.mrf.mxu0  ;;  %3883 = vmatpush1.msra.mxu1 %v6323_v34 }
 0x187   : > { %10536 = vst [vmem:[#allocation34_spill] sm:$0xff] %v7840_v41  ;;  %10537 = vst [vmem:[#allocation35_spill] sm:$0xff] %v7842_v32  ;;  %v7866_v41 = vpop.f32.mrf.mxu1 }
 0x188   : > { %v1296_v57 = vpop.f32.mrf.mxu0 }
 0x189   : > { %v7862_v40 = vadd.f32 %v1296_v57, %v7635_v31  ;;  %v7873_v30 = vpop.f32.mrf.mxu1  ;;  %v2134_v57 = vlaneseq }
 0x18a   : > { %v7864_v2 = vpop.f32.mrf.mxu0 }
 0x18b   : > { %10538 = vst [vmem:[#allocation36_spill] sm:$0xff] %v7862_v40  ;;  %10539 = vst [vmem:[#allocation37_spill] sm:$0xff] %v7864_v2  ;;  %v7880_v12 = vpop.f32.mrf.mxu1 }
 0x18c   : > { %v1302_v16 = vpop.f32.mrf.mxu0 }
 0x18d   : > { %v7869_v32 = vadd.f32 %v1302_v16, %v7645_v8  ;;  %v7887_v8 = vshrl.u32 %v2134_v57, 7  ;;  %v6322_v16 = vld [vmem:[%s10409_s3 + $0x1b8] sm:$0xff]  ;;  %v6408_v57 = vld [vmem:[%s10409_s3 + $0x3a8] sm:$0xff] }
 0x18e   : > { %v7871_v13 = vpop.f32.mrf.mxu0  ;;  %3884 = vmatprep.subr.mxu1 %v6322_v16  ;;  %v6406_v16 = vld [vmem:[%s10409_s3 + $0x398] sm:$0xff] }
 0x18f   : > { %10540 = vst [vmem:[#allocation38_spill] sm:$0xff] %v7869_v32  ;;  %10541 = vst [vmem:[#allocation39_spill] sm:$0xff] %v7871_v13  ;;  %v10550_v32 = vld [vmem:[#allocation5_spill] sm:$0xff]  ;;  %v7920_v2 = vsub.s32 0, %v7887_v8 }
 0x190   : > { %v1308_v27 = vpop.f32.mrf.mxu0  ;;  %10546 = vst [vmem:[#allocation44_spill] sm:$0xff] %v7887_v8 }
 0x191   : > { %v7876_v31 = vadd.f32 %v1308_v27, %v7656_v18  ;;  %v6409_v18 = vld [vmem:[%s10409_s3 + $0x3b0] sm:$0xff] }
 0x192   : > { %v7878_v5 = vpop.f32.mrf.mxu0  ;;  %v6321_v27 = vld [vmem:[%s10409_s3 + $0x1b0] sm:$0xff]  ;;  %4634 = vmatpush1.msra.mxu0 %v6409_v18 }
 0x193   : > { %10542 = vst [vmem:[#allocation40_spill] sm:$0xff] %v7876_v31  ;;  %10543 = vst [vmem:[#allocation41_spill] sm:$0xff] %v7878_v5  ;;  %v7898_v31 = vpop.f32.mrf.mxu1  ;;  %v6320_v5 = vld [vmem:[%s10409_s3 + $0x1a8] sm:$0xff]  ;;  %3885 = vmatpush1.msra.mxu1 %v6321_v27  ;;  %4635 = vmatprep.subr.mxu0 %v6408_v57  ;;  %v6405_v27 = vld [vmem:[%s10409_s3 + $0x390] sm:$0xff] }
 0x194   : > { %v1314_v21 = vpop.f32.mrf.mxu0  ;;  %3886 = vmatprep.subr.mxu1 %v6320_v5  ;;  %v2132_v5 = vld [vmem:[%s10408_s2] sm:$0x3] }
 0x195   : > { %v7883_v34 = vadd.f32 %v1314_v21, %v7666_v29  ;;  %v6407_v21 = vld [vmem:[%s10409_s3 + $0x3a0] sm:$0xff] }
 0x196   : > { %v7885_v40 = vpop.f32.mrf.mxu0  ;;  %4636 = vmatpush1.msra.mxu0 %v6407_v21 }
 0x197   : > { %10544 = vst [vmem:[#allocation42_spill] sm:$0xff] %v7883_v34  ;;  %10545 = vst [vmem:[#allocation43_spill] sm:$0xff] %v7885_v40  ;;  %v10549_v40 = vld [vmem:[#allocation6_spill] sm:$0xff]  ;;  %4637 = vmatprep.subr.mxu0 %v6406_v16 }
 0x198   : > { %v1320_v29 = vpop.f32.mrf.mxu0  ;;  %v862_v13 = vadd.f32 %v10550_v32, %v10549_v40  ;;  %10551 = vst [vmem:[#allocation6_spill] sm:$0xff] %v7920_v2  ;;  %4638 = vmatpush1.msra.mxu0 %v6405_v27  ;;  %v6318_v32 = vld [vmem:[%s10409_s3 + $0x198] sm:$0xff]  ;;  %v6404_v40 = vld [vmem:[%s10409_s3 + $0x388] sm:$0xff]  ;;  %v6403_v27 = vld [vmem:[%s10409_s3 + $0x380] sm:$0xff] }
 0x199   : > { %v7910_v34 = vadd.f32 %v1320_v29, %v7676_v35  ;;  %v6319_v35 = vld [vmem:[%s10409_s3 + $0x1a0] sm:$0xff]  ;;  %v7928_v29 = vpop.f32.mrf.mxu1  ;;  %4639 = vmatprep.subr.mxu0 %v6404_v40  ;;  %v1708_v40 = vadd.f32 %v7690_v15, %v7693_v46  ;;  %v6401_v46 = vld [vmem:[%s10409_s3 + $0x370] sm:$0xff] }
 0x19a   : > { %v7915_v18 = vpop.f32.mrf.mxu0  ;;  %3887 = vmatpush1.msra.mxu1 %v6319_v35  ;;  %v1332_v21 = vadd.f32 %v7695_v6, %v862_v13  ;;  %v6317_v35 = vld [vmem:[%s10409_s3 + $0x190] sm:$0xff]  ;;  %4640 = vmatpush1.msra.mxu0 %v6403_v27  ;;  %v6402_v6 = vld [vmem:[%s10409_s3 + $0x378] sm:$0xff]  ;;  %v10554_v13 = vld [vmem:[#allocation8_spill] sm:$0xff] }
 0x19b   : > { %10547 = vst [vmem:[#allocation45_spill] sm:$0xff] %v7910_v34  ;;  %10548 = vst [vmem:[#allocation46_spill] sm:$0xff] %v7915_v18  ;;  %3888 = vmatprep.subr.mxu1 %v6318_v32  ;;  %4641 = vmatprep.subr.mxu0 %v6402_v6 }
 0x19c   : > { %v1326_v57 = vpop.f32.mrf.mxu0  ;;  %3889 = vmatpush1.msra.mxu1 %v6317_v35  ;;  %v7965_v35 = vpop.f32.mrf.mxu1  ;;  %v1709_v18 = vadd.f32 %v7697_v7, %v1332_v21  ;;  %4642 = vmatpush1.msra.mxu0 %v6401_v46  ;;  %v6314_v7 = vld [vmem:[%s10409_s3 + $0x178] sm:$0xff]  ;;  %v10557_v21 = vld [vmem:[#allocation28_spill] sm:$0xff] }
 0x19d   : > { %v7941_v16 = vadd.f32 %v1326_v57, %v7683_v25  ;;  %v6316_v25 = vld [vmem:[%s10409_s3 + $0x188] sm:$0xff]  ;;  %v10555_v57 = vld [vmem:[#allocation7_spill] sm:$0xff] }
 0x19e   : > { %v7949_v34 = vpop.f32.mrf.mxu0  ;;  %v868_v32 = vadd.f32 %v10555_v57, %v10554_v13  ;;  %3890 = vmatprep.subr.mxu1 %v6316_v25  ;;  %v6315_v13 = vld [vmem:[%s10409_s3 + $0x180] sm:$0xff]  ;;  %v10556_v25 = vsub.s32 1, %v7887_v8  ;;  %v10558_v57 = vld [vmem:[#allocation29_spill] sm:$0xff]  ;;  %v7996_v46 = vpop.f32.mrf.mxu1 }
 0x19f   : > { %10552 = vst [vmem:[#allocation5_spill] sm:$0xff] %v7941_v16  ;;  %10553 = vst [vmem:[#allocation47_spill] sm:$0xff] %v7949_v34  ;;  %v7963_v16 = vrot.slane %v2132_v5, %v7920_v2  ;;  %3891 = vmatpush1.msra.mxu1 %v6315_v13  ;;  %v6399_v13 = vld [vmem:[%s10409_s3 + $0x360] sm:$0xff] }
 0x1a0   : > { %v1941_v27 = vpop.f32.mrf.mxu0  ;;  %v1334_v34 = vadd.f32 %v7702_v10, %v868_v32  ;;  %v7977_v6 = vrot.slane %v2132_v5, %v10556_v25  ;;  %v6400_v10 = vld [vmem:[%s10409_s3 + $0x368] sm:$0xff]  ;;  %v1710_v32 = vadd.f32 %v10558_v57, %v10557_v21  ;;  %3892 = vmatprep.subr.mxu1 %v6314_v7  ;;  %v6313_v5 = vld [vmem:[%s10409_s3 + $0x170] sm:$0xff]  ;;  %v1712_v21 = vadd.f32 %v7722_v37, %v7709_v63  ;;  %v8013_v2 = vpop.f32.mrf.mxu1  ;;  %v6311_v63 = vld [vmem:[%s10409_s3 + $0x160] sm:$0xff] }
 0x1a1   : > { %v2084_v4 = vadd.f32 %v1941_v27, %v1708_v40  ;;  %4643 = vmatprep.subr.mxu0 %v6400_v10  ;;  %3893 = vmatpush1.msra.mxu1 %v6313_v5  ;;  %v6397_v37 = vld [vmem:[%s10409_s3 + $0x350] sm:$0xff] }
 0x1a2   : > { %v1943_v15 = vpop.f32.mrf.mxu0  ;;  %4644 = vmatpush1.msra.mxu0 %v6399_v13 }
 0x1a3   : > { %v2085_v40 = vadd.f32 %v1943_v15, %v1709_v18  ;;  %v7988_v27 = vadd.f32 %v7963_v16, %v2084_v4  ;;  %v6312_v4 = vld [vmem:[%s10409_s3 + $0x168] sm:$0xff]  ;;  %v6398_v18 = vld [vmem:[%s10409_s3 + $0x358] sm:$0xff]  ;;  %v1711_v15 = vadd.f32 %v7713_v3, %v1334_v34  ;;  %v1713_v34 = vadd.f32 %v7731_v26, %v7711_v52 }
 0x1a4   : > { %v1947_v25 = vpop.f32.mrf.mxu0  ;;  %3894 = vmatprep.subr.mxu1 %v6312_v4  ;;  %4645 = vmatprep.subr.mxu0 %v6398_v18  ;;  %v6310_v52 = vld [vmem:[%s10409_s3 + $0x158] sm:$0xff]  ;;  %v6396_v26 = vld [vmem:[%s10409_s3 + $0x348] sm:$0xff] }
 0x1a5   : > { %v2086_v7 = vadd.f32 %v1947_v25, %v1710_v32  ;;  %2240 = vrot.lane.b32.xlu0 %v7988_v27, %s6697_s24  ;;  %v2145_v57 = vadd.f32 %v7977_v6, %v2085_v40  ;;  %v1714_v40 = vadd.f32 %v7740_v55, %v7718_v23  ;;  %3895 = vmatpush1.msra.mxu1 %v6311_v63  ;;  %v6309_v23 = vld [vmem:[%s10409_s3 + $0x150] sm:$0xff]  ;;  %v6395_v55 = vld [vmem:[%s10409_s3 + $0x340] sm:$0xff] }
 0x1a6   : > { %v1949_v10 = vpop.f32.mrf.mxu0  ;;  %4646 = vmatpush1.msra.mxu0 %v6397_v37  ;;  %3896 = vmatprep.subr.mxu1 %v6310_v52 }
 0x1a7   : > { %v2087_v5 = vadd.f32 %v1949_v10, %v1711_v15  ;;  %v8011_v13 = vadd.f32 %v7963_v16, %v2086_v7  ;;  %4647 = vmatprep.subr.mxu0 %v6396_v26  ;;  %v8044_v7 = vpop.f32.mrf.mxu1  ;;  %3897 = vmatpush1.msra.mxu1 %v6309_v23  ;;  %v6306_v26 = vld [vmem:[%s10409_s3 + $0x138] sm:$0xff] }
 0x1a8   : > { %v1953_v3 = vpop.f32.mrf.mxu0  ;;  %4648 = vmatpush1.msra.mxu0 %v6395_v55 }
 0x1a9   : > { %v2088_v32 = vadd.f32 %v1953_v3, %v1712_v21  ;;  %2242 = vrot.lane.b32.xlu0 %v2145_v57, %s6697_s24  ;;  %2244 = vrot.lane.b32.xlu1 %v8011_v13, %s6697_s24  ;;  %v2147_v4 = vadd.f32 %v7977_v6, %v2087_v5  ;;  %v6308_v21 = vld [vmem:[%s10409_s3 + $0x148] sm:$0xff]  ;;  %v6394_v57 = vld [vmem:[%s10409_s3 + $0x338] sm:$0xff]  ;;  %v1715_v5 = vadd.f32 %v7749_v59, %v7720_v36  ;;  %v8063_v52 = vpop.f32.mrf.mxu1 }
 0x1aa   : > { %v1955_v25 = vpop.f32.mrf.mxu0  ;;  %3898 = vmatprep.subr.mxu1 %v6308_v21  ;;  %4649 = vmatprep.subr.mxu0 %v6394_v57  ;;  %v6307_v59 = vld [vmem:[%s10409_s3 + $0x140] sm:$0xff] }
 0x1ab   : > { %v8036_v18 = vadd.f32 %v7963_v16, %v2088_v32  ;;  %v2089_v15 = vadd.f32 %v1955_v25, %v1713_v34  ;;  %v1716_v32 = vadd.f32 %v7758_v38, %v7727_v56  ;;  %v1717_v56 = vadd.f32 %v7767_v44, %v7729_v42  ;;  %3899 = vmatpush1.msra.mxu1 %v6307_v59  ;;  %v6305_v42 = vld [vmem:[%s10409_s3 + $0x130] sm:$0xff]  ;;  %v6391_v44 = vld [vmem:[%s10409_s3 + $0x320] sm:$0xff]  ;;  %v8100_v57 = vpop.f32.mrf.mxu1 }
 0x1ac   : > { %v1959_v10 = vpop.f32.mrf.mxu0  ;;  %3900 = vmatprep.subr.mxu1 %v6306_v26  ;;  %v1720_v59 = vadd.f32 %v7794_v14, %v7745_v11  ;;  %v6387_v26 = vld [vmem:[%s10409_s3 + $0x300] sm:$0xff] }
 0x1ad   : > { %v2090_v3 = vadd.f32 %v1959_v10, %v1714_v40  ;;  %2246 = vrot.lane.b32.xlu1 %v2147_v4, %s6697_s24  ;;  %2248 = vrot.lane.b32.xlu0 %v8036_v18, %s6697_s24  ;;  %v2149_v63 = vadd.f32 %v7977_v6, %v2089_v15  ;;  %v6393_v40 = vld [vmem:[%s10409_s3 + $0x330] sm:$0xff]  ;;  %v6392_v4 = vld [vmem:[%s10409_s3 + $0x328] sm:$0xff]  ;;  %v1718_v15 = vadd.f32 %v7776_v47, %v7736_v20  ;;  %v8131_v11 = vpop.f32.mrf.mxu1 }
 0x1ae   : > { %v1961_v34 = vpop.f32.mrf.mxu0  ;;  %4650 = vmatpush1.msra.mxu0 %v6393_v40  ;;  %v6304_v20 = vld [vmem:[%s10409_s3 + $0x128] sm:$0xff]  ;;  %v6390_v47 = vld [vmem:[%s10409_s3 + $0x318] sm:$0xff]  ;;  %3901 = vmatpush1.msra.mxu1 %v6305_v42 }
 0x1af   : > { %v8061_v37 = vadd.f32 %v7963_v16, %v2090_v3  ;;  %v2091_v25 = vadd.f32 %v1961_v34, %v1715_v5  ;;  %4651 = vmatprep.subr.mxu0 %v6392_v4  ;;  %v6303_v3 = vld [vmem:[%s10409_s3 + $0x120] sm:$0xff]  ;;  %v6389_v34 = vld [vmem:[%s10409_s3 + $0x310] sm:$0xff]  ;;  %3902 = vmatprep.subr.mxu1 %v6304_v20  ;;  %v6300_v4 = vld [vmem:[%s10409_s3 + $0x108] sm:$0xff] }
 0x1b0   : > { %v1965_v36 = vpop.f32.mrf.mxu0  ;;  %4652 = vmatpush1.msra.mxu0 %v6391_v44  ;;  %3903 = vmatpush1.msra.mxu1 %v6303_v3  ;;  %v1722_v44 = vadd.f32 %v7812_v62, %v7754_v22  ;;  %v8156_v22 = vpop.f32.mrf.mxu1  ;;  %v6384_v3 = vld [vmem:[%s10409_s3 + $0x2e8] sm:$0xff] }
 0x1b1   : > { %v2092_v38 = vadd.f32 %v1965_v36, %v1716_v32  ;;  %2250 = vrot.lane.b32.xlu1 %v2149_v63, %s6697_s24  ;;  %2252 = vrot.lane.b32.xlu0 %v8061_v37, %s6697_s24  ;;  %v2151_v55 = vadd.f32 %v7977_v6, %v2091_v25  ;;  %v1719_v32 = vadd.f32 %v7785_v58, %v7738_v54  ;;  %v6302_v25 = vld [vmem:[%s10409_s3 + $0x118] sm:$0xff]  ;;  %v6388_v36 = vld [vmem:[%s10409_s3 + $0x308] sm:$0xff] }
 0x1b2   : > { %v1967_v23 = vpop.f32.mrf.mxu0  ;;  %4653 = vmatprep.subr.mxu0 %v6390_v47  ;;  %3904 = vmatprep.subr.mxu1 %v6302_v25  ;;  %v6383_v25 = vld [vmem:[%s10409_s3 + $0x2e0] sm:$0xff] }
 0x1b3   : > { %v8092_v10 = vadd.f32 %v7963_v16, %v2092_v38  ;;  %v2093_v21 = vadd.f32 %v1967_v23, %v1717_v56  ;;  %4654 = vmatpush1.msra.mxu0 %v6389_v34  ;;  %v6301_v38 = vld [vmem:[%s10409_s3 + $0x110] sm:$0xff]  ;;  %v1721_v23 = vadd.f32 %v7803_v33, %v7747_v19  ;;  %v6299_v19 = vld [vmem:[%s10409_s3 + $0x100] sm:$0xff]  ;;  %v1723_v34 = vadd.f32 %v7821_v1, %v7756_v48 }
 0x1b4   : > { %v1971_v5 = vpop.f32.mrf.mxu0  ;;  %4655 = vmatprep.subr.mxu0 %v6388_v36  ;;  %3905 = vmatpush1.msra.mxu1 %v6301_v38  ;;  %v6385_v33 = vld [vmem:[%s10409_s3 + $0x2f0] sm:$0xff]  ;;  %v1724_v36 = vadd.f32 %v7830_v9, %v7763_v28  ;;  %v1725_v38 = vadd.f32 %v7837_v60, %v7765_v0  ;;  %v1726_v9 = vadd.f32 %v7853_v24, %v7772_v49  ;;  %v6382_v49 = vld [vmem:[%s10409_s3 + $0x2d8] sm:$0xff] }
 0x1b5   : > { %v2094_v63 = vadd.f32 %v1971_v5, %v1718_v15  ;;  %2254 = vrot.lane.b32.xlu1 %v2151_v55, %s6697_s24  ;;  %2256 = vrot.lane.b32.xlu0 %v8092_v10, %s6697_s24  ;;  %v2153_v54 = vadd.f32 %v7977_v6, %v2093_v21  ;;  %v6386_v15 = vld [vmem:[%s10409_s3 + $0x2f8] sm:$0xff]  ;;  %v1727_v0 = vadd.f32 %v7866_v41, %v7774_v17  ;;  %v6381_v41 = vld [vmem:[%s10409_s3 + $0x2d0] sm:$0xff] }
 0x1b6   : > { %v1973_v40 = vpop.f32.mrf.mxu0  ;;  %4656 = vmatpush1.msra.mxu0 %v6387_v26  ;;  %3906 = vmatprep.subr.mxu1 %v6300_v4  ;;  %v6298_v5 = vld [vmem:[%s10409_s3 + $0xf8] sm:$0xff]  ;;  %v1728_v24 = vadd.f32 %v7873_v30, %v7781_v50  ;;  %v1730_v30 = vadd.f32 %v7898_v31, %v7790_v61  ;;  %v1732_v61 = vadd.f32 %v7965_v35, %v7799_v53  ;;  %v10560_v53 = vld [vmem:[#allocation31_spill] sm:$0xff] }
 0x1b7   : > { %v8123_v58 = vadd.f32 %v7963_v16, %v2094_v63  ;;  %v2095_v56 = vadd.f32 %v1973_v40, %v1719_v32  ;;  %4657 = vmatprep.subr.mxu0 %v6386_v15  ;;  %3907 = vmatpush1.msra.mxu1 %v6299_v19  ;;  %v6297_v63 = vld [vmem:[%s10409_s3 + $0xf0] sm:$0xff]  ;;  %v1734_v35 = vadd.f32 %v8013_v2, %v10560_v53 }
 0x1b8   : > { %v1977_v14 = vpop.f32.mrf.mxu0  ;;  %4658 = vmatpush1.msra.mxu0 %v6385_v33  ;;  %3908 = vmatprep.subr.mxu1 %v6298_v5  ;;  %v1729_v33 = vadd.f32 %v7880_v12, %v7783_v39  ;;  %v1731_v39 = vadd.f32 %v7928_v29, %v7792_v45  ;;  %v10559_v45 = vld [vmem:[#allocation30_spill] sm:$0xff]  ;;  %v1736_v2 = vadd.f32 %v8063_v52, %v7817_v51 }
 0x1b9   : > { %v2096_v42 = vadd.f32 %v1977_v14, %v1720_v59  ;;  %2258 = vrot.lane.b32.xlu1 %v2153_v54, %s6697_s24  ;;  %2260 = vrot.lane.b32.xlu0 %v8123_v58, %s6697_s24  ;;  %v2155_v21 = vadd.f32 %v7977_v6, %v2095_v56  ;;  %v8181_v54 = vpop.f32.mrf.mxu1  ;;  %v1733_v29 = vadd.f32 %v7996_v46, %v10559_v45  ;;  %v10561_v46 = vld [vmem:[#allocation32_spill] sm:$0xff]  ;;  %v10569_v45 = vld [vmem:[#allocation11_spill] sm:$0xff] }
 0x1ba   : > { %v1979_v55 = vpop.f32.mrf.mxu0  ;;  %4659 = vmatprep.subr.mxu0 %v6384_v3  ;;  %3909 = vmatpush1.msra.mxu1 %v6297_v63 }
 0x1bb   : > { %v8148_v20 = vadd.f32 %v7963_v16, %v2096_v42  ;;  %v2097_v47 = vadd.f32 %v1979_v55, %v1721_v23  ;;  %4660 = vmatpush1.msra.mxu0 %v6383_v25  ;;  %v8194_v23 = vpop.f32.mrf.mxu1 }
 0x1bc   : > { %v1983_v62 = vpop.f32.mrf.mxu0  ;;  %4661 = vmatprep.subr.mxu0 %v6382_v49 }
 0x1bd   : > { %v2098_v32 = vadd.f32 %v1983_v62, %v1722_v44  ;;  %2262 = vrot.lane.b32.xlu1 %v2155_v21, %s6697_s24  ;;  %2264 = vrot.lane.b32.xlu0 %v8148_v20, %s6697_s24  ;;  %v2157_v48 = vadd.f32 %v7977_v6, %v2097_v47  ;;  %v8213_v47 = vpop.f32.mrf.mxu1 }
 0x1be   : > { %v1985_v59 = vpop.f32.mrf.mxu0  ;;  %4662 = vmatpush1.msra.mxu0 %v6381_v41 }
 0x1bf   : > { %v8179_v1 = vadd.f32 %v7963_v16, %v2098_v32  ;;  %v2099_v40 = vadd.f32 %v1985_v59, %v1723_v34  ;;  %v8226_v32 = vpop.f32.mrf.mxu1 }
 0x1c0   : > { %v1989_v56 = vpop.f32.mrf.mxu0 }
 0x1c1   : > { %v2100_v26 = vadd.f32 %v1989_v56, %v1724_v36  ;;  %2266 = vrot.lane.b32.xlu1 %v2157_v48, %s6697_s24  ;;  %2268 = vrot.lane.b32.xlu0 %v8179_v1, %s6697_s24  ;;  %v2159_v14 = vadd.f32 %v7977_v6, %v2099_v40  ;;  %v8239_v48 = vpop.f32.mrf.mxu1 }
 0x1c2   : > { %v1991_v28 = vpop.f32.mrf.mxu0 }
 0x1c3   : > { %v8192_v4 = vadd.f32 %v7963_v16, %v2100_v26  ;;  %v2101_v15 = vadd.f32 %v1991_v28, %v1725_v38 }
 0x1c4   : > { %v1995_v42 = vpop.f32.mrf.mxu0 }
 0x1c5   : > { %v2102_v60 = vadd.f32 %v1995_v42, %v1726_v9  ;;  %2270 = vrot.lane.b32.xlu1 %v2159_v14, %s6697_s24  ;;  %2272 = vrot.lane.b32.xlu0 %v8192_v4, %s6697_s24  ;;  %v2161_v55 = vadd.f32 %v7977_v6, %v2101_v15  ;;  %v8252_v14 = vpop.f32.mrf.mxu1  ;;  %v1735_v42 = vadd.f32 %v8044_v7, %v10561_v46 }
 0x1c6   : > { %v1997_v44 = vpop.f32.mrf.mxu0  ;;  %v1737_v7 = vadd.f32 %v8100_v57, %v7819_v43 }
 0x1c7   : > { %v8208_v21 = vadd.f32 %v7963_v16, %v2102_v60  ;;  %v2103_v17 = vadd.f32 %v1997_v44, %v1727_v0 }
 0x1c8   : > { %v2001_v19 = vpop.f32.mrf.mxu0 }
 0x1c9   : > { %v2104_v62 = vadd.f32 %v2001_v19, %v1728_v24  ;;  %2274 = vrot.lane.b32.xlu1 %v2161_v55, %s6697_s24  ;;  %2276 = vrot.lane.b32.xlu0 %v8208_v21, %s6697_s24  ;;  %v2163_v5 = vadd.f32 %v7977_v6, %v2103_v17  ;;  %v1679_v55 = vpop.f32.mrf.mxu1  ;;  %v10562_v19 = vld [vmem:[#allocation13_spill] sm:$0xff] }
 0x1ca   : > { %v2003_v50 = vpop.f32.mrf.mxu0 }
 0x1cb   : > { %v8224_v3 = vadd.f32 %v7963_v16, %v2104_v62  ;;  %v2105_v34 = vadd.f32 %v2003_v50, %v1729_v33  ;;  %v10563_v33 = vld [vmem:[#allocation12_spill] sm:$0xff]  ;;  %v10564_v62 = vld [vmem:[#allocation9_spill] sm:$0xff]  ;;  %v1681_v43 = vpop.f32.mrf.mxu1 }
 0x1cc   : > { %v2007_v63 = vpop.f32.mrf.mxu0  ;;  %v958_v51 = vadd.f32 %v10563_v33, %v10562_v19  ;;  %v1738_v50 = vadd.f32 %v8131_v11, %v10564_v62  ;;  %v10567_v11 = vld [vmem:[#allocation15_spill] sm:$0xff]  ;;  %v10574_v33 = vld [vmem:[#allocation37_spill] sm:$0xff]  ;;  %v10576_v62 = vld [vmem:[#allocation18_spill] sm:$0xff] }
 0x1cd   : > { %v2106_v12 = vadd.f32 %v2007_v63, %v1730_v30  ;;  %2278 = vrot.lane.b32.xlu1 %v2163_v5, %s6697_s24  ;;  %2280 = vrot.lane.b32.xlu0 %v8224_v3, %s6697_s24  ;;  %v2165_v31 = vadd.f32 %v7977_v6, %v2105_v34  ;;  %v10565_v63 = vld [vmem:[#allocation10_spill] sm:$0xff]  ;;  %v8292_v53 = vpop.f32.mrf.mxu1 }
 0x1ce   : > { %v2009_v25 = vpop.f32.mrf.mxu0 }
 0x1cf   : > { %v8237_v36 = vadd.f32 %v7963_v16, %v2106_v12  ;;  %v2107_v59 = vadd.f32 %v2009_v25, %v1731_v39  ;;  %v1739_v39 = vadd.f32 %v8156_v22, %v10565_v63  ;;  %v10566_v12 = vld [vmem:[#allocation33_spill] sm:$0xff] }
 0x1d0   : > { %v2013_v40 = vpop.f32.mrf.mxu0  ;;  %v1364_v25 = vadd.f32 %v10566_v12, %v958_v51 }
 0x1d1   : > { %v2108_v56 = vadd.f32 %v2013_v40, %v1732_v61  ;;  %2282 = vrot.lane.b32.xlu1 %v2165_v31, %s6697_s24  ;;  %2284 = vrot.lane.b32.xlu0 %v8237_v36, %s6697_s24  ;;  %v2167_v26 = vadd.f32 %v7977_v6, %v2107_v59  ;;  %v10568_v31 = vld [vmem:[#allocation14_spill] sm:$0xff] }
 0x1d2   : > { %v2015_v38 = vpop.f32.mrf.mxu0  ;;  %v964_v59 = vadd.f32 %v10568_v31, %v10567_v11  ;;  %v10578_v11 = vld [vmem:[#allocation39_spill] sm:$0xff] }
 0x1d3   : > { %v8250_v28 = vadd.f32 %v7963_v16, %v2108_v56  ;;  %v2109_v9 = vadd.f32 %v2015_v38, %v1733_v29  ;;  %v1740_v29 = vadd.f32 %v8181_v54, %v10569_v45  ;;  %v10571_v54 = vld [vmem:[#allocation17_spill] sm:$0xff] }
 0x1d4   : > { %v2019_v15 = vpop.f32.mrf.mxu0 }
 0x1d5   : > { %v2110_v0 = vadd.f32 %v2019_v15, %v1734_v35  ;;  %2286 = vrot.lane.b32.xlu1 %v2167_v26, %s6697_s24  ;;  %2288 = vrot.lane.b32.xlu0 %v8250_v28, %s6697_s24  ;;  %v2169_v44 = vadd.f32 %v7977_v6, %v2109_v9  ;;  %v1741_v26 = vadd.f32 %v8194_v23, %v1364_v25  ;;  %v10570_v9 = vld [vmem:[#allocation35_spill] sm:$0xff] }
 0x1d6   : > { %v2021_v60 = vpop.f32.mrf.mxu0  ;;  %v1366_v15 = vadd.f32 %v10570_v9, %v964_v59 }
 0x1d7   : > { %v8263_v49 = vadd.f32 %v7963_v16, %v2110_v0  ;;  %v2111_v24 = vadd.f32 %v2021_v60, %v1735_v42  ;;  %v10572_v42 = vld [vmem:[#allocation16_spill] sm:$0xff] }
 0x1d8   : > { %v2025_v17 = vpop.f32.mrf.mxu0  ;;  %v970_v0 = vadd.f32 %v10572_v42, %v10571_v54  ;;  %v1743_v19 = vadd.f32 %v8226_v32, %v1366_v15  ;;  %v10581_v54 = vld [vmem:[#allocation22_spill] sm:$0xff] }
 0x1d9   : > { %v2112_v41 = vadd.f32 %v2025_v17, %v1736_v2  ;;  %2290 = vrot.lane.b32.xlu1 %v2169_v44, %s6697_s24  ;;  %2292 = vrot.lane.b32.xlu0 %v8263_v49, %s6697_s24  ;;  %v2171_v30 = vadd.f32 %v7977_v6, %v2111_v24  ;;  %v10573_v2 = vld [vmem:[#allocation34_spill] sm:$0xff] }
 0x1da   : > { %v2027_v52 = vpop.f32.mrf.mxu0  ;;  %v1742_v44 = vadd.f32 %v8213_v47, %v10573_v2  ;;  %v1368_v51 = vadd.f32 %v10574_v33, %v970_v0  ;;  %v10575_v47 = vld [vmem:[#allocation19_spill] sm:$0xff] }
 0x1db   : > { %v8276_v5 = vadd.f32 %v7963_v16, %v2112_v41  ;;  %v2113_v34 = vadd.f32 %v2027_v52, %v1737_v7  ;;  %v8307_v7 = vpop.f32.mrf.mxu1 }
 0x1dc   : > { %v2031_v57 = vpop.f32.mrf.mxu0 }
 0x1dd   : > { %v2114_v61 = vadd.f32 %v2031_v57, %v1738_v50  ;;  %2294 = vrot.lane.b32.xlu1 %v2171_v30, %s6697_s24  ;;  %2296 = vrot.lane.b32.xlu0 %v8276_v5, %s6697_s24  ;;  %v2173_v56 = vadd.f32 %v7977_v6, %v2113_v34  ;;  %v976_v50 = vadd.f32 %v10576_v62, %v10575_v47  ;;  %v10577_v34 = vld [vmem:[#allocation36_spill] sm:$0xff]  ;;  %v1691_v12 = vpop.f32.mrf.mxu1  ;;  %v10586_v62 = vld [vmem:[#allocation21_spill] sm:$0xff] }
 0x1de   : > { %v2033_v40 = vpop.f32.mrf.mxu0  ;;  %v1744_v57 = vadd.f32 %v8239_v48, %v10577_v34  ;;  %v10579_v48 = vld [vmem:[#allocation38_spill] sm:$0xff] }
 0x1df   : > { %v8290_v38 = vadd.f32 %v7963_v16, %v2114_v61  ;;  %v2115_v22 = vadd.f32 %v2033_v40, %v1739_v39  ;;  %v1745_v61 = vadd.f32 %v8252_v14, %v1368_v51  ;;  %v1370_v31 = vadd.f32 %v10578_v11, %v976_v50  ;;  %v10585_v51 = vld [vmem:[#allocation42_spill] sm:$0xff]  ;;  %v10587_v50 = vld [vmem:[#allocation20_spill] sm:$0xff]  ;;  %v10589_v11 = vld [vmem:[#allocation41_spill] sm:$0xff] }
 0x1e0   : > { %v2037_v35 = vpop.f32.mrf.mxu0  ;;  %v1746_v45 = vadd.f32 %v1679_v55, %v10579_v48 }
 0x1e1   : > { %v2116_v46 = vadd.f32 %v2037_v35, %v1740_v29  ;;  %2298 = vrot.lane.b32.xlu1 %v2173_v56, %s6697_s24  ;;  %2300 = vrot.lane.b32.xlu0 %v8290_v38, %s6697_s24  ;;  %v2175_v24 = vadd.f32 %v7977_v6, %v2115_v22  ;;  %v1693_v35 = vpop.f32.mrf.mxu1  ;;  %v1747_v14 = vadd.f32 %v1681_v43, %v1370_v31 }
 0x1e2   : > { %v2039_v60 = vpop.f32.mrf.mxu0 }
 0x1e3   : > { %v8305_v17 = vadd.f32 %v7963_v16, %v2116_v46  ;;  %v2117_v23 = vadd.f32 %v2039_v60, %v1741_v26  ;;  %v10580_v46 = vld [vmem:[#allocation23_spill] sm:$0xff]  ;;  %v1697_v2 = vpop.f32.mrf.mxu1 }
 0x1e4   : > { %v2043_v41 = vpop.f32.mrf.mxu0  ;;  %v988_v42 = vadd.f32 %v10581_v54, %v10580_v46 }
 0x1e5   : > { %v2118_v52 = vadd.f32 %v2043_v41, %v1742_v44  ;;  %2302 = vrot.lane.b32.xlu1 %v2175_v24, %s6697_s24  ;;  %2304 = vrot.lane.b32.xlu0 %v8305_v17, %s6697_s24  ;;  %v2177_v63 = vadd.f32 %v7977_v6, %v2117_v23  ;;  %v10582_v24 = vld [vmem:[#allocation43_spill] sm:$0xff]  ;;  %v10583_v41 = vld [vmem:[#allocation25_spill] sm:$0xff]  ;;  %v1699_v34 = vpop.f32.mrf.mxu1 }
 0x1e6   : > { %v2045_v30 = vpop.f32.mrf.mxu0  ;;  %v1374_v43 = vadd.f32 %v10582_v24, %v988_v42 }
 0x1e7   : > { %v8320_v39 = vadd.f32 %v7963_v16, %v2118_v52  ;;  %v2119_v32 = vadd.f32 %v2045_v30, %v1743_v19  ;;  %v10584_v19 = vld [vmem:[#allocation24_spill] sm:$0xff]  ;;  %v1750_v52 = vadd.f32 %v1691_v12, %v10585_v51  ;;  %v982_v30 = vadd.f32 %v10587_v50, %v10586_v62  ;;  %v10595_v51 = vld [vmem:[#allocation5_spill] sm:$0xff] }
 0x1e8   : > { %v2049_v25 = vpop.f32.mrf.mxu0  ;;  %v994_v33 = vadd.f32 %v10584_v19, %v10583_v41 }
 0x1e9   : > { %v2120_v59 = vadd.f32 %v2049_v25, %v1744_v57  ;;  %2306 = vrot.lane.b32.xlu1 %v2177_v63, %s6697_s24  ;;  %2308 = vrot.lane.b32.xlu0 %v8320_v39, %s6697_s24  ;;  %v2179_v29 = vadd.f32 %v7977_v6, %v2119_v32  ;;  %v1751_v63 = vadd.f32 %v1693_v35, %v1374_v43  ;;  %v10588_v32 = vld [vmem:[#allocation46_spill] sm:$0xff]  ;;  %v10593_v35 = vld [vmem:[#allocation40_spill] sm:$0xff] }
 0x1ea   : > { %v2051_v40 = vpop.f32.mrf.mxu0  ;;  %v1376_v25 = vadd.f32 %v10588_v32, %v994_v33  ;;  %v1372_v31 = vadd.f32 %v10589_v11, %v982_v30  ;;  %v6698_v32 = vmov 1983009808  }
 0x1eb   : > { %v8330_v56 = vadd.f32 %v7963_v16, %v2120_v59  ;;  %v2121_v22 = vadd.f32 %v2051_v40, %v1745_v61  ;;  %v10590_v40 = vld [vmem:[#allocation45_spill] sm:$0xff] }
 0x1ec   : > { %v2055_v26 = vpop.f32.mrf.mxu0  ;;  %v1752_v48 = vadd.f32 %v1697_v2, %v10590_v40  ;;  %v1753_v46 = vadd.f32 %v1699_v34, %v1376_v25  ;;  %v10594_v2 = vld [vmem:[#allocation47_spill] sm:$0xff]  ;;  %v2435_v25 = vunpack.c.l.s4 %v6698_v32 }
 0x1ed   : > { %v2122_v9 = vadd.f32 %v2055_v26, %v1746_v45  ;;  %2310 = vrot.lane.b32.xlu1 %v2179_v29, %s6697_s24  ;;  %2312 = vrot.lane.b32.xlu0 %v8330_v56, %s6697_s24  ;;  %v2181_v55 = vadd.f32 %v7977_v6, %v2121_v22  ;;  %v10591_v29 = vld [vmem:[#allocation26_spill] sm:$0xff]  ;;  %v10592_v22 = vld [vmem:[#allocation27_spill] sm:$0xff] }
 0x1ee   : > { %v2057_v15 = vpop.f32.mrf.mxu0  ;;  %v1000_v26 = vadd.f32 %v10592_v22, %v10591_v29  ;;  %v2436_v11 = vunpack.c.0.s8 %v2435_v25 }
 0x1ef   : > { %v8339_v0 = vadd.f32 %v7963_v16, %v2122_v9  ;;  %v2123_v60 = vadd.f32 %v2057_v15, %v1747_v14  ;;  %v1703_v14 = vpop.f32.mrf.mxu1  ;;  %v1748_v15 = vadd.f32 %v8292_v53, %v10593_v35 }
 0x1f0   : > { %v2061_v44 = vpop.f32.mrf.mxu0  ;;  %v1378_v24 = vadd.f32 %v10594_v2, %v1000_v26 }
 0x1f1   : > { %2314 = vrot.lane.b32.xlu1 %v2181_v55, %s6697_s24  ;;  %2316 = vrot.lane.b32.xlu0 %v8339_v0, %s6697_s24  ;;  %v2183_v47 = vadd.f32 %v7977_v6, %v2123_v60  ;;  %v1749_v55 = vadd.f32 %v8307_v7, %v1372_v31  ;;  %v2124_v43 = vadd.f32 %v2061_v44, %v1748_v15  ;;  %v1705_v53 = vpop.f32.mrf.mxu1 }
 0x1f2   : > { %v2063_v23 = vpop.f32.mrf.mxu0  ;;  %v1755_v50 = vadd.f32 %v1705_v53, %v1378_v24  ;;  %v8391_v31 = vsub.s32 %v2436_v11, %v7887_v8 }
 0x1f3   : > { %v8376_v44 = vadd.f32 %v7963_v16, %v2124_v43 }
 0x1f4   : > { %v2067_v57 = vpop.f32.mrf.mxu0  ;;  %10596 = vst [vmem:[#allocation8_spill] sm:$0xff] %v8391_v31 }
 0x1f5   : > { %v2126_v61 = vadd.f32 %v2067_v57, %v1750_v52  ;;  %2318 = vrot.lane.b32.xlu1 %v2183_v47, %s6697_s24  ;;  %v1754_v52 = vadd.f32 %v1703_v14, %v10595_v51  ;;  %v2125_v47 = vadd.f32 %v2063_v23, %v1749_v55 }
 0x1f6   : > { %v2069_v59 = vpop.f32.mrf.mxu0 }
 0x1f7   : > { %v8356_v12 = vadd.f32 %v7963_v16, %v2126_v61  ;;  %v2127_v45 = vadd.f32 %v2069_v59, %v1751_v63  ;;  %v2185_v34 = vadd.f32 %v7977_v6, %v2125_v47 }
 0x1f8   : > { %v2073_v9 = vpop.f32.mrf.mxu0 }
 0x1f9   : > { %v2187_v54 = vadd.f32 %v7977_v6, %v2127_v45  ;;  %v2128_v42 = vadd.f32 %v2073_v9, %v1752_v48  ;;  %2324 = vrot.lane.b32.xlu0 %v8356_v12, %s6697_s24 }
 0x1fa   : > { %v2075_v60 = vpop.f32.mrf.mxu0 }
 0x1fb   : > { %v8368_v41 = vadd.f32 %v7963_v16, %v2128_v42  ;;  %v2129_v19 = vadd.f32 %v2075_v60, %v1753_v46  ;;  %2326 = vrot.lane.b32.xlu1 %v2187_v54, %s6697_s24 }
 0x1fc   : > { %v2079_v33 = vpop.f32.mrf.mxu0 }
 0x1fd   : > { %v2189_v62 = vadd.f32 %v7977_v6, %v2129_v19  ;;  %2328 = vrot.lane.b32.xlu0 %v8368_v41, %s6697_s24  ;;  %v2130_v30 = vadd.f32 %v2079_v33, %v1754_v52 }
 0x1fe   : > { %v2081_v7 = vpop.f32.mrf.mxu0 }
 0x1ff   : > { %2330 = vrot.lane.b32.xlu1 %v2189_v62, %s6697_s24  ;;  %v2131_v57 = vadd.f32 %v2081_v7, %v1755_v50  ;;  %v8383_v23 = vadd.f32 %v7963_v16, %v2130_v30  ;;  %v10597_v50 = vld [vmem:[#allocation6_spill] sm:$0xff] }
 0x201   : > { %2320 = vrot.lane.b32.xlu0 %v8376_v44, %s6697_s24  ;;  %v2191_v63 = vadd.f32 %v7977_v6, %v2131_v57 }
 0x203   : > { %2322 = vrot.lane.b32.xlu1 %v2185_v34, %s6697_s24 }
 0x205   : > { %2332 = vrot.lane.b32.xlu0 %v8383_v23, %s6697_s24 }
 0x207   : > { %2334 = vrot.lane.b32.xlu1 %v2191_v63, %s6697_s24  ;;  %s6701_s24 = smov 32  }
 0x217   : > { %v2241_v61 = vpop.permute.xlu0 %2240 }
 0x21b   : > { %v2243_v59 = vpop.permute.xlu0 %2242  ;;  %v2245_v16 = vpop.permute.xlu1 %2244 }
 0x21c   : > { %v2337_v40 = vsel %vm2336_vm5, %v2241_v61, %v2243_v59 }
 0x21d   : > { %v2385_v48 = vmax.f32 %v7988_v27, %v2337_v40 }
 0x21f   : > { %v2433_v6 = vcombine.high %v2385_v48, %v2385_v48  ;;  %v2440_v45 = vrot.slane %v2385_v48, %v8391_v31  ;;  %v2247_v29 = vpop.permute.xlu1 %2246  ;;  %v2249_v42 = vpop.permute.xlu0 %2248 }
 0x220   : > { %v2338_v9 = vsel %vm2336_vm5, %v2245_v16, %v2247_v29 }
 0x221   : > { %v2447_v22 = vrot.slane %v2433_v6, %v8391_v31  ;;  %v2448_v26 = vcombine.high %v2440_v45, %v2440_v45  ;;  %v6201_v14 = vrot.slane %v2440_v45, 9  ;;  %v2386_v60 = vmax.f32 %v8011_v13, %v2338_v9  ;;  %v3446_v13 = vld [vmem:[%s10409_s3 + $0xe8] sm:$0xff] }
 0x222   : > { %4105 = vmatprep.subr.mxu1 %v3446_v13 }
 0x223   : > { %v2449_v35 = vcombine.high %v2447_v22, %v2447_v22  ;;  %v6202_v15 = vrot.slane %v2448_v26, 9  ;;  %v6203_v46 = vrot.slane %v2447_v22, 9  ;;  %v3225_v54 = vmax.f32 %v2440_v45, %v6201_v14  ;;  %v2251_v55 = vpop.permute.xlu1 %2250 }
 0x224   : > { %v2339_v27 = vsel %vm2336_vm5, %v2249_v42, %v2251_v55  ;;  %v2450_v52 = vcombine.high %v2386_v60, %v2386_v60  ;;  %v2457_v47 = vrot.slane %v2386_v60, %v8391_v31 }
 0x225   : > { %v6204_v2 = vrot.slane %v2449_v35, 9  ;;  %v3226_v24 = vmax.f32 %v2448_v26, %v6202_v15  ;;  %v3227_v43 = vmax.f32 %v2447_v22, %v6203_v46  ;;  %v3321_v19 = vmax.f32 %v3225_v54, 0.0 }
 0x226   : > { %v2387_v62 = vmax.f32 %v8036_v18, %v2339_v27  ;;  %v2253_v18 = vpop.permute.xlu0 %2252  ;;  %v2464_v11 = vrot.slane %v2450_v52, %v8391_v31  ;;  %v2465_v59 = vcombine.high %v2457_v47, %v2457_v47  ;;  %v6205_v45 = vrot.slane %v2457_v47, 9 }
 0x227   : > { %v3228_v53 = vmax.f32 %v2449_v35, %v6204_v2  ;;  %v3322_v33 = vmax.f32 %v3226_v24, 0.0  ;;  %v3323_v51 = vmax.f32 %v3227_v43, 0.0  ;;  %v4002_v57 = vrot.slane %v3321_v19, %v10597_v50  ;;  %v2255_v63 = vpop.permute.xlu1 %2254 }
 0x228   : > { %v2467_v48 = vcombine.high %v2387_v62, %v2387_v62  ;;  %v2474_v6 = vrot.slane %v2387_v62, %v8391_v31  ;;  %v2466_v22 = vcombine.high %v2464_v11, %v2464_v11  ;;  %v6206_v26 = vrot.slane %v2465_v59, 9 }
 0x229   : > { %v3324_v7 = vmax.f32 %v3228_v53, 0.0  ;;  %v3545_v30 = vrot.slane %v3322_v33, %v10597_v50  ;;  %v3549_v34 = vrot.slane %v3323_v51, %v10597_v50  ;;  %v2340_v14 = vsel %vm2336_vm5, %v2253_v18, %v2255_v63 }
 0x22a   : > { %v8425_v9 = vrot.slane %v2467_v48, %v8391_v31  ;;  %v2482_v35 = vcombine.high %v2474_v6, %v2474_v6  ;;  %v2388_v15 = vmax.f32 %v8061_v37, %v2340_v14  ;;  %v2257_v46 = vpop.permute.xlu0 %2256  ;;  %v6207_v42 = vrot.slane %v2464_v11, 9 }
 0x22b   : > { %v8409_v32 = vrot.slane %v3324_v7, %v10597_v50  ;;  %v4031_v25 = vsel %vm3798_vm6, %v3545_v30, %v4002_v57  ;;  %v2259_v29 = vpop.permute.xlu1 %2258  ;;  %v3229_v55 = vmax.f32 %v2457_v47, %v6205_v45  ;;  %v6208_v27 = vrot.slane %v2466_v22, 9 }
 0x22c   : > { %v4032_v61 = vsel %vm3800_vm7, %v3549_v34, %v4031_v25  ;;  %10599 = vst [vmem:[#allocation28_spill] sm:$0xff] %v8425_v9  ;;  %v2341_v54 = vsel %vm2336_vm5, %v2257_v46, %v2259_v29  ;;  %v2484_v60 = vcombine.high %v2388_v15, %v2388_v15  ;;  %v3230_v2 = vmax.f32 %v2465_v59, %v6206_v26 }
 0x22d   : > { %v8416_v16 = vsel %vm3802_vm8, %v8409_v32, %v4032_v61  ;;  %v8420_v40 = vsel %vm3798_vm6, %v8409_v32, %v3549_v34  ;;  %v2491_v24 = vrot.slane %v2388_v15, %v8391_v31  ;;  %v6209_v43 = vrot.slane %v2474_v6, 9 }
 0x22e   : > { %10598 = vst [vmem:[#allocation7_spill] sm:$0xff] %v8420_v40  ;;  %v6210_v19 = vrot.slane %v2482_v35, 9  ;;  %v6211_v53 = vrot.slane %v8425_v9, 9  ;;  %v2389_v33 = vmax.f32 %v8092_v10, %v2341_v54  ;;  %v2498_v51 = vrot.slane %v2484_v60, %v8391_v31  ;;  %v2261_v18 = vpop.permute.xlu0 %2260 }
 0x22f   : > { %v2499_v52 = vcombine.high %v2491_v24, %v2491_v24  ;;  %v6213_v37 = vrot.slane %v2491_v24, 9  ;;  %v2263_v62 = vpop.permute.xlu1 %2262  ;;  %v3231_v13 = vmax.f32 %v2464_v11, %v6207_v42  ;;  %v3325_v7 = vmax.f32 %v3229_v55, 0.0 }
 0x230   : > { %v3232_v57 = vmax.f32 %v2466_v22, %v6208_v27  ;;  %v3326_v47 = vmax.f32 %v3230_v2, 0.0  ;;  %v3233_v61 = vmax.f32 %v2474_v6, %v6209_v43  ;;  %v3234_v59 = vmax.f32 %v2482_v35, %v6210_v19 }
 0x231   : > { %v6214_v63 = vrot.slane %v2499_v52, 9  ;;  %v3237_v25 = vmax.f32 %v2491_v24, %v6213_v37  ;;  %v3235_v48 = vmax.f32 %v8425_v9, %v6211_v53  ;;  %v2501_v45 = vcombine.high %v2389_v33, %v2389_v33 }
 0x232   : > { %v3799_v10 = vsel %vm3798_vm6, %v3549_v34, %v3545_v30  ;;  %v2500_v29 = vcombine.high %v2498_v51, %v2498_v51  ;;  %v3327_v11 = vmax.f32 %v3231_v13, 0.0  ;;  %v6215_v15 = vrot.slane %v2498_v51, 9  ;;  %v2265_v53 = vpop.permute.xlu0 %2264 }
 0x233   : > { %v3238_v26 = vmax.f32 %v2499_v52, %v6214_v63  ;;  %v3333_v14 = vmax.f32 %v3237_v25, 0.0  ;;  %v2508_v22 = vrot.slane %v2389_v33, %v8391_v31  ;;  %v2342_v46 = vsel %vm2336_vm5, %v2261_v18, %v2263_v62  ;;  %v2267_v30 = vpop.permute.xlu1 %2266 }
 0x234   : > { %v3328_v54 = vmax.f32 %v3232_v57, 0.0  ;;  %v8438_v6 = vrot.slane %v3325_v7, %v10597_v50  ;;  %v8441_v35 = vrot.slane %v3326_v47, %v10597_v50  ;;  %v3329_v34 = vmax.f32 %v3233_v61, 0.0 }
 0x235   : > { %v3334_v42 = vmax.f32 %v3238_v26, 0.0  ;;  %v3330_v55 = vmax.f32 %v3234_v59, 0.0  ;;  %v3331_v60 = vmax.f32 %v3235_v48, 0.0  ;;  %v2515_v27 = vrot.slane %v2501_v45, %v8391_v31 }
 0x236   : > { %10600 = vst [vmem:[#allocation29_spill] sm:$0xff] %v8438_v6  ;;  %v6216_v2 = vrot.slane %v2500_v29, 9  ;;  %v4006_v43 = vrot.slane %v3333_v14, %v10597_v50  ;;  %v2390_v19 = vmax.f32 %v8123_v58, %v2342_v46  ;;  %v8450_v33 = vrot.slane %v3327_v11, %v10597_v50 }
 0x237   : > { %v8445_v24 = vrot.slane %v3334_v42, %v10597_v50  ;;  %v3239_v52 = vmax.f32 %v2498_v51, %v6215_v15  ;;  %v2516_v37 = vcombine.high %v2508_v22, %v2508_v22  ;;  %v3801_v62 = vsel %vm3800_vm7, %v8409_v32, %v3799_v10  ;;  %v2271_v48 = vpop.permute.xlu1 %2270 }
 0x238   : > { %v8455_v13 = vrot.slane %v3328_v54, %v10597_v50  ;;  %v4559_v7 = vsel %vm3798_vm6, %v8438_v6, %v8409_v32  ;;  %v6217_v58 = vrot.slane %v2508_v22, 9  ;;  %v8465_v47 = vrot.slane %v3329_v34, %v10597_v50  ;;  %v2269_v54 = vpop.permute.xlu0 %2268 }
 0x239   : > { %v8462_v57 = vsel %vm3798_vm6, %v8445_v24, %v4006_v43  ;;  %v8468_v51 = vrot.slane %v3330_v55, %v10597_v50  ;;  %v8471_v63 = vrot.slane %v3331_v60, %v10597_v50  ;;  %v2517_v25 = vcombine.high %v2515_v27, %v2515_v27 }
 0x23a   : > { %10601 = vst [vmem:[#allocation30_spill] sm:$0xff] %v8455_v13  ;;  %10602 = vst [vmem:[#allocation31_spill] sm:$0xff] %v8465_v47  ;;  %v8473_v18 = vmax.f32 %v2500_v29, %v6216_v2  ;;  %v6219_v61 = vrot.slane %v2515_v27, 9  ;;  %v2518_v59 = vcombine.high %v2390_v19, %v2390_v19  ;;  %v3803_v32 = vsel %vm3802_vm8, %v8438_v6, %v3801_v62  ;;  %v3444_v62 = vld [vmem:[%s10409_s3 + $0xd8] sm:$0xff] }
 0x23b   : > { %10603 = vst [vmem:[#allocation32_spill] sm:$0xff] %v8468_v51  ;;  %10604 = vst [vmem:[#allocation13_spill] sm:$0xff] %v8471_v63  ;;  %v3335_v45 = vmax.f32 %v3239_v52, 0.0  ;;  %v6218_v10 = vrot.slane %v2516_v37, 9  ;;  %v3805_v26 = vsel %vm3804_vm9, %v8441_v35, %v3803_v32  ;;  %v2343_v14 = vsel %vm2336_vm5, %v2265_v53, %v2267_v30 }
 0x23c   : > { %v8480_v11 = vmax.f32 %v2508_v22, %v6217_v58  ;;  %v2525_v15 = vrot.slane %v2390_v19, %v8391_v31  ;;  %v3807_v29 = vsel %vm3806_vm10, %v8450_v33, %v3805_v26  ;;  %v2391_v46 = vmax.f32 %v8148_v20, %v2343_v14  ;;  %v3445_v20 = vld [vmem:[%s10409_s3 + $0xe0] sm:$0xff] }
 0x23d   : > { %v6220_v42 = vrot.slane %v2517_v25, 9  ;;  %v3809_v34 = vsel %vm3808_vm11, %v8455_v13, %v3807_v29  ;;  %v4560_v55 = vsel %vm3800_vm7, %v8441_v35, %v4559_v7  ;;  %v2344_v60 = vsel %vm2336_vm5, %v2269_v54, %v2271_v48  ;;  %v3443_v48 = vld [vmem:[%s10409_s3 + $0xd0] sm:$0xff] }
 0x23e   : > { %v3336_v22 = vmax.f32 %v8473_v18, 0.0  ;;  %v8492_v30 = vmax.f32 %v2515_v27, %v6219_v61  ;;  %v3811_v2 = vsel %vm3810_vm12, %v8465_v47, %v3809_v34  ;;  %v2535_v43 = vcombine.high %v2391_v46, %v2391_v46 }
 0x23f   : > { %v8500_v19 = vrot.slane %v3335_v45, %v10597_v50  ;;  %6327 = vmatmul.mubr.msk.f32.vlgmr.msra.gmra.mxu1 %vm3861_vm13, %v3811_v2  ;;  %v2542_v53 = vrot.slane %v2391_v46, %v8391_v31  ;;  %v4561_v52 = vsel %vm3802_vm8, %v8450_v33, %v4560_v55  ;;  %v2392_v27 = vmax.f32 %v8179_v1, %v2344_v60  ;;  %v3441_v55 = vld [vmem:[%s10409_s3 + $0xc0] sm:$0xff] }
 0x240   : > { %v8511_v7 = vrot.slane %v2518_v59, %v8391_v31  ;;  %v2533_v58 = vcombine.high %v2525_v15, %v2525_v15  ;;  %v2549_v18 = vrot.slane %v2535_v43, %v8391_v31  ;;  %v4562_v61 = vsel %vm3804_vm9, %v8455_v13, %v4561_v52  ;;  %4106 = vmatpush1.msra.mxu1 %v3445_v20  ;;  %v3442_v59 = vld [vmem:[%s10409_s3 + $0xc8] sm:$0xff] }
 0x241   : > { %v10606_v32 = vmov 0.0   ;;  %v6221_v1 = vrot.slane %v2525_v15, 9  ;;  %v2550_v45 = vcombine.high %v2542_v53, %v2542_v53  ;;  %v6225_v26 = vrot.slane %v2542_v53, 9  ;;  %4107 = vmatprep.subr.mxu1 %v3444_v62  ;;  %v2275_v62 = vpop.permute.xlu1 %2274 }
 0x242   : > { %10605 = vst [vmem:[#allocation12_spill] sm:$0xff] %v8511_v7  ;;  %3948 = vmatprep.mubr.f32.mxu1 %v10606_v32  ;;  %v4563_v14 = vsel %vm3806_vm10, %v8465_v47, %v4562_v61  ;;  %v3242_v29 = vmax.f32 %v2516_v37, %v6218_v10  ;;  %v8525_v46 = vmax.f32 %v2517_v25, %v6220_v42  ;;  %v3440_v37 = vld [vmem:[%s10409_s3 + $0xb8] sm:$0xff]  ;;  %v6222_v25 = vrot.slane %v2533_v58, 9 }
 0x243   : > { %v4564_v54 = vsel %vm3808_vm11, %v8468_v51, %v4563_v14  ;;  %v2552_v34 = vcombine.high %v2392_v27, %v2392_v27  ;;  %v2551_v60 = vcombine.high %v2549_v18, %v2549_v18  ;;  %v6226_v2 = vrot.slane %v2550_v45, 9  ;;  %4108 = vmatpush1.msra.mxu1 %v3443_v48 }
 0x244   : > { %v3249_v43 = vmax.f32 %v2542_v53, %v6225_v26  ;;  %v4565_v20 = vsel %vm3810_vm12, %v8471_v63, %v4564_v54  ;;  %v6223_v10 = vrot.slane %v8511_v7, 9  ;;  %v6227_v42 = vrot.slane %v2549_v18, 9  ;;  %4109 = vmatprep.subr.mxu1 %v3442_v59  ;;  %v3439_v53 = vld [vmem:[%s10409_s3 + $0xb0] sm:$0xff]  ;;  %v3438_v54 = vld [vmem:[%s10409_s3 + $0xa8] sm:$0xff]  ;;  %v2273_v63 = vpop.permute.xlu0 %2272 }
 0x245   : > { %6411 = vmatmul.mubr.msk.f32.vlgmr.msra.gmra.mxu0 %vm3861_vm13, %v4565_v20  ;;  %v2559_v52 = vrot.slane %v2392_v27, %v8391_v31  ;;  %v3337_v61 = vmax.f32 %v8480_v11, 0.0  ;;  %v3245_v48 = vmax.f32 %v2525_v15, %v6221_v1  ;;  %v3250_v26 = vmax.f32 %v2550_v45, %v6226_v2  ;;  %4110 = vmatpush1.msra.mxu1 %v3441_v55  ;;  %v3437_v11 = vld [vmem:[%s10409_s3 + $0xa0] sm:$0xff] }
 0x246   : > { %v3345_v14 = vmax.f32 %v3249_v43, 0.0  ;;  %4701 = vmatprep.mubr.f32.mxu0 %v10606_v32  ;;  %v8549_v27 = vrot.slane %v3336_v22, %v10597_v50  ;;  %v3338_v59 = vmax.f32 %v3242_v29, 0.0  ;;  %v3339_v20 = vmax.f32 %v8492_v30, 0.0  ;;  %4111 = vmatprep.subr.mxu1 %v3440_v37  ;;  %v3436_v22 = vld [vmem:[%s10409_s3 + $0x98] sm:$0xff] }
 0x247   : > { %v2566_v8 = vrot.slane %v2552_v34, %v8391_v31  ;;  %v3340_v15 = vmax.f32 %v8525_v46, 0.0  ;;  %v6228_v1 = vrot.slane %v2551_v60, 9  ;;  %v3346_v45 = vmax.f32 %v3250_v26, 0.0  ;;  %4112 = vmatpush1.msra.mxu1 %v3439_v53  ;;  %v3435_v46 = vld [vmem:[%s10409_s3 + $0x90] sm:$0xff]  ;;  %v2279_v53 = vpop.permute.xlu1 %2278 }
 0x248   : > { %v2345_v55 = vsel %vm2336_vm5, %v2273_v63, %v2275_v62  ;;  %v8561_v30 = vmax.f32 %v2533_v58, %v6222_v25  ;;  %v8564_v29 = vmax.f32 %v8511_v7, %v6223_v10  ;;  %v3251_v34 = vmax.f32 %v2549_v18, %v6227_v42  ;;  %4113 = vmatprep.subr.mxu1 %v3438_v54  ;;  %v3434_v58 = vld [vmem:[%s10409_s3 + $0x88] sm:$0xff] }
 0x249   : > { %v2567_v2 = vcombine.high %v2559_v52, %v2559_v52  ;;  %v3341_v43 = vmax.f32 %v3245_v48, 0.0  ;;  %v8570_v63 = vrot.slane %v3346_v45, %v10597_v50  ;;  %v4010_v37 = vrot.slane %v3345_v14, %v10597_v50  ;;  %4114 = vmatpush1.msra.mxu1 %v3437_v11  ;;  %v3433_v48 = vld [vmem:[%s10409_s3 + $0x80] sm:$0xff] }
 0x24a   : > { %v6229_v62 = vrot.slane %v2559_v52, 9  ;;  %v8577_v18 = vrot.slane %v3337_v61, %v10597_v50  ;;  %v8580_v25 = vrot.slane %v3339_v20, %v10597_v50  ;;  %v2568_v10 = vcombine.high %v2566_v8, %v2566_v8  ;;  %4115 = vmatprep.subr.mxu1 %v3436_v22 }
 0x24b   : > { %v2393_v42 = vmax.f32 %v8192_v4, %v2345_v55  ;;  %v8587_v26 = vrot.slane %v3338_v59, %v10597_v50  ;;  %v8589_v14 = vmax.f32 %v2551_v60, %v6228_v1  ;;  %v8593_v61 = vsel %vm3798_vm6, %v8570_v63, %v4010_v37  ;;  %4116 = vmatpush1.msra.mxu1 %v3435_v46  ;;  %v3432_v4 = vld [vmem:[%s10409_s3 + $0x78] sm:$0xff]  ;;  %v2277_v55 = vpop.permute.xlu0 %2276  ;;  %v3431_v60 = vld [vmem:[%s10409_s3 + $0x70] sm:$0xff] }
 0x24c   : > { %10607 = vst [vmem:[#allocation9_spill] sm:$0xff] %v8580_v25  ;;  %v6231_v54 = vrot.slane %v2566_v8, 9  ;;  %v8599_v20 = vrot.slane %v3340_v15, %v10597_v50  ;;  %v3347_v45 = vmax.f32 %v3251_v34, 0.0  ;;  %v6230_v59 = vrot.slane %v2567_v2, 9  ;;  %4117 = vmatprep.subr.mxu1 %v3434_v58  ;;  %v3430_v34 = vld [vmem:[%s10409_s3 + $0x68] sm:$0xff] }
 0x24d   : > { %10608 = vst [vmem:[#allocation10_spill] sm:$0xff] %v8587_v26  ;;  %v8606_v22 = vmax.f32 %v2559_v52, %v6229_v62  ;;  %v8609_v46 = vrot.slane %v3341_v43, %v10597_v50  ;;  %v3812_v15 = vsel %vm3798_vm6, %v8500_v19, %v8445_v24  ;;  %4118 = vmatpush1.msra.mxu1 %v3433_v48  ;;  %v6232_v37 = vrot.slane %v2568_v10, 9  ;;  %v3429_v43 = vld [vmem:[%s10409_s3 + $0x60] sm:$0xff] }
 0x24e   : > { %10609 = vst [vmem:[#allocation33_spill] sm:$0xff] %v8599_v20  ;;  %v2569_v58 = vcombine.high %v2393_v42, %v2393_v42  ;;  %v3813_v11 = vsel %vm3800_vm7, %v8549_v27, %v3812_v15  ;;  %v2346_v52 = vsel %vm2336_vm5, %v2277_v55, %v2279_v53  ;;  %4119 = vmatprep.subr.mxu1 %v3432_v4  ;;  %v3428_v15 = vld [vmem:[%s10409_s3 + $0x58] sm:$0xff]  ;;  %v10612_v40 = vmax.f32 %v8561_v30, 0.0 }
 0x24f   : > { %10610 = vst [vmem:[#allocation15_spill] sm:$0xff] %v8609_v46  ;;  %v8624_v24 = vmax.f32 %v2566_v8, %v6231_v54  ;;  %v3814_v48 = vsel %vm3802_vm8, %v8577_v18, %v3813_v11  ;;  %v2394_v1 = vmax.f32 %v8208_v21, %v2346_v52  ;;  %4120 = vmatpush1.msra.mxu1 %v3431_v60  ;;  %v2283_v54 = vpop.permute.xlu1 %2282  ;;  %v3427_v21 = vld [vmem:[%s10409_s3 + $0x50] sm:$0xff]  ;;  %v2281_v52 = vpop.permute.xlu0 %2280 }
 0x250   : > { %v8633_v53 = vrot.slane %v3347_v45, %v10597_v50  ;;  %v8635_v4 = vmax.f32 %v2567_v2, %v6230_v59  ;;  %v2576_v55 = vrot.slane %v2393_v42, %v8391_v31  ;;  %v3815_v8 = vsel %vm3804_vm9, %v8587_v26, %v3814_v48  ;;  %4121 = vmatprep.subr.mxu1 %v3430_v34 }
 0x251   : > { %v3816_v60 = vsel %vm3806_vm10, %v8580_v25, %v3815_v8  ;;  %v2586_v45 = vcombine.high %v2394_v1, %v2394_v1  ;;  %v2593_v2 = vrot.slane %v2394_v1, %v8391_v31  ;;  %4122 = vmatpush1.msra.mxu1 %v3429_v43  ;;  %v8647_v59 = vmax.f32 %v2568_v10, %v6232_v37  ;;  %v3426_v8 = vld [vmem:[%s10409_s3 + $0x48] sm:$0xff]  ;;  %v3425_v43 = vld [vmem:[%s10409_s3 + $0x40] sm:$0xff] }
 0x252   : > { %v8650_v42 = vrot.slane %v2569_v58, %v8391_v31  ;;  %v3817_v34 = vsel %vm3808_vm11, %v8599_v20, %v3816_v60  ;;  %v4566_v48 = vsel %vm3798_vm6, %v8577_v18, %v8549_v27  ;;  %4123 = vmatprep.subr.mxu1 %v3428_v15  ;;  %v2584_v11 = vcombine.high %v2576_v55, %v2576_v55 }
 0x253   : > { %v3818_v10 = vsel %vm3810_vm12, %v8609_v46, %v3817_v34  ;;  %v2600_v1 = vrot.slane %v2586_v45, %v8391_v31  ;;  %v2601_v37 = vcombine.high %v2593_v2, %v2593_v2  ;;  %v6237_v58 = vrot.slane %v2593_v2, 9  ;;  %4124 = vmatpush1.msra.mxu1 %v3427_v21  ;;  %v3424_v45 = vld [vmem:[%s10409_s3 + $0x38] sm:$0xff]  ;;  %v2287_v51 = vpop.permute.xlu1 %2286 }
 0x254   : > { %10611 = vst [vmem:[#allocation14_spill] sm:$0xff] %v8650_v42  ;;  %6328 = vmatmul.mubr.msk.f32.gmra.mxu1 %vm3861_vm13, %v3818_v10  ;;  %v4567_v15 = vsel %vm3800_vm7, %v8587_v26, %v4566_v48  ;;  %v2347_v62 = vsel %vm2336_vm5, %v2281_v52, %v2283_v54  ;;  %v6233_v34 = vrot.slane %v2576_v55, 9  ;;  %4125 = vmatprep.subr.mxu1 %v3426_v8  ;;  %v3423_v10 = vld [vmem:[%s10409_s3 + $0x30] sm:$0xff]  ;;  %v6235_v60 = vrot.slane %v8650_v42, 9 }
 0x255   : > { %v2602_v21 = vcombine.high %v2600_v1, %v2600_v1  ;;  %v6238_v7 = vrot.slane %v2601_v37, 9  ;;  %v3261_v9 = vmax.f32 %v2593_v2, %v6237_v58  ;;  %3954 = vmatprep.mubr.f32.mxu1 %v10606_v32  ;;  %v6239_v48 = vrot.slane %v2600_v1, 9  ;;  %4126 = vmatpush1.msra.mxu1 %v3425_v43  ;;  %v3422_v2 = vld [vmem:[%s10409_s3 + $0x28] sm:$0xff] }
 0x256   : > { %v4568_v54 = vsel %vm3802_vm8, %v8580_v25, %v4567_v15  ;;  %v2395_v52 = vmax.f32 %v8224_v3, %v2347_v62  ;;  %v8688_v13 = vrot.slane %v10612_v40, %v10597_v50  ;;  %4127 = vmatprep.subr.mxu1 %v3424_v45  ;;  %v3421_v15 = vld [vmem:[%s10409_s3 + $0x20] sm:$0xff]  ;;  %v10614_v3 = vmax.f32 %v8564_v29, 0.0  ;;  %v3420_v40 = vld [vmem:[%s10409_s3 + $0x18] sm:$0xff]  ;;  %v3419_v29 = vld [vmem:[%s10409_s3 + $0x10] sm:$0xff] }
 0x257   : > { %v6240_v58 = vrot.slane %v2602_v21, 9  ;;  %v3262_v8 = vmax.f32 %v2601_v37, %v6238_v7  ;;  %v3357_v47 = vmax.f32 %v3261_v9, 0.0  ;;  %v4569_v43 = vsel %vm3804_vm9, %v8599_v20, %v4568_v54  ;;  %v2285_v37 = vpop.permute.xlu0 %2284  ;;  %4128 = vmatpush1.msra.mxu1 %v3423_v10 }
 0x258   : > { %10613 = vst [vmem:[#allocation11_spill] sm:$0xff] %v8688_v13  ;;  %v8696_v62 = vrot.slane %v10614_v3, %v10597_v50  ;;  %v2603_v7 = vcombine.high %v2395_v52, %v2395_v52  ;;  %v2610_v9 = vrot.slane %v2395_v52, %v8391_v31  ;;  %v6234_v30 = vrot.slane %v2584_v11, 9  ;;  %4129 = vmatprep.subr.mxu1 %v3422_v2 }
 0x259   : > { %v3257_v45 = vmax.f32 %v2576_v55, %v6233_v34  ;;  %v3358_v25 = vmax.f32 %v3262_v8, 0.0  ;;  %v2348_v26 = vsel %vm2336_vm5, %v2285_v37, %v2287_v51  ;;  %v3263_v54 = vmax.f32 %v2600_v1, %v6239_v48  ;;  %4130 = vmatpush1.msra.mxu1 %v3421_v15  ;;  %v3418_v1 = vld [vmem:[%s10409_s3 + $0x8] sm:$0xff] }
 0x25a   : > { %10615 = vst [vmem:[#allocation35_spill] sm:$0xff] %v8696_v62  ;;  %v3264_v3 = vmax.f32 %v2602_v21, %v6240_v58  ;;  %v4570_v52 = vsel %vm3806_vm10, %v8609_v46, %v4569_v43  ;;  %v2617_v10 = vrot.slane %v2603_v7, %v8391_v31  ;;  %v4014_v55 = vrot.slane %v3357_v47, %v10597_v50  ;;  %v3417_v58 = vld [vmem:[%s10409_s3] sm:$0xff]  ;;  %v2291_v7 = vpop.permute.xlu1 %2290 }
 0x25b   : > { %v8712_v20 = vrot.slane %v3358_v25, %v10597_v50  ;;  %v4571_v51 = vsel %vm3808_vm11, %v8688_v13, %v4570_v52  ;;  %v2618_v34 = vcombine.high %v2610_v9, %v2610_v9  ;;  %4131 = vmatprep.subr.mxu1 %v3420_v40  ;;  %v10616_v21 = vmax.f32 %v8589_v14, 0.0 }
 0x25c   : > { %v4572_v25 = vsel %vm3810_vm12, %v8696_v62, %v4571_v51  ;;  %v6241_v2 = vrot.slane %v2610_v9, 9  ;;  %v2396_v47 = vmax.f32 %v8237_v36, %v2348_v26  ;;  %4132 = vmatpush1.msra.mxu1 %v3419_v29  ;;  %v3350_v8 = vmax.f32 %v8635_v4, 0.0  ;;  %v6372_v36 = vld [vmem:[%s10409_s3 + $0x2c8] sm:$0xff]  ;;  %v2289_v51 = vpop.permute.xlu0 %2288 }
 0x25d   : > { %v8723_v48 = vrot.slane %v10616_v21, %v10597_v50  ;;  %v3352_v15 = vmax.f32 %v8647_v59, 0.0  ;;  %v8734_v43 = vmax.f32 %v8650_v42, %v6235_v60  ;;  %v8738_v14 = vsel %vm3798_vm6, %v8712_v20, %v4014_v55  ;;  %6412 = vmatmul.mubr.msk.f32.gmra.mxu0 %vm3861_vm13, %v4572_v25  ;;  %4133 = vmatprep.subr.mxu1 %v3418_v1 }
 0x25e   : > { %v3258_v26 = vmax.f32 %v2584_v11, %v6234_v30  ;;  %v3353_v37 = vmax.f32 %v3257_v45, 0.0  ;;  %v3359_v40 = vmax.f32 %v3263_v54, 0.0  ;;  %v2619_v4 = vcombine.high %v2617_v10, %v2617_v10  ;;  %4707 = vmatprep.mubr.f32.mxu0 %v10606_v32  ;;  %4134 = vmatpush1.msra.mxu1 %v3417_v58 }
 0x25f   : > { %v10617_v59 = vmax.f32 %v8606_v22, 0.0  ;;  %v3360_v29 = vmax.f32 %v3264_v3, 0.0  ;;  %v6242_v52 = vrot.slane %v2618_v34, 9  ;;  %v6243_v55 = vrot.slane %v2617_v10, 9  ;;  %4361 = vmatprep.subr.mxu1 %v6372_v36 }
 0x260   : > { %v10618_v21 = vmax.f32 %v8624_v24, 0.0  ;;  %v8755_v30 = vmax.f32 %v2610_v9, %v6241_v2  ;;  %v2620_v45 = vcombine.high %v2396_v47, %v2396_v47  ;;  %v3819_v54 = vsel %vm3798_vm6, %v8633_v53, %v8570_v63 }
 0x261   : > { %v8748_v60 = vrot.slane %v10617_v59, %v10597_v50  ;;  %v8761_v22 = vrot.slane %v3350_v8, %v10597_v50  ;;  %v8764_v3 = vrot.slane %v3352_v15, %v10597_v50  ;;  %v3355_v1 = vmax.f32 %v8734_v43, 0.0 }
 0x262   : > { %v8753_v11 = vrot.slane %v10618_v21, %v10597_v50  ;;  %v8768_v24 = vrot.slane %v2396_v47, %v8391_v31  ;;  %v3354_v25 = vmax.f32 %v3258_v26, 0.0  ;;  %v8771_v9 = vrot.slane %v3359_v40, %v10597_v50  ;;  %v2295_v47 = vpop.permute.xlu1 %2294 }
 0x263   : > { %10620 = vst [vmem:[#allocation16_spill] sm:$0xff] %v8761_v22  ;;  %10621 = vst [vmem:[#allocation34_spill] sm:$0xff] %v8764_v3  ;;  %v6244_v2 = vrot.slane %v2619_v4, 9  ;;  %v8774_v58 = vrot.slane %v3353_v37, %v10597_v50  ;;  %v8777_v63 = vrot.slane %v3360_v29, %v10597_v50  ;;  %v8779_v8 = vmax.f32 %v2618_v34, %v6242_v52  ;;  %v2293_v52 = vpop.permute.xlu0 %2292 }
 0x264   : > { %10619 = vst [vmem:[#allocation17_spill] sm:$0xff] %v8753_v11  ;;  %v8781_v15 = vmax.f32 %v2617_v10, %v6243_v55  ;;  %v3820_v43 = vsel %vm3800_vm7, %v8723_v48, %v3819_v54  ;;  %v8787_v26 = vrot.slane %v2620_v45, %v8391_v31  ;;  %v2349_v40 = vsel %vm2336_vm5, %v2289_v51, %v2291_v7 }
 0x265   : > { %10622 = vst [vmem:[#allocation37_spill] sm:$0xff] %v8774_v58  ;;  %10623 = vst [vmem:[#allocation19_spill] sm:$0xff] %v8777_v63  ;;  %v3821_v37 = vsel %vm3802_vm8, %v8748_v60, %v3820_v43  ;;  %v2635_v34 = vcombine.high %v8768_v24, %v8768_v24  ;;  %v6245_v10 = vrot.slane %v8768_v24, 9  ;;  %v2397_v29 = vmax.f32 %v8250_v28, %v2349_v40 }
 0x266   : > { %10624 = vst [vmem:[#allocation18_spill] sm:$0xff] %v8787_v26  ;;  %v3822_v59 = vsel %vm3804_vm9, %v8761_v22, %v3821_v37  ;;  %v8798_v55 = vmax.f32 %v2619_v4, %v6244_v2  ;;  %v4573_v7 = vsel %vm3798_vm6, %v8748_v60, %v8723_v48  ;;  %v2350_v51 = vsel %vm2336_vm5, %v2293_v52, %v2295_v47 }
 0x267   : > { %v3823_v21 = vsel %vm3806_vm10, %v8753_v11, %v3822_v59  ;;  %v2637_v54 = vcombine.high %v2397_v29, %v2397_v29  ;;  %v2644_v43 = vrot.slane %v2397_v29, %v8391_v31  ;;  %v4574_v28 = vsel %vm3800_vm7, %v8761_v22, %v4573_v7  ;;  %v2297_v36 = vpop.permute.xlu0 %2296 }
 0x268   : > { %v3824_v45 = vsel %vm3808_vm11, %v8764_v3, %v3823_v21  ;;  %v8814_v2 = vrot.slane %v3354_v25, %v10597_v50  ;;  %v4575_v37 = vsel %vm3802_vm8, %v8753_v11, %v4574_v28  ;;  %v2398_v47 = vmax.f32 %v8263_v49, %v2350_v51  ;;  %v2299_v21 = vpop.permute.xlu1 %2298 }
 0x269   : > { %v3825_v4 = vsel %vm3810_vm12, %v8774_v58, %v3824_v45  ;;  %v2651_v40 = vrot.slane %v2637_v54, %v8391_v31  ;;  %v2652_v59 = vcombine.high %v2644_v43, %v2644_v43  ;;  %v6249_v29 = vrot.slane %v2644_v43, 9 }
 0x26a   : > { %10625 = vst [vmem:[#allocation36_spill] sm:$0xff] %v8814_v2  ;;  %6329 = vmatmul.mubr.msk.f32.gmra.mxu1 %vm3861_vm13, %v3825_v4  ;;  %v4576_v52 = vsel %vm3804_vm9, %v8764_v3, %v4575_v37  ;;  %v8824_v7 = vrot.slane %v3355_v1, %v10597_v50  ;;  %v2654_v45 = vcombine.high %v2398_v47, %v2398_v47  ;;  %v3362_v62 = vmax.f32 %v8779_v8, 0.0 }
 0x26b   : > { %v4577_v25 = vsel %vm3806_vm10, %v8774_v58, %v4576_v52  ;;  %v2661_v28 = vrot.slane %v2398_v47, %v8391_v31  ;;  %3960 = vmatprep.mubr.f32.mxu1 %v10606_v32  ;;  %v2653_v49 = vcombine.high %v2651_v40, %v2651_v40  ;;  %v6250_v51 = vrot.slane %v2652_v59, 9 }
 0x26c   : > { %10626 = vst [vmem:[#allocation39_spill] sm:$0xff] %v8824_v7  ;;  %v6251_v54 = vrot.slane %v2651_v40, 9  ;;  %v3273_v4 = vmax.f32 %v2644_v43, %v6249_v29  ;;  %v4578_v37 = vsel %vm3808_vm11, %v8814_v2, %v4577_v25  ;;  %v2668_v1 = vrot.slane %v2654_v45, %v8391_v31  ;;  %v2303_v45 = vpop.permute.xlu1 %2302 }
 0x26d   : > { %v2669_v42 = vcombine.high %v2661_v28, %v2661_v28  ;;  %v6246_v13 = vrot.slane %v2635_v34, 9  ;;  %v3274_v52 = vmax.f32 %v2652_v59, %v6250_v51  ;;  %v2351_v47 = vsel %vm2336_vm5, %v2297_v36, %v2299_v21 }
 0x26e   : > { %v3369_v58 = vmax.f32 %v3273_v4, 0.0  ;;  %v6247_v46 = vrot.slane %v8787_v26, 9  ;;  %v6252_v3 = vrot.slane %v2653_v49, 9  ;;  %v4579_v43 = vsel %vm3810_vm12, %v8824_v7, %v4578_v37  ;;  %v2301_v37 = vpop.permute.xlu0 %2300 }
 0x26f   : > { %v2670_v29 = vcombine.high %v2668_v1, %v2668_v1  ;;  %v3275_v11 = vmax.f32 %v2651_v40, %v6251_v54  ;;  %v3370_v8 = vmax.f32 %v3274_v52, 0.0  ;;  %6413 = vmatmul.mubr.msk.f32.gmra.mxu0 %vm3861_vm13, %v4579_v43  ;;  %v6253_v25 = vrot.slane %v2661_v28, 9 }
 0x270   : > { %v6254_v2 = vrot.slane %v2669_v42, 9  ;;  %v3363_v22 = vmax.f32 %v8781_v15, 0.0  ;;  %v3364_v59 = vmax.f32 %v8798_v55, 0.0  ;;  %v3269_v36 = vmax.f32 %v8768_v24, %v6245_v10  ;;  %4713 = vmatprep.mubr.f32.mxu0 %v10606_v32 }
 0x271   : > { %v2399_v21 = vmax.f32 %v8276_v5, %v2351_v47  ;;  %v3270_v51 = vmax.f32 %v2635_v34, %v6246_v13  ;;  %v8845_v4 = vrot.slane %v3370_v8, %v10597_v50  ;;  %v4018_v40 = vrot.slane %v3369_v58, %v10597_v50 }
 0x272   : > { %v6255_v54 = vrot.slane %v2668_v1, 9  ;;  %v10627_v52 = vmax.f32 %v8755_v30, 0.0  ;;  %v3271_v55 = vmax.f32 %v8787_v26, %v6247_v46  ;;  %v3276_v24 = vmax.f32 %v2653_v49, %v6252_v3 }
 0x273   : > { %v6256_v10 = vrot.slane %v2670_v29, 9  ;;  %v3371_v5 = vmax.f32 %v3275_v11, 0.0  ;;  %v8856_v13 = vsel %vm3798_vm6, %v8845_v4, %v4018_v40  ;;  %v8858_v34 = vmax.f32 %v2661_v28, %v6253_v25  ;;  %v2307_v28 = vpop.permute.xlu1 %2306 }
 0x274   : > { %v8851_v15 = vrot.slane %v10627_v52, %v10597_v50  ;;  %10629 = vst [vmem:[#allocation23_spill] sm:$0xff] %v8856_v13  ;;  %v8860_v47 = vmax.f32 %v2669_v42, %v6254_v2  ;;  %v8863_v58 = vrot.slane %v3362_v62, %v10597_v50  ;;  %v8866_v30 = vrot.slane %v3363_v22, %v10597_v50 }
 0x275   : > { %v3365_v43 = vmax.f32 %v3269_v36, 0.0  ;;  %v2671_v8 = vcombine.high %v2399_v21, %v2399_v21  ;;  %v8869_v46 = vrot.slane %v3364_v59, %v10597_v50  ;;  %v3366_v11 = vmax.f32 %v3270_v51, 0.0 }
 0x276   : > { %10628 = vst [vmem:[#allocation38_spill] sm:$0xff] %v8851_v15  ;;  %10630 = vst [vmem:[#allocation22_spill] sm:$0xff] %v8863_v58  ;;  %v8871_v3 = vmax.f32 %v2668_v1, %v6255_v54  ;;  %v2678_v49 = vrot.slane %v2399_v21, %v8391_v31  ;;  %v3367_v25 = vmax.f32 %v3271_v55, 0.0  ;;  %v3372_v42 = vmax.f32 %v3276_v24, 0.0  ;;  %v2305_v21 = vpop.permute.xlu0 %2304 }
 0x277   : > { %10631 = vst [vmem:[#allocation43_spill] sm:$0xff] %v8866_v30  ;;  %10632 = vst [vmem:[#allocation25_spill] sm:$0xff] %v8869_v46  ;;  %v8874_v2 = vmax.f32 %v2670_v29, %v6256_v10  ;;  %v3826_v62 = vsel %vm3798_vm6, %v8771_v9, %v8712_v20  ;;  %v8880_v22 = vrot.slane %v3371_v5, %v10597_v50  ;;  %v3373_v59 = vmax.f32 %v8858_v34, 0.0 }
 0x278   : > { %v3827_v1 = vsel %vm3800_vm7, %v8777_v63, %v3826_v62  ;;  %v8887_v51 = vrot.slane %v2671_v8, %v8391_v31  ;;  %v8890_v29 = vrot.slane %v3365_v43, %v10597_v50  ;;  %v2352_v40 = vsel %vm2336_vm5, %v2301_v37, %v2303_v45 }
 0x279   : > { %v3828_v20 = vsel %vm3802_vm8, %v8851_v15, %v3827_v1  ;;  %v2686_v52 = vcombine.high %v2678_v49, %v2678_v49  ;;  %v2400_v24 = vmax.f32 %v8290_v38, %v2352_v40  ;;  %v8900_v10 = vrot.slane %v3372_v42, %v10597_v50  ;;  %v2311_v38 = vpop.permute.xlu1 %2310 }
 0x27a   : > { %10633 = vst [vmem:[#allocation24_spill] sm:$0xff] %v8887_v51  ;;  %10634 = vst [vmem:[#allocation42_spill] sm:$0xff] %v8890_v29  ;;  %v3829_v55 = vsel %vm3804_vm9, %v8863_v58, %v3828_v20  ;;  %v4580_v45 = vsel %vm3798_vm6, %v8851_v15, %v8777_v63  ;;  %v6257_v37 = vrot.slane %v2678_v49, 9  ;;  %v6259_v42 = vrot.slane %v8887_v51, 9  ;;  %v2309_v54 = vpop.permute.xlu0 %2308 }
 0x27b   : > { %v3830_v34 = vsel %vm3806_vm10, %v8866_v30, %v3829_v55  ;;  %v2688_v8 = vcombine.high %v2400_v24, %v2400_v24  ;;  %v2695_v62 = vrot.slane %v2400_v24, %v8391_v31  ;;  %v4581_v20 = vsel %vm3800_vm7, %v8863_v58, %v4580_v45 }
 0x27c   : > { %v3831_v43 = vsel %vm3808_vm11, %v8869_v46, %v3830_v34  ;;  %v2353_v40 = vsel %vm2336_vm5, %v2305_v21, %v2307_v28  ;;  %v6258_v55 = vrot.slane %v2686_v52, 9  ;;  %v4582_v24 = vsel %vm3802_vm8, %v8866_v30, %v4581_v20 }
 0x27d   : > { %v3832_v1 = vsel %vm3810_vm12, %v8890_v29, %v3831_v43  ;;  %v2702_v5 = vrot.slane %v2688_v8, %v8391_v31  ;;  %v2703_v34 = vcombine.high %v2695_v62, %v2695_v62  ;;  %v8922_v36 = vrot.slane %v3366_v11, %v10597_v50  ;;  %v2315_v63 = vpop.permute.xlu1 %2314 }
 0x27e   : > { %6330 = vmatmul.mubr.msk.f32.gmra.mxu1 %vm3861_vm13, %v3832_v1  ;;  %v4583_v43 = vsel %vm3804_vm9, %v8869_v46, %v4582_v24  ;;  %v2401_v45 = vmax.f32 %v8305_v17, %v2353_v40  ;;  %v2354_v28 = vsel %vm2336_vm5, %v2309_v54, %v2311_v38  ;;  %v6261_v1 = vrot.slane %v2695_v62, 9 }
 0x27f   : > { %10635 = vst [vmem:[#allocation21_spill] sm:$0xff] %v8922_v36  ;;  %3966 = vmatprep.mubr.f32.mxu1 %v10606_v32  ;;  %v2704_v21 = vcombine.high %v2702_v5, %v2702_v5  ;;  %v6263_v8 = vrot.slane %v2702_v5, 9  ;;  %v8930_v7 = vrot.slane %v3367_v25, %v10597_v50  ;;  %v6262_v20 = vrot.slane %v2703_v34, 9 }
 0x280   : > { %v4584_v11 = vsel %vm3806_vm10, %v8890_v29, %v4583_v43  ;;  %v2705_v26 = vcombine.high %v2401_v45, %v2401_v45  ;;  %v2712_v30 = vrot.slane %v2401_v45, %v8391_v31  ;;  %v3281_v24 = vmax.f32 %v2678_v49, %v6257_v37 }
 0x281   : > { %10636 = vst [vmem:[#allocation20_spill] sm:$0xff] %v8930_v7  ;;  %v6264_v46 = vrot.slane %v2704_v21, 9  ;;  %v3287_v17 = vmax.f32 %v2702_v5, %v6263_v8  ;;  %v2402_v54 = vmax.f32 %v8320_v39, %v2354_v28  ;;  %v4585_v38 = vsel %vm3808_vm11, %v8922_v36, %v4584_v11 }
 0x282   : > { %v2719_v40 = vrot.slane %v2705_v26, %v8391_v31  ;;  %v2720_v58 = vcombine.high %v2712_v30, %v2712_v30  ;;  %v6265_v25 = vrot.slane %v2712_v30, 9  ;;  %v8940_v15 = vrot.slane %v3373_v59, %v10597_v50  ;;  %v2313_v59 = vpop.permute.xlu0 %2312 }
 0x283   : > { %v3285_v13 = vmax.f32 %v2695_v62, %v6261_v1  ;;  %v3288_v43 = vmax.f32 %v2704_v21, %v6264_v46  ;;  %v3383_v29 = vmax.f32 %v3287_v17, 0.0  ;;  %v3286_v45 = vmax.f32 %v2703_v34, %v6262_v20 }
 0x284   : > { %10637 = vst [vmem:[#allocation46_spill] sm:$0xff] %v8940_v15  ;;  %v4586_v49 = vsel %vm3810_vm12, %v8930_v7, %v4585_v38  ;;  %v2721_v5 = vcombine.high %v2719_v40, %v2719_v40  ;;  %v6266_v39 = vrot.slane %v2720_v58, 9  ;;  %v8945_v37 = vmax.f32 %v8887_v51, %v6259_v42 }
 0x285   : > { %v3384_v28 = vmax.f32 %v3288_v43, 0.0  ;;  %6414 = vmatmul.mubr.msk.f32.gmra.mxu0 %vm3861_vm13, %v4586_v49  ;;  %v6267_v26 = vrot.slane %v2719_v40, 9  ;;  %v3289_v8 = vmax.f32 %v2712_v30, %v6265_v25  ;;  %v8948_v11 = vmax.f32 %v2686_v52, %v6258_v55  ;;  %v2319_v43 = vpop.permute.xlu1 %2318 }
 0x286   : > { %v3377_v46 = vmax.f32 %v3281_v24, 0.0  ;;  %v6268_v62 = vrot.slane %v2721_v5, 9  ;;  %v2729_v34 = vrot.slane %v2402_v54, %v8391_v31  ;;  %4719 = vmatprep.mubr.f32.mxu0 %v10606_v32  ;;  %v3381_v21 = vmax.f32 %v3285_v13, 0.0 }
 0x287   : > { %v8953_v1 = vrot.slane %v3383_v29, %v10597_v50  ;;  %v8956_v42 = vrot.slane %v3384_v28, %v10597_v50  ;;  %v2722_v20 = vcombine.high %v2402_v54, %v2402_v54  ;;  %v10638_v30 = vmax.f32 %v8860_v47, 0.0 }
 0x288   : > { %v10640_v52 = vmax.f32 %v8871_v3, 0.0  ;;  %v3382_v24 = vmax.f32 %v3286_v45, 0.0  ;;  %v3290_v38 = vmax.f32 %v2720_v58, %v6266_v39  ;;  %v10642_v13 = vmax.f32 %v8874_v2, 0.0 }
 0x289   : > { %v8961_v17 = vrot.slane %v10638_v30, %v10597_v50  ;;  %v8976_v54 = vsel %vm3798_vm6, %v8956_v42, %v8953_v1  ;;  %v8978_v47 = vmax.f32 %v2719_v40, %v6267_v26  ;;  %v3385_v25 = vmax.f32 %v3289_v8, 0.0  ;;  %v2317_v26 = vpop.permute.xlu0 %2316 }
 0x28a   : > { %v8966_v55 = vrot.slane %v10640_v52, %v10597_v50  ;;  %v8971_v29 = vrot.slane %v10642_v13, %v10597_v50  ;;  %10644 = vst [vmem:[#allocation27_spill] sm:$0xff] %v8976_v54  ;;  %v3378_v3 = vmax.f32 %v8948_v11, 0.0  ;;  %v3379_v49 = vmax.f32 %v8945_v37, 0.0 }
 0x28b   : > { %10639 = vst [vmem:[#allocation41_spill] sm:$0xff] %v8961_v17  ;;  %v8982_v45 = vmax.f32 %v2721_v5, %v6268_v62  ;;  %v2737_v58 = vcombine.high %v2729_v34, %v2729_v34  ;;  %v8985_v2 = vrot.slane %v3381_v21, %v10597_v50  ;;  %v8988_v39 = vrot.slane %v2722_v20, %v8391_v31  ;;  %v2327_v20 = vpop.permute.xlu1 %2326 }
 0x28c   : > { %10641 = vst [vmem:[#allocation45_spill] sm:$0xff] %v8966_v55  ;;  %10643 = vst [vmem:[#allocation26_spill] sm:$0xff] %v8971_v29  ;;  %v8991_v28 = vrot.slane %v3377_v46, %v10597_v50  ;;  %v3833_v40 = vsel %vm3798_vm6, %v8880_v22, %v8845_v4  ;;  %v8997_v8 = vrot.slane %v3382_v24, %v10597_v50  ;;  %v3386_v5 = vmax.f32 %v3290_v38, 0.0 }
 0x28d   : > { %10645 = vst [vmem:[#allocation40_spill] sm:$0xff] %v8988_v39  ;;  %v3834_v37 = vsel %vm3800_vm7, %v8900_v10, %v3833_v40  ;;  %v2355_v11 = vsel %vm2336_vm5, %v2313_v59, %v2315_v63  ;;  %v9004_v21 = vrot.slane %v3385_v25, %v10597_v50  ;;  %v6269_v52 = vrot.slane %v2729_v34, 9  ;;  %v2325_v40 = vpop.permute.xlu0 %2324 }
 0x28e   : > { %10646 = vst [vmem:[#allocation47_spill] sm:$0xff] %v8991_v28  ;;  %v3835_v46 = vsel %vm3802_vm8, %v8940_v15, %v3834_v37  ;;  %v2403_v4 = vmax.f32 %v8330_v56, %v2355_v11  ;;  %v6270_v24 = vrot.slane %v2737_v58, 9  ;;  %v6271_v63 = vrot.slane %v8988_v39, 9 }
 0x28f   : > { %v3836_v38 = vsel %vm3804_vm9, %v8961_v17, %v3835_v46  ;;  %v4587_v37 = vsel %vm3798_vm6, %v8940_v15, %v8900_v10  ;;  %v2356_v11 = vsel %vm2336_vm5, %v2317_v26, %v2319_v43  ;;  %v2358_v46 = vsel %vm2336_vm5, %v2325_v40, %v2327_v20  ;;  %v2331_v54 = vpop.permute.xlu1 %2330 }
 0x290   : > { %v3837_v59 = vsel %vm3806_vm10, %v8966_v55, %v3836_v38  ;;  %v2739_v13 = vcombine.high %v2403_v4, %v2403_v4  ;;  %v9016_v25 = vrot.slane %v2403_v4, %v8391_v31  ;;  %v9026_v30 = vrot.slane %v3386_v5, %v10597_v50 }
 0x291   : > { %v3838_v56 = vsel %vm3808_vm11, %v8971_v29, %v3837_v59  ;;  %v3293_v59 = vmax.f32 %v2729_v34, %v6269_v52  ;;  %v9033_v7 = vmax.f32 %v2737_v58, %v6270_v24  ;;  %v4588_v43 = vsel %vm3800_vm7, %v8961_v17, %v4587_v37 }
 0x292   : > { %10647 = vst [vmem:[#allocation5_spill] sm:$0xff] %v9026_v30  ;;  %v3839_v38 = vsel %vm3810_vm12, %v8991_v28, %v3838_v56  ;;  %v2753_v4 = vrot.slane %v2739_v13, %v8391_v31  ;;  %v2754_v62 = vcombine.high %v9016_v25, %v9016_v25  ;;  %v2404_v26 = vmax.f32 %v8339_v0, %v2356_v11 }
 0x293   : > { %6331 = vmatmul.mubr.msk.f32.gmra.mxu1 %vm3861_vm13, %v3839_v38  ;;  %v2406_v56 = vmax.f32 %v8356_v12, %v2358_v46  ;;  %v9042_v13 = vmax.f32 %v8988_v39, %v6271_v63  ;;  %v4589_v34 = vsel %vm3802_vm8, %v8966_v55, %v4588_v43  ;;  %v9048_v0 = vrot.slane %v3378_v3, %v10597_v50 }
 0x294   : > { %v2755_v5 = vcombine.high %v2753_v4, %v2753_v4  ;;  %v6274_v20 = vrot.slane %v2754_v62, 9  ;;  %v6275_v40 = vrot.slane %v2753_v4, 9  ;;  %3972 = vmatprep.mubr.f32.mxu1 %v10606_v32  ;;  %v2756_v58 = vcombine.high %v2404_v26, %v2404_v26 }
 0x295   : > { %v2763_v52 = vrot.slane %v2404_v26, %v8391_v31  ;;  %10648 = vst [vmem:[#allocation6_spill] sm:$0xff] %v9048_v0  ;;  %v9051_v11 = vrot.slane %v3379_v49, %v10597_v50  ;;  %v4590_v12 = vsel %vm3804_vm9, %v8971_v29, %v4589_v34  ;;  %v2790_v39 = vcombine.high %v2406_v56, %v2406_v56 }
 0x296   : > { %v6276_v24 = vrot.slane %v2755_v5, 9  ;;  %v3299_v37 = vmax.f32 %v2753_v4, %v6275_v40  ;;  %v2770_v63 = vrot.slane %v2756_v58, %v8391_v31  ;;  %v3298_v51 = vmax.f32 %v2754_v62, %v6274_v20 }
 0x297   : > { %10649 = vst [vmem:[#allocation48_spill] sm:$0xff] %v9051_v11  ;;  %v2771_v46 = vcombine.high %v2763_v52, %v2763_v52  ;;  %v6277_v38 = vrot.slane %v2763_v52, 9  ;;  %v4591_v4 = vsel %vm3806_vm10, %v8991_v28, %v4590_v12  ;;  %v3389_v49 = vmax.f32 %v3293_v59, 0.0 }
 0x298   : > { %v3300_v43 = vmax.f32 %v2755_v5, %v6276_v24  ;;  %v3395_v36 = vmax.f32 %v3299_v37, 0.0  ;;  %v2772_v26 = vcombine.high %v2770_v63, %v2770_v63  ;;  %v6279_v40 = vrot.slane %v2770_v63, 9  ;;  %v2329_v24 = vpop.permute.xlu0 %2328 }
 0x299   : > { %v6278_v3 = vrot.slane %v2771_v46, 9  ;;  %v6273_v55 = vrot.slane %v9016_v25, 9  ;;  %v4592_v34 = vsel %vm3808_vm11, %v9048_v0, %v4591_v4  ;;  %v3301_v20 = vmax.f32 %v2763_v52, %v6277_v38 }
 0x29a   : > { %v3396_v17 = vmax.f32 %v3300_v43, 0.0  ;;  %v4593_v62 = vsel %vm3810_vm12, %v9051_v11, %v4592_v34  ;;  %v6280_v5 = vrot.slane %v2772_v26, 9  ;;  %v3394_v37 = vmax.f32 %v3298_v51, 0.0 }
 0x29b   : > { %v3302_v58 = vmax.f32 %v2771_v46, %v6278_v3  ;;  %v9064_v12 = vrot.slane %v3395_v36, %v10597_v50  ;;  %6415 = vmatmul.mubr.msk.f32.gmra.mxu0 %vm3861_vm13, %v4593_v62  ;;  %v9071_v59 = vrot.slane %v2406_v56, %v8391_v31  ;;  %v10650_v43 = vmax.f32 %v8978_v47, 0.0 }
 0x29c   : > { %v9067_v28 = vrot.slane %v3396_v17, %v10597_v50  ;;  %v10652_v52 = vmax.f32 %v8982_v45, 0.0  ;;  %v3303_v36 = vmax.f32 %v2770_v63, %v6279_v40  ;;  %v2804_v46 = vrot.slane %v2790_v39, %v8391_v31  ;;  %4725 = vmatprep.mubr.f32.mxu0 %v10606_v32  ;;  %v2323_v39 = vpop.permute.xlu1 %2322 }
 0x29d   : > { %v9076_v4 = vrot.slane %v10650_v43, %v10597_v50  ;;  %v3390_v17 = vmax.f32 %v9033_v7, 0.0  ;;  %v9091_v47 = vmax.f32 %v2772_v26, %v6280_v5  ;;  %v3397_v38 = vmax.f32 %v3301_v20, 0.0 }
 0x29e   : > { %v9081_v51 = vrot.slane %v10652_v52, %v10597_v50  ;;  %v9089_v56 = vsel %vm3798_vm6, %v9067_v28, %v9064_v12  ;;  %v3391_v3 = vmax.f32 %v9042_v13, 0.0  ;;  %v3398_v45 = vmax.f32 %v3302_v58, 0.0  ;;  %v2321_v58 = vpop.permute.xlu0 %2320 }
 0x29f   : > { %10651 = vst [vmem:[#allocation49_spill] sm:$0xff] %v9076_v4  ;;  %10654 = vst [vmem:[#allocation51_spill] sm:$0xff] %v9089_v56  ;;  %v2806_v34 = vcombine.high %v2804_v46, %v2804_v46  ;;  %v9095_v63 = vrot.slane %v3389_v49, %v10597_v50  ;;  %v9098_v40 = vmax.f32 %v9016_v25, %v6273_v55  ;;  %v6287_v26 = vrot.slane %v2804_v46, 9 }
 0x2a0   : > { %10653 = vst [vmem:[#allocation50_spill] sm:$0xff] %v9081_v51  ;;  %v9101_v7 = vrot.slane %v3394_v37, %v10597_v50  ;;  %v2805_v62 = vcombine.high %v9071_v59, %v9071_v59  ;;  %v3399_v5 = vmax.f32 %v3303_v36, 0.0  ;;  %v6285_v20 = vrot.slane %v9071_v59, 9 }
 0x2a1   : > { %10655 = vst [vmem:[#allocation52_spill] sm:$0xff] %v9095_v63  ;;  %v6288_v13 = vrot.slane %v2806_v34, 9  ;;  %v3840_v49 = vsel %vm3798_vm6, %v8953_v1, %v8997_v8  ;;  %v9111_v55 = vrot.slane %v3397_v38, %v10597_v50  ;;  %v3311_v25 = vmax.f32 %v2804_v46, %v6287_v26 }
 0x2a2   : > { %v3841_v37 = vsel %vm3800_vm7, %v8956_v42, %v3840_v49  ;;  %v9116_v52 = vrot.slane %v3398_v45, %v10597_v50  ;;  %v4594_v0 = vsel %vm3798_vm6, %v9004_v21, %v8956_v42  ;;  %v6286_v56 = vrot.slane %v2805_v62, 9  ;;  %v2335_v49 = vpop.permute.xlu1 %2334 }
 0x2a3   : > { %v3312_v36 = vmax.f32 %v2806_v34, %v6288_v13  ;;  %v3842_v11 = vsel %vm3802_vm8, %v9004_v21, %v3841_v37  ;;  %v3407_v43 = vmax.f32 %v3311_v25, 0.0  ;;  %v9126_v46 = vrot.slane %v3390_v17, %v10597_v50 }
 0x2a4   : > { %v3843_v38 = vsel %vm3804_vm9, %v9026_v30, %v3842_v11  ;;  %v4595_v34 = vsel %vm3800_vm7, %v9026_v30, %v4594_v0  ;;  %v2359_v13 = vsel %vm2336_vm5, %v2329_v24, %v2331_v54  ;;  %v9139_v11 = vrot.slane %v3391_v3, %v10597_v50 }
 0x2a5   : > { %10656 = vst [vmem:[#allocation53_spill] sm:$0xff] %v9126_v46  ;;  %v3408_v26 = vmax.f32 %v3312_v36, 0.0  ;;  %v3844_v45 = vsel %vm3806_vm10, %v9076_v4, %v3843_v38  ;;  %v9134_v37 = vrot.slane %v3407_v43, %v10597_v50  ;;  %v4596_v17 = vsel %vm3802_vm8, %v9076_v4, %v4595_v34  ;;  %v2333_v43 = vpop.permute.xlu0 %2332 }
 0x2a6   : > { %v3845_v25 = vsel %vm3808_vm11, %v9081_v51, %v3844_v45  ;;  %10657 = vst [vmem:[#allocation54_spill] sm:$0xff] %v9139_v11  ;;  %v4597_v54 = vsel %vm3804_vm9, %v9081_v51, %v4596_v17  ;;  %v2407_v24 = vmax.f32 %v8368_v41, %v2359_v13  ;;  %v3310_v38 = vmax.f32 %v2805_v62, %v6286_v56 }
 0x2a7   : > { %v9144_v36 = vrot.slane %v3408_v26, %v10597_v50  ;;  %v3846_v0 = vsel %vm3810_vm12, %v9095_v63, %v3845_v25  ;;  %v4598_v3 = vsel %vm3806_vm10, %v9095_v63, %v4597_v54  ;;  %v2357_v45 = vsel %vm2336_vm5, %v2321_v58, %v2323_v39 }
 0x2a8   : > { %6332 = vmatmul.mubr.msk.f32.gmra.mxu1 %vm3861_vm13, %v3846_v0  ;;  %v2360_v26 = vsel %vm2336_vm5, %v2333_v43, %v2335_v49  ;;  %v4599_v25 = vsel %vm3808_vm11, %v9126_v46, %v4598_v3  ;;  %v2807_v41 = vcombine.high %v2407_v24, %v2407_v24  ;;  %v2814_v56 = vrot.slane %v2407_v24, %v8391_v31 }
 0x2a9   : > { %v9159_v34 = vsel %vm3798_vm6, %v9144_v36, %v9134_v37  ;;  %3978 = vmatprep.mubr.f32.mxu1 %v10606_v32  ;;  %v9166_v62 = vrot.slane %v3399_v5, %v10597_v50  ;;  %v4600_v39 = vsel %vm3810_vm12, %v9139_v11, %v4599_v25  ;;  %v2405_v58 = vmax.f32 %v8376_v44, %v2357_v45 }
 0x2aa   : > { %10658 = vst [vmem:[#allocation55_spill] sm:$0xff] %v9159_v34  ;;  %v2408_v13 = vmax.f32 %v8383_v23, %v2360_v26  ;;  %v9173_v49 = vmax.f32 %v9071_v59, %v6285_v20  ;;  %6416 = vmatmul.mubr.msk.f32.gmra.mxu0 %vm3861_vm13, %v4600_v39  ;;  %v2821_v17 = vrot.slane %v2807_v41, %v8391_v31  ;;  %v6289_v54 = vrot.slane %v2814_v56, 9 }
 0x2ab   : > { %v2822_v0 = vcombine.high %v2814_v56, %v2814_v56  ;;  %v3406_v24 = vmax.f32 %v3310_v38, 0.0  ;;  %v2773_v43 = vcombine.high %v2405_v58, %v2405_v58  ;;  %v2780_v5 = vrot.slane %v2405_v58, %v8391_v31  ;;  %4731 = vmatprep.mubr.f32.mxu0 %v10606_v32 }
 0x2ac   : > { %v2824_v3 = vcombine.high %v2408_v13, %v2408_v13  ;;  %v2823_v25 = vcombine.high %v2821_v17, %v2821_v17  ;;  %v6291_v45 = vrot.slane %v2821_v17, 9  ;;  %v3313_v23 = vmax.f32 %v2814_v56, %v6289_v54 }
 0x2ad   : > { %v6290_v44 = vrot.slane %v2822_v0, 9  ;;  %v9180_v59 = vrot.slane %v2773_v43, %v8391_v31  ;;  %v2788_v20 = vcombine.high %v2780_v5, %v2780_v5  ;;  %v6281_v26 = vrot.slane %v2780_v5, 9 }
 0x2ae   : > { %v3847_v41 = vsel %vm3798_vm6, %v9064_v12, %v9101_v7  ;;  %v6292_v38 = vrot.slane %v2823_v25, 9  ;;  %v3315_v11 = vmax.f32 %v2821_v17, %v6291_v45  ;;  %v2831_v58 = vrot.slane %v2408_v13, %v8391_v31 }
 0x2af   : > { %v3314_v39 = vmax.f32 %v2822_v0, %v6290_v44  ;;  %v3409_v46 = vmax.f32 %v3313_v23, 0.0  ;;  %v6282_v34 = vrot.slane %v2788_v20, 9  ;;  %v6283_v63 = vrot.slane %v9180_v59, 9 }
 0x2b0   : > { %v3305_v51 = vmax.f32 %v2780_v5, %v6281_v26  ;;  %v3316_v56 = vmax.f32 %v2823_v25, %v6292_v38  ;;  %v3411_v43 = vmax.f32 %v3315_v11, 0.0  ;;  %v9188_v29 = vrot.slane %v2824_v3, %v8391_v31 }
 0x2b1   : > { %v3410_v54 = vmax.f32 %v3314_v39, 0.0  ;;  %v10659_v4 = vmax.f32 %v9091_v47, 0.0  ;;  %v3306_v0 = vmax.f32 %v2788_v20, %v6282_v34  ;;  %v3307_v17 = vmax.f32 %v9180_v59, %v6283_v63 }
 0x2b2   : > { %v3401_v13 = vmax.f32 %v3305_v51, 0.0  ;;  %v9197_v44 = vrot.slane %v3406_v24, %v10597_v50  ;;  %v3412_v45 = vmax.f32 %v3316_v56, 0.0  ;;  %v2839_v5 = vcombine.high %v2831_v58, %v2831_v58 }
 0x2b3   : > { %v9193_v30 = vrot.slane %v10659_v4, %v10597_v50  ;;  %v3848_v11 = vsel %vm3800_vm7, %v9067_v28, %v3847_v41  ;;  %v9202_v3 = vrot.slane %v3409_v46, %v10597_v50  ;;  %v9205_v25 = vrot.slane %v3410_v54, %v10597_v50 }
 0x2b4   : > { %v3402_v4 = vmax.f32 %v3306_v0, 0.0  ;;  %v6293_v47 = vrot.slane %v2831_v58, 9  ;;  %v9208_v34 = vrot.slane %v3411_v43, %v10597_v50  ;;  %v3403_v51 = vmax.f32 %v3307_v17, 0.0 }
 0x2b5   : > { %v6294_v63 = vrot.slane %v2839_v5, 9  ;;  %v6295_v24 = vrot.slane %v9188_v29, 9  ;;  %v9212_v23 = vrot.slane %v3412_v45, %v10597_v50  ;;  %v9215_v26 = vrot.slane %v3401_v13, %v10597_v50 }
 0x2b6   : > { %v3317_v20 = vmax.f32 %v2831_v58, %v6293_v47  ;;  %v3849_v46 = vsel %vm3802_vm8, %v9111_v55, %v3848_v11  ;;  %v9223_v56 = vrot.slane %v3402_v4, %v10597_v50  ;;  %v4601_v58 = vsel %vm3798_vm6, %v9111_v55, %v9067_v28 }
 0x2b7   : > { %v3318_v41 = vmax.f32 %v2839_v5, %v6294_v63  ;;  %v3319_v38 = vmax.f32 %v9188_v29, %v6295_v24  ;;  %v3850_v39 = vsel %vm3804_vm9, %v9116_v52, %v3849_v46  ;;  %v3854_v0 = vsel %vm3798_vm6, %v9134_v37, %v9197_v44 }
 0x2b8   : > { %v3413_v54 = vmax.f32 %v3317_v20, 0.0  ;;  %v3851_v43 = vsel %vm3806_vm10, %v9166_v62, %v3850_v39  ;;  %v9236_v45 = vrot.slane %v3403_v51, %v10597_v50  ;;  %v4602_v5 = vsel %vm3800_vm7, %v9116_v52, %v4601_v58 }
 0x2b9   : > { %v3414_v17 = vmax.f32 %v3318_v41, 0.0  ;;  %v3852_v13 = vsel %vm3808_vm11, %v9193_v30, %v3851_v43  ;;  %v3415_v11 = vmax.f32 %v3319_v38, 0.0  ;;  %v4603_v47 = vsel %vm3802_vm8, %v9166_v62, %v4602_v5 }
 0x2ba   : > { %v3853_v4 = vsel %vm3810_vm12, %v9215_v26, %v3852_v13  ;;  %v3855_v63 = vsel %vm3800_vm7, %v9144_v36, %v3854_v0  ;;  %v4604_v24 = vsel %vm3804_vm9, %v9193_v30, %v4603_v47  ;;  %v9250_v51 = vrot.slane %v3413_v54, %v10597_v50 }
 0x2bb   : > { %6333 = vmatmul.mubr.msk.f32.gmra.mxu1 %vm3861_vm13, %v3853_v4  ;;  %v3856_v20 = vsel %vm3802_vm8, %v9202_v3, %v3855_v63  ;;  %v9255_v46 = vrot.slane %v3414_v17, %v10597_v50  ;;  %v4605_v41 = vsel %vm3806_vm10, %v9215_v26, %v4604_v24  ;;  %v4608_v39 = vsel %vm3798_vm6, %v9202_v3, %v9144_v36 }
 0x2bc   : > { %3984 = vmatprep.mubr.f32.mxu1 %v10606_v32  ;;  %v3857_v38 = vsel %vm3804_vm9, %v9205_v25, %v3856_v20  ;;  %v4034_v54 = vsel %vm3804_vm9, %v8438_v6, %v8416_v16  ;;  %v4606_v43 = vsel %vm3808_vm11, %v9223_v56, %v4605_v41  ;;  %v4609_v0 = vsel %vm3800_vm7, %v9205_v25, %v4608_v39 }
 0x2bd   : > { %v3858_v58 = vsel %vm3806_vm10, %v9208_v34, %v3857_v38  ;;  %v4035_v17 = vsel %vm3806_vm10, %v8441_v35, %v4034_v54  ;;  %v4607_v13 = vsel %vm3810_vm12, %v9236_v45, %v4606_v43  ;;  %v9281_v16 = vrot.slane %v3415_v11, %v10597_v50 }
 0x2be   : > { %v3859_v5 = vsel %vm3808_vm11, %v9212_v23, %v3858_v58  ;;  %v4610_v4 = vsel %vm3802_vm8, %v9208_v34, %v4609_v0  ;;  %6417 = vmatmul.mubr.msk.f32.gmra.mxu0 %vm3861_vm13, %v4607_v13  ;;  %v4036_v24 = vsel %vm3808_vm11, %v8450_v33, %v4035_v17  ;;  %v4039_v20 = vsel %vm3800_vm7, %v8500_v19, %v8462_v57  ;;  %v10660_v0 = vld [vmem:[#allocation10_spill] sm:$0xff] }
 0x2bf   : > { %v3860_v47 = vsel %vm3810_vm12, %v9250_v51, %v3859_v5  ;;  %v4611_v63 = vsel %vm3804_vm9, %v9212_v23, %v4610_v4  ;;  %v3393_v11 = vmax.f32 %v9098_v40, 0.0  ;;  %4737 = vmatprep.mubr.f32.mxu0 %v10606_v32  ;;  %v4040_v38 = vsel %vm3802_vm8, %v8549_v27, %v4039_v20 }
 0x2c0   : > { %6334 = vmatmul.mubr.msk.f32.gmra.mxu1 %vm3861_vm13, %v3860_v47  ;;  %v4612_v41 = vsel %vm3806_vm10, %v9250_v51, %v4611_v63  ;;  %v4046_v39 = vsel %vm3800_vm7, %v8633_v53, %v8593_v61  ;;  %v4041_v40 = vsel %vm3804_vm9, %v8577_v18, %v4040_v38  ;;  %v4053_v43 = vsel %vm3800_vm7, %v8771_v9, %v8738_v14  ;;  %v6371_v61 = vld [vmem:[%s10409_s3 + $0x2c0] sm:$0xff]  ;;  %v10661_v14 = vld [vmem:[#allocation30_spill] sm:$0xff] }
 0x2c1   : > { %4167 = vmatprep.mubr.f32.mxu1 %v10606_v32  ;;  %v4613_v57 = vsel %vm3808_vm11, %v9255_v46, %v4612_v41  ;;  %v4047_v54 = vsel %vm3802_vm8, %v8723_v48, %v4046_v39  ;;  %v4042_v17 = vsel %vm3806_vm10, %v10660_v0, %v4041_v40  ;;  %v4066_v5 = vsel %vm3798_vm6, %v8997_v8, %v8985_v2  ;;  %v6370_v47 = vld [vmem:[%s10409_s3 + $0x2b8] sm:$0xff]  ;;  %v10662_v63 = vld [vmem:[#allocation19_spill] sm:$0xff]  ;;  %v6369_v2 = vld [vmem:[%s10409_s3 + $0x2b0] sm:$0xff] }
 0x2c2   : > { %v4614_v58 = vsel %vm3810_vm12, %v9281_v16, %v4613_v57  ;;  %v4048_v13 = vsel %vm3804_vm9, %v8748_v60, %v4047_v54  ;;  %v4037_v4 = vsel %vm3810_vm12, %v10661_v14, %v4036_v24  ;;  %v4054_v20 = vsel %vm3802_vm8, %v10662_v63, %v4053_v43  ;;  %v10663_v8 = vld [vmem:[#allocation9_spill] sm:$0xff]  ;;  %v10664_v39 = vld [vmem:[#allocation23_spill] sm:$0xff]  ;;  %v10665_v40 = vld [vmem:[#allocation16_spill] sm:$0xff] }
 0x2c3   : > { %6418 = vmatmul.mubr.msk.f32.gmra.mxu0 %vm3861_vm13, %v4614_v58  ;;  %v3405_v41 = vmax.f32 %v9173_v49, 0.0  ;;  %v4043_v38 = vsel %vm3808_vm11, %v10663_v8, %v4042_v17  ;;  %v4060_v24 = vsel %vm3800_vm7, %v8880_v22, %v10664_v39  ;;  %v4026_v57 = vrot.slane %v3393_v11, %v10597_v50  ;;  %v6368_v49 = vld [vmem:[%s10409_s3 + $0x2a8] sm:$0xff]  ;;  %v6367_v43 = vld [vmem:[%s10409_s3 + $0x2a0] sm:$0xff]  ;;  %v10666_v58 = vld [vmem:[#allocation38_spill] sm:$0xff] }
 0x2c4   : > { %6335 = vmatmul.mubr.msk.f32.vlgmr.msra.gmra.mxu1 %vm3861_vm13, %v4037_v4  ;;  %v4049_v54 = vsel %vm3806_vm10, %v10665_v40, %v4048_v13  ;;  %v4055_v17 = vsel %vm3804_vm9, %v10666_v58, %v4054_v20  ;;  %v4067_v11 = vsel %vm3800_vm7, %v8953_v1, %v4066_v5  ;;  %v10667_v4 = vld [vmem:[#allocation33_spill] sm:$0xff]  ;;  %v6366_v13 = vld [vmem:[%s10409_s3 + $0x298] sm:$0xff]  ;;  %v6364_v20 = vld [vmem:[%s10409_s3 + $0x288] sm:$0xff]  ;;  %vm5878_vm5 = vcmask 408576  }
 0x2c5   : > { %4362 = vmatpush1.msra.mxu1 %v6371_v61  ;;  %4173 = vmatprep.mubr.f32.mxu1 %v10606_v32  ;;  %v4073_v61 = vsel %vm3798_vm6, %v9101_v7, %v4026_v57  ;;  %v4044_v39 = vsel %vm3810_vm12, %v10667_v4, %v4043_v38  ;;  %v4030_v31 = vrot.slane %v3405_v41, %v10597_v50  ;;  %v6365_v1 = vld [vmem:[%s10409_s3 + $0x290] sm:$0xff]  ;;  %v6363_v57 = vld [vmem:[%s10409_s3 + $0x280] sm:$0xff] }
 0x2c6   : > { %4363 = vmatprep.subr.mxu1 %v6370_v47  ;;  %v4061_v47 = vsel %vm3802_vm8, %v8900_v10, %v4060_v24  ;;  %v10668_v7 = vld [vmem:[#allocation17_spill] sm:$0xff]  ;;  %v4068_v38 = vsel %vm3802_vm8, %v8956_v42, %v4067_v11  ;;  %v6362_v42 = vld [vmem:[%s10409_s3 + $0x278] sm:$0xff] }
 0x2c7   : > { %4364 = vmatpush1.msra.mxu1 %v6369_v2  ;;  %v4050_v5 = vsel %vm3808_vm11, %v10668_v7, %v4049_v54  ;;  %v10669_v2 = vld [vmem:[#allocation22_spill] sm:$0xff]  ;;  %v4080_v24 = vsel %vm3798_vm6, %v9197_v44, %v4030_v31  ;;  %v4074_v54 = vsel %vm3800_vm7, %v9064_v12, %v4073_v61  ;;  %v6361_v31 = vld [vmem:[%s10409_s3 + $0x270] sm:$0xff]  ;;  %v10671_v44 = vld [vmem:[#allocation43_spill] sm:$0xff]  ;;  %v4069_v12 = vsel %vm3804_vm9, %v9004_v21, %v4068_v38 }
 0x2c8   : > { %6336 = vmatmul.mubr.msk.f32.gmra.mxu1 %vm3861_vm13, %v4044_v39  ;;  %4365 = vmatprep.subr.mxu1 %v6368_v49  ;;  %v4056_v41 = vsel %vm3806_vm10, %v10669_v2, %v4055_v17  ;;  %v4062_v49 = vsel %vm3804_vm9, %v8940_v15, %v4061_v47  ;;  %v6360_v61 = vld [vmem:[%s10409_s3 + $0x268] sm:$0xff]  ;;  %v10672_v39 = vld [vmem:[#allocation41_spill] sm:$0xff]  ;;  %v4075_v47 = vsel %vm3802_vm8, %v9067_v28, %v4074_v54  ;;  %v6358_v38 = vld [vmem:[%s10409_s3 + $0x258] sm:$0xff] }
 0x2c9   : > { %4366 = vmatpush1.msra.mxu1 %v6367_v43  ;;  %4179 = vmatprep.mubr.f32.mxu1 %v10606_v32  ;;  %v10670_v43 = vld [vmem:[#allocation34_spill] sm:$0xff]  ;;  %v4057_v11 = vsel %vm3808_vm11, %v10671_v44, %v4056_v41  ;;  %v6357_v28 = vld [vmem:[%s10409_s3 + $0x250] sm:$0xff]  ;;  %v4076_v54 = vsel %vm3804_vm9, %v9111_v55, %v4075_v47 }
 0x2ca   : > { %4367 = vmatprep.subr.mxu1 %v6366_v13  ;;  %v4051_v17 = vsel %vm3810_vm12, %v10670_v43, %v4050_v5  ;;  %v4063_v13 = vsel %vm3806_vm10, %v10672_v39, %v4062_v49  ;;  %v6359_v5 = vld [vmem:[%s10409_s3 + $0x260] sm:$0xff]  ;;  %v10678_v47 = vld [vmem:[#allocation26_spill] sm:$0xff] }
 0x2cb   : > { %4368 = vmatpush1.msra.mxu1 %v6365_v1  ;;  %v4081_v1 = vsel %vm3800_vm7, %v9134_v37, %v4080_v24  ;;  %v10675_v37 = vld [vmem:[#allocation45_spill] sm:$0xff] }
 0x2cc   : > { %6337 = vmatmul.mubr.msk.f32.gmra.mxu1 %vm3861_vm13, %v4051_v17  ;;  %4369 = vmatprep.subr.mxu1 %v6364_v20  ;;  %v10673_v20 = vld [vmem:[#allocation25_spill] sm:$0xff]  ;;  %v4064_v24 = vsel %vm3808_vm11, %v10675_v37, %v4063_v13  ;;  %v4082_v17 = vsel %vm3802_vm8, %v9144_v36, %v4081_v1 }
 0x2cd   : > { %4370 = vmatpush1.msra.mxu1 %v6363_v57  ;;  %4185 = vmatprep.mubr.f32.mxu1 %v10606_v32  ;;  %v4058_v41 = vsel %vm3810_vm12, %v10673_v20, %v4057_v11  ;;  %v10674_v57 = vld [vmem:[#allocation5_spill] sm:$0xff]  ;;  %v4301_v11 = vsel %vm3798_vm6, %v8723_v48, %v8633_v53  ;;  %v4065_v53 = vsel %vm3810_vm12, %v10678_v47, %v4064_v24  ;;  %v6354_v48 = vld [vmem:[%s10409_s3 + $0x238] sm:$0xff] }
 0x2ce   : > { %4371 = vmatprep.subr.mxu1 %v6362_v42  ;;  %v4070_v49 = vsel %vm3806_vm10, %v10674_v57, %v4069_v12  ;;  %v4294_v42 = vsel %vm3798_vm6, %v8549_v27, %v8500_v19  ;;  %v4308_v12 = vsel %vm3798_vm6, %v10662_v63, %v8771_v9  ;;  %v6355_v19 = vld [vmem:[%s10409_s3 + $0x240] sm:$0xff]  ;;  %v10676_v27 = vld [vmem:[#allocation49_spill] sm:$0xff]  ;;  %v4077_v9 = vsel %vm3806_vm10, %v9116_v52, %v4076_v54  ;;  %v10681_v54 = vld [vmem:[#allocation50_spill] sm:$0xff] }
 0x2cf   : > { %4372 = vmatpush1.msra.mxu1 %v6361_v31  ;;  %v6356_v31 = vld [vmem:[%s10409_s3 + $0x248] sm:$0xff]  ;;  %v4071_v36 = vsel %vm3808_vm11, %v10676_v27, %v4070_v49  ;;  %v4083_v63 = vsel %vm3804_vm9, %v9202_v3, %v4082_v17 }
 0x2d0   : > { %6338 = vmatmul.mubr.msk.f32.gmra.mxu1 %vm3861_vm13, %v4058_v41  ;;  %4373 = vmatprep.subr.mxu1 %v6360_v61  ;;  %v10677_v61 = vld [vmem:[#allocation27_spill] sm:$0xff]  ;;  %v4072_v17 = vsel %vm3810_vm12, %v10681_v54, %v4071_v36 }
 0x2d1   : > { %4374 = vmatpush1.msra.mxu1 %v6359_v5  ;;  %4191 = vmatprep.mubr.f32.mxu1 %v10606_v32  ;;  %v4323_v13 = vsel %vm3800_vm7, %v9004_v21, %v10677_v61  ;;  %v6353_v5 = vld [vmem:[%s10409_s3 + $0x230] sm:$0xff]  ;;  %v10679_v41 = vld [vmem:[#allocation7_spill] sm:$0xff] }
 0x2d2   : > { %4375 = vmatprep.subr.mxu1 %v6358_v38  ;;  %v4324_v1 = vsel %vm3802_vm8, %v10674_v57, %v4323_v13  ;;  %v4288_v38 = vsel %vm3800_vm7, %v8438_v6, %v10679_v41  ;;  %v10684_v6 = vld [vmem:[#allocation53_spill] sm:$0xff] }
 0x2d3   : > { %4376 = vmatpush1.msra.mxu1 %v6357_v28  ;;  %v4325_v49 = vsel %vm3804_vm9, %v10676_v27, %v4324_v1  ;;  %v10680_v28 = vld [vmem:[#allocation51_spill] sm:$0xff]  ;;  %v10682_v1 = vld [vmem:[#allocation52_spill] sm:$0xff] }
 0x2d4   : > { %6339 = vmatmul.mubr.msk.f32.gmra.mxu1 %vm3861_vm13, %v4065_v53  ;;  %4377 = vmatprep.subr.mxu1 %v6356_v31  ;;  %v4330_v24 = vsel %vm3800_vm7, %v9111_v55, %v10680_v28  ;;  %v6352_v31 = vld [vmem:[%s10409_s3 + $0x228] sm:$0xff]  ;;  %v4326_v61 = vsel %vm3806_vm10, %v10681_v54, %v4325_v49  ;;  %v4295_v53 = vsel %vm3800_vm7, %v8577_v18, %v4294_v42  ;;  %v10683_v28 = vld [vmem:[#allocation55_spill] sm:$0xff] }
 0x2d5   : > { %4378 = vmatpush1.msra.mxu1 %v6355_v19  ;;  %4197 = vmatprep.mubr.f32.mxu1 %v10606_v32  ;;  %v4331_v13 = vsel %vm3802_vm8, %v9116_v52, %v4330_v24  ;;  %v6351_v19 = vld [vmem:[%s10409_s3 + $0x220] sm:$0xff]  ;;  %v4327_v36 = vsel %vm3808_vm11, %v10682_v1, %v4326_v61  ;;  %v4337_v49 = vsel %vm3800_vm7, %v9202_v3, %v10683_v28 }
 0x2d6   : > { %4379 = vmatprep.subr.mxu1 %v6354_v48  ;;  %v4332_v41 = vsel %vm3804_vm9, %v9166_v62, %v4331_v13  ;;  %v6350_v48 = vld [vmem:[%s10409_s3 + $0x218] sm:$0xff]  ;;  %v4289_v24 = vsel %vm3802_vm8, %v8441_v35, %v4288_v38  ;;  %v9508_v42 = vsel %vm3810_vm12, %v10684_v6, %v4327_v36  ;;  %v4338_v13 = vsel %vm3802_vm8, %v9205_v25, %v4337_v49  ;;  %v6349_v38 = vld [vmem:[%s10409_s3 + $0x210] sm:$0xff] }
 0x2d7   : > { %4380 = vmatpush1.msra.mxu1 %v6353_v5  ;;  %v4333_v61 = vsel %vm3806_vm10, %v9193_v30, %v4332_v41  ;;  %v4078_v5 = vsel %vm3808_vm11, %v9166_v62, %v4077_v9  ;;  %v4339_v41 = vsel %vm3804_vm9, %v9208_v34, %v4338_v13  ;;  %v4084_v9 = vsel %vm3806_vm10, %v9205_v25, %v4083_v63  ;;  %v10686_v13 = vld [vmem:[#allocation40_spill] sm:$0xff] }
 0x2d8   : > { %6340 = vmatmul.mubr.msk.f32.gmra.mxu1 %vm3861_vm13, %v4072_v17  ;;  %4381 = vmatprep.subr.mxu1 %v6352_v31  ;;  %v9522_v36 = vsel %vm3808_vm11, %v9215_v26, %v4333_v61  ;;  %v6348_v17 = vld [vmem:[%s10409_s3 + $0x208] sm:$0xff]  ;;  %v4296_v31 = vsel %vm3802_vm8, %v10660_v0, %v4295_v53  ;;  %v4340_v28 = vsel %vm3806_vm10, %v9212_v23, %v4339_v41  ;;  %v6346_v41 = vld [vmem:[%s10409_s3 + $0x1f8] sm:$0xff] }
 0x2d9   : > { %4382 = vmatpush1.msra.mxu1 %v6351_v19  ;;  %4203 = vmatprep.mubr.f32.mxu1 %v10606_v32  ;;  %v6347_v19 = vld [vmem:[%s10409_s3 + $0x200] sm:$0xff]  ;;  %v4290_v49 = vsel %vm3804_vm9, %v8450_v33, %v4289_v24  ;;  %v4302_v61 = vsel %vm3800_vm7, %v8748_v60, %v4301_v11  ;;  %v9545_v63 = vsel %vm3808_vm11, %v9250_v51, %v4340_v28 }
 0x2da   : > { %4383 = vmatprep.subr.mxu1 %v6350_v48  ;;  %10685 = vst [vmem:[#allocation10_spill] sm:$0xff] %v9545_v63  ;;  %v2738_v53 = vcombine.high %v10686_v13, %v10686_v13  ;;  %v4079_v48 = vsel %vm3810_vm12, %v9193_v30, %v4078_v5  ;;  %v4309_v24 = vsel %vm3800_vm7, %v10666_v58, %v4308_v12  ;;  %v6345_v5 = vld [vmem:[%s10409_s3 + $0x1f0] sm:$0xff] }
 0x2db   : > { %4384 = vmatpush1.msra.mxu1 %v6349_v38  ;;  %v2789_v11 = vcombine.high %v9180_v59, %v9180_v59  ;;  %v4085_v28 = vsel %vm3808_vm11, %v9208_v34, %v4084_v9  ;;  %v4297_v38 = vsel %vm3804_vm9, %v10663_v8, %v4296_v31  ;;  %v6344_v59 = vld [vmem:[%s10409_s3 + $0x1e8] sm:$0xff]  ;;  %v4291_v12 = vsel %vm3806_vm10, %v10661_v14, %v4290_v49  ;;  %v6343_v9 = vld [vmem:[%s10409_s3 + $0x1e0] sm:$0xff] }
 0x2dc   : > { %6341 = vmatmul.mubr.msk.f32.gmra.mxu1 %vm3861_vm13, %v4079_v48  ;;  %4385 = vmatprep.subr.mxu1 %v6348_v17  ;;  %v4303_v17 = vsel %vm3802_vm8, %v10665_v40, %v4302_v61  ;;  %v4310_v31 = vsel %vm3802_vm8, %v10669_v2, %v4309_v24  ;;  %v6272_v13 = vrot.slane %v2738_v53, 9  ;;  %v4086_v48 = vsel %vm3810_vm12, %v9212_v23, %v4085_v28  ;;  %v6448_v49 = vld [vmem:[%s10409_s3 + $0x4a8] sm:$0xff]  ;;  %v10687_v24 = vld [vmem:[#allocation31_spill] sm:$0xff] }
 0x2dd   : > { %4386 = vmatpush1.msra.mxu1 %v6347_v19  ;;  %4209 = vmatprep.mubr.f32.mxu1 %v10606_v32  ;;  %v4315_v19 = vsel %vm3798_vm6, %v8900_v10, %v8880_v22  ;;  %v4298_v61 = vsel %vm3806_vm10, %v10667_v4, %v4297_v38  ;;  %v4292_v63 = vsel %vm3808_vm11, %v10687_v24, %v4291_v12  ;;  %v10688_v38 = vld [vmem:[#allocation15_spill] sm:$0xff] }
 0x2de   : > { %4387 = vmatprep.subr.mxu1 %v6346_v41  ;;  %v6284_v41 = vrot.slane %v2789_v11, 9  ;;  %v4304_v22 = vsel %vm3804_vm9, %v10668_v7, %v4303_v17  ;;  %v2840_v10 = vcombine.high %v9188_v29, %v9188_v29  ;;  %v4311_v28 = vsel %vm3804_vm9, %v10671_v44, %v4310_v31  ;;  %v10689_v17 = vld [vmem:[#allocation32_spill] sm:$0xff] }
 0x2df   : > { %4388 = vmatpush1.msra.mxu1 %v6345_v5  ;;  %v6447_v5 = vld [vmem:[%s10409_s3 + $0x4a0] sm:$0xff]  ;;  %v4316_v12 = vsel %vm3800_vm7, %v8940_v15, %v4315_v19  ;;  %v4293_v29 = vsel %vm3810_vm12, %v10689_v17, %v4292_v63  ;;  %v4305_v31 = vsel %vm3806_vm10, %v10670_v43, %v4304_v22  ;;  %v4312_v19 = vsel %vm3806_vm10, %v10673_v20, %v4311_v28 }
 0x2e0   : > { %6342 = vmatmul.mubr.msk.f32.gmra.mxu1 %vm3861_vm13, %v4086_v48  ;;  %4389 = vmatprep.subr.mxu1 %v6344_v59  ;;  %v4299_v59 = vsel %vm3808_vm11, %v10688_v38, %v4298_v61  ;;  %v3296_v48 = vmax.f32 %v2738_v53, %v6272_v13  ;;  %v4866_v63 = vsel %vm3798_vm6, %v10674_v57, %v9004_v21  ;;  %v6296_v15 = vrot.slane %v2840_v10, 9  ;;  %v10690_v22 = vld [vmem:[#allocation11_spill] sm:$0xff]  ;;  %v6444_v13 = vld [vmem:[%s10409_s3 + $0x488] sm:$0xff]  ;;  %v10691_v57 = vld [vmem:[#allocation37_spill] sm:$0xff] }
 0x2e1   : > { %4390 = vmatpush1.msra.mxu1 %v6343_v9  ;;  %4423 = vmatprep.mubr.f32.mxu1 %v10606_v32  ;;  %v6446_v9 = vld [vmem:[%s10409_s3 + $0x498] sm:$0xff]  ;;  %v3308_v61 = vmax.f32 %v2789_v11, %v6284_v41  ;;  %v4300_v53 = vsel %vm3810_vm12, %v10690_v22, %v4299_v59  ;;  %v6443_v21 = vld [vmem:[%s10409_s3 + $0x480] sm:$0xff]  ;;  %v4306_v11 = vsel %vm3808_vm11, %v10691_v57, %v4305_v31 }
 0x2e2   : > { %4905 = vmatprep.subr.mxu1 %v6448_v49  ;;  %v6445_v49 = vld [vmem:[%s10409_s3 + $0x490] sm:$0xff]  ;;  %v3392_v28 = vmax.f32 %v3296_v48, 0.0  ;;  %v4867_v41 = vsel %vm3800_vm7, %v10676_v27, %v4866_v63  ;;  %v4873_v59 = vsel %vm3798_vm6, %v9116_v52, %v9111_v55 }
 0x2e3   : > { %v4868_v31 = vsel %vm3802_vm8, %v10681_v54, %v4867_v41  ;;  %v4874_v27 = vsel %vm3800_vm7, %v9166_v62, %v4873_v59  ;;  %v6441_v55 = vld [vmem:[%s10409_s3 + $0x470] sm:$0xff]  ;;  %v6440_v62 = vld [vmem:[%s10409_s3 + $0x468] sm:$0xff] }
 0x2e4   : > { %6373 = vmatmul.mubr.msk.f32.vlgmr.msra.gmra.mxu1 %vm3861_vm13, %v4293_v29  ;;  %v4317_v29 = vsel %vm3802_vm8, %v10672_v39, %v4316_v12  ;;  %v6442_v12 = vld [vmem:[%s10409_s3 + $0x478] sm:$0xff]  ;;  %v4822_v20 = vrot.slane %v3392_v28, %v10597_v50  ;;  %v4875_v63 = vsel %vm3802_vm8, %v9193_v30, %v4874_v27 }
 0x2e5   : > { %4906 = vmatpush1.msra.mxu1 %v6447_v5  ;;  %4429 = vmatprep.mubr.f32.mxu1 %v10606_v32  ;;  %v3404_v5 = vmax.f32 %v3308_v61, 0.0  ;;  %v4318_v52 = vsel %vm3804_vm9, %v10675_v37, %v4317_v29  ;;  %v3320_v61 = vmax.f32 %v2840_v10, %v6296_v15  ;;  %v10694_v29 = vld [vmem:[#allocation54_spill] sm:$0xff] }
 0x2e6   : > { %4907 = vmatprep.subr.mxu1 %v6446_v9  ;;  %v10692_v9 = vld [vmem:[#allocation42_spill] sm:$0xff] }
 0x2e7   : > { %4908 = vmatpush1.msra.mxu1 %v6445_v49  ;;  %v4313_v48 = vsel %vm3808_vm11, %v10692_v9, %v4312_v19  ;;  %v4869_v49 = vsel %vm3804_vm9, %v10682_v1, %v4868_v31  ;;  %v4826_v19 = vrot.slane %v3404_v5, %v10597_v50  ;;  %v6438_v15 = vld [vmem:[%s10409_s3 + $0x458] sm:$0xff]  ;;  %v10695_v31 = vld [vmem:[#allocation28_spill] sm:$0xff] }
 0x2e8   : > { %6374 = vmatmul.mubr.msk.f32.gmra.mxu1 %vm3861_vm13, %v4300_v53  ;;  %4909 = vmatprep.subr.mxu1 %v6444_v13  ;;  %v4870_v54 = vsel %vm3806_vm10, %v10684_v6, %v4869_v49  ;;  %v10693_v53 = vld [vmem:[#allocation36_spill] sm:$0xff]  ;;  %v6439_v13 = vld [vmem:[%s10409_s3 + $0x460] sm:$0xff]  ;;  %v4880_v6 = vsel %vm3798_vm6, %v9205_v25, %v9202_v3  ;;  %v6437_v3 = vld [vmem:[%s10409_s3 + $0x450] sm:$0xff]  ;;  %v4319_v25 = vsel %vm3806_vm10, %v10678_v47, %v4318_v52 }
 0x2e9   : > { %4910 = vmatpush1.msra.mxu1 %v6443_v21  ;;  %4435 = vmatprep.mubr.f32.mxu1 %v10606_v32  ;;  %v4307_v1 = vsel %vm3810_vm12, %v10693_v53, %v4306_v11  ;;  %v4871_v28 = vsel %vm3808_vm11, %v10694_v29, %v4870_v54  ;;  %v4876_v21 = vsel %vm3804_vm9, %v9215_v26, %v4875_v63  ;;  %v3416_v11 = vmax.f32 %v3320_v61, 0.0  ;;  %v6434_v49 = vld [vmem:[%s10409_s3 + $0x438] sm:$0xff]  ;;  %v10699_v29 = vld [vmem:[#allocation12_spill] sm:$0xff] }
 0x2ea   : > { %4911 = vmatprep.subr.mxu1 %v6442_v12  ;;  %v9683_v30 = vsel %vm3810_vm12, %v4822_v20, %v4871_v28  ;;  %v4877_v10 = vsel %vm3806_vm10, %v9223_v56, %v4876_v21  ;;  %v4881_v41 = vsel %vm3800_vm7, %v9208_v34, %v4880_v6  ;;  %v6436_v34 = vld [vmem:[%s10409_s3 + $0x448] sm:$0xff]  ;;  %v2534_v28 = vcombine.high %v10699_v29, %v10699_v29  ;;  %v10700_v21 = vld [vmem:[#allocation6_spill] sm:$0xff]  ;;  %v10705_v29 = vld [vmem:[#allocation13_spill] sm:$0xff] }
 0x2eb   : > { %4912 = vmatpush1.msra.mxu1 %v6441_v55  ;;  %v4878_v26 = vsel %vm3808_vm11, %v9236_v45, %v4877_v10  ;;  %v4882_v20 = vsel %vm3802_vm8, %v9212_v23, %v4881_v41  ;;  %v4830_v59 = vrot.slane %v3416_v11, %v10597_v50  ;;  %v2483_v45 = vcombine.high %v10695_v31, %v10695_v31  ;;  %v6435_v23 = vld [vmem:[%s10409_s3 + $0x440] sm:$0xff]  ;;  %v10696_v55 = vld [vmem:[#allocation21_spill] sm:$0xff]  ;;  %v6430_v6 = vld [vmem:[%s10409_s3 + $0x418] sm:$0xff] }
 0x2ec   : > { %6375 = vmatmul.mubr.msk.f32.gmra.mxu1 %vm3861_vm13, %v4307_v1  ;;  %4913 = vmatprep.subr.mxu1 %v6440_v62  ;;  %v9704_v5 = vsel %vm3810_vm12, %v4826_v19, %v4878_v26  ;;  %v4883_v12 = vsel %vm3804_vm9, %v9250_v51, %v4882_v20  ;;  %v4314_v52 = vsel %vm3810_vm12, %v10696_v55, %v4313_v48  ;;  %v6433_v19 = vld [vmem:[%s10409_s3 + $0x430] sm:$0xff]  ;;  %v10697_v62 = vld [vmem:[#allocation47_spill] sm:$0xff]  ;;  %v6428_v11 = vld [vmem:[%s10409_s3 + $0x408] sm:$0xff]  ;;  %v6224_v20 = vrot.slane %v2534_v28, 9 }
 0x2ed   : > { %4914 = vmatpush1.msra.mxu1 %v6439_v13  ;;  %4441 = vmatprep.mubr.f32.mxu1 %v10606_v32  ;;  %v4884_v27 = vsel %vm3806_vm10, %v9255_v46, %v4883_v12  ;;  %v4320_v54 = vsel %vm3808_vm11, %v10697_v62, %v4319_v25  ;;  %v10698_v48 = vld [vmem:[#allocation29_spill] sm:$0xff]  ;;  %v6212_v1 = vrot.slane %v2483_v45, 9  ;;  %v6431_v13 = vld [vmem:[%s10409_s3 + $0x420] sm:$0xff]  ;;  %v4838_v41 = vsel %vm3798_vm6, %v10660_v0, %v8577_v18  ;;  %v10701_v25 = vld [vmem:[#allocation14_spill] sm:$0xff] }
 0x2ee   : > { %4915 = vmatprep.subr.mxu1 %v6438_v15  ;;  %v4885_v51 = vsel %vm3808_vm11, %v9281_v16, %v4884_v27  ;;  %v4831_v61 = vsel %vm3798_vm6, %v8441_v35, %v10698_v48  ;;  %v6432_v16 = vld [vmem:[%s10409_s3 + $0x428] sm:$0xff]  ;;  %v4321_v35 = vsel %vm3810_vm12, %v10700_v21, %v4320_v54  ;;  %v6429_v15 = vld [vmem:[%s10409_s3 + $0x410] sm:$0xff]  ;;  %v2585_v26 = vcombine.high %v10701_v25, %v10701_v25 }
 0x2ef   : > { %4916 = vmatpush1.msra.mxu1 %v6437_v3  ;;  %v9730_v63 = vsel %vm3810_vm12, %v4830_v59, %v4885_v51  ;;  %v4832_v10 = vsel %vm3800_vm7, %v8450_v33, %v4831_v61  ;;  %v3236_v3 = vmax.f32 %v2483_v45, %v6212_v1  ;;  %v6427_v33 = vld [vmem:[%s10409_s3 + $0x400] sm:$0xff]  ;;  %v6425_v18 = vld [vmem:[%s10409_s3 + $0x3f0] sm:$0xff]  ;;  %v4839_v0 = vsel %vm3800_vm7, %v10663_v8, %v4838_v41  ;;  %v6424_v12 = vld [vmem:[%s10409_s3 + $0x3e8] sm:$0xff] }
 0x2f0   : > { %6376 = vmatmul.mubr.msk.f32.gmra.mxu1 %vm3861_vm13, %v4314_v52  ;;  %4917 = vmatprep.subr.mxu1 %v6436_v34  ;;  %v6426_v34 = vld [vmem:[%s10409_s3 + $0x3f8] sm:$0xff]  ;;  %v4833_v59 = vsel %vm3802_vm8, %v10661_v14, %v4832_v10  ;;  %v4845_v14 = vsel %vm3798_vm6, %v10665_v40, %v8748_v60  ;;  %v6236_v31 = vrot.slane %v2585_v26, 9  ;;  %v6423_v45 = vld [vmem:[%s10409_s3 + $0x3e0] sm:$0xff]  ;;  %v4335_v52 = vsel %vm3810_vm12, %v9223_v56, %v9522_v36  ;;  %v6420_v56 = vld [vmem:[%s10409_s3 + $0x3c8] sm:$0xff] }
 0x2f1   : > { %4918 = vmatpush1.msra.mxu1 %v6435_v23  ;;  %4447 = vmatprep.mubr.f32.mxu1 %v10606_v32  ;;  %v4834_v8 = vsel %vm3804_vm9, %v10687_v24, %v4833_v59  ;;  %v10702_v23 = vld [vmem:[#allocation18_spill] sm:$0xff]  ;;  %v3248_v40 = vmax.f32 %v2534_v28, %v6224_v20  ;;  %v6421_v24 = vld [vmem:[%s10409_s3 + $0x3d0] sm:$0xff]  ;;  %v4846_v51 = vsel %vm3800_vm7, %v10668_v7, %v4845_v14  ;;  %v10703_v54 = vld [vmem:[#allocation24_spill] sm:$0xff] }
 0x2f2   : > { %4919 = vmatprep.subr.mxu1 %v6434_v49  ;;  %v2636_v27 = vcombine.high %v10702_v23, %v10702_v23  ;;  %v6422_v60 = vld [vmem:[%s10409_s3 + $0x3d8] sm:$0xff]  ;;  %v4840_v49 = vsel %vm3802_vm8, %v10667_v4, %v4839_v0  ;;  %v4835_v4 = vsel %vm3806_vm10, %v10689_v17, %v4834_v8  ;;  %v4852_v36 = vsel %vm3798_vm6, %v10669_v2, %v10666_v58  ;;  %v6419_v7 = vld [vmem:[%s10409_s3 + $0x3c0] sm:$0xff] }
 0x2f3   : > { %4920 = vmatpush1.msra.mxu1 %v6433_v19  ;;  %v2687_v48 = vcombine.high %v10703_v54, %v10703_v54  ;;  %v4841_v61 = vsel %vm3804_vm9, %v10688_v38, %v4840_v49  ;;  %v10704_v17 = vld [vmem:[#allocation10_spill] sm:$0xff]  ;;  %v3344_v58 = vmax.f32 %v3248_v40, 0.0  ;;  %v4847_v2 = vsel %vm3802_vm8, %v10670_v43, %v4846_v51 }
 0x2f4   : > { %6377 = vmatmul.mubr.msk.f32.gmra.mxu1 %vm3861_vm13, %v4321_v35  ;;  %4921 = vmatprep.subr.mxu1 %v6432_v16  ;;  %v3260_v16 = vmax.f32 %v2585_v26, %v6236_v31  ;;  %v6248_v1 = vrot.slane %v2636_v27, 9  ;;  %v4836_v28 = vsel %vm3808_vm11, %v10705_v29, %v4835_v4  ;;  %v4853_v38 = vsel %vm3800_vm7, %v10671_v44, %v4852_v36  ;;  %v10706_v35 = vld [vmem:[#allocation46_spill] sm:$0xff] }
 0x2f5   : > { %4922 = vmatpush1.msra.mxu1 %v6431_v13  ;;  %4453 = vmatprep.mubr.f32.mxu1 %v10606_v32  ;;  %v4342_v13 = vsel %vm3810_vm12, %v9255_v46, %v10704_v17  ;;  %v4842_v46 = vsel %vm3806_vm10, %v10690_v22, %v4841_v61  ;;  %v6260_v43 = vrot.slane %v2687_v48, 9  ;;  %v4848_v10 = vsel %vm3804_vm9, %v10691_v57, %v4847_v2  ;;  %v10708_v22 = vld [vmem:[#allocation35_spill] sm:$0xff] }
 0x2f6   : > { %4923 = vmatprep.subr.mxu1 %v6430_v6  ;;  %v4859_v6 = vsel %vm3798_vm6, %v10672_v39, %v10706_v35  ;;  %v4806_v44 = vrot.slane %v3344_v58, %v10597_v50  ;;  %v3272_v41 = vmax.f32 %v2636_v27, %v6248_v1  ;;  %v4843_v39 = vsel %vm3808_vm11, %v10708_v22, %v4842_v46 }
 0x2f7   : > { %4924 = vmatpush1.msra.mxu1 %v6429_v15  ;;  %v3356_v15 = vmax.f32 %v3260_v16, 0.0  ;;  %v4860_v26 = vsel %vm3800_vm7, %v10675_v37, %v4859_v6  ;;  %v4849_v57 = vsel %vm3806_vm10, %v10693_v53, %v4848_v10  ;;  %v10709_v37 = vld [vmem:[#allocation39_spill] sm:$0xff] }
 0x2f8   : > { %6378 = vmatmul.mubr.msk.f32.gmra.mxu1 %vm3861_vm13, %v9508_v42  ;;  %4925 = vmatprep.subr.mxu1 %v6428_v11  ;;  %v3332_v42 = vmax.f32 %v3236_v3, 0.0  ;;  %v10707_v3 = vld [vmem:[#allocation25_spill] sm:$0xff]  ;;  %v3368_v59 = vmax.f32 %v3272_v41, 0.0  ;;  %v4861_v0 = vsel %vm3802_vm8, %v10678_v47, %v4860_v26  ;;  %v10710_v47 = vld [vmem:[#allocation20_spill] sm:$0xff] }
 0x2f9   : > { %4926 = vmatpush1.msra.mxu1 %v6427_v33  ;;  %4459 = vmatprep.mubr.f32.mxu1 %v10606_v32  ;;  %v4854_v25 = vsel %vm3802_vm8, %v10707_v3, %v4853_v38  ;;  %v4810_v33 = vrot.slane %v3356_v15, %v10597_v50 }
 0x2fa   : > { %4927 = vmatprep.subr.mxu1 %v6426_v34  ;;  %v4802_v19 = vrot.slane %v3332_v42, %v10597_v50  ;;  %v4855_v20 = vsel %vm3804_vm9, %v10692_v9, %v4854_v25  ;;  %v4844_v34 = vsel %vm3810_vm12, %v4806_v44, %v4843_v39  ;;  %v4862_v9 = vsel %vm3804_vm9, %v10697_v62, %v4861_v0  ;;  %v10711_v62 = vld [vmem:[#allocation48_spill] sm:$0xff] }
 0x2fb   : > { %4928 = vmatpush1.msra.mxu1 %v6425_v18  ;;  %v3284_v18 = vmax.f32 %v2687_v48, %v6260_v43  ;;  %v4856_v53 = vsel %vm3806_vm10, %v10696_v55, %v4855_v20  ;;  %v4814_v42 = vrot.slane %v3368_v59, %v10597_v50  ;;  %v4863_v8 = vsel %vm3806_vm10, %v10700_v21, %v4862_v9 }
 0x2fc   : > { %6379 = vmatmul.mubr.msk.f32.gmra.mxu1 %vm3861_vm13, %v4335_v52  ;;  %4929 = vmatprep.subr.mxu1 %v6424_v12  ;;  %v4837_v11 = vsel %vm3810_vm12, %v4802_v19, %v4836_v28  ;;  %v4850_v12 = vsel %vm3808_vm11, %v10709_v37, %v4849_v57  ;;  %v4864_v27 = vsel %vm3808_vm11, %v10711_v62, %v4863_v8  ;;  %v5032_v8 = vld [vmem:[%s10410_s4] sm:$0x3] }
 0x2fd   : > { %4930 = vmatpush1.msra.mxu1 %v6423_v45  ;;  %4465 = vmatprep.mubr.f32.mxu1 %v10606_v32  ;;  %v4851_v14 = vsel %vm3810_vm12, %v4810_v33, %v4850_v12  ;;  %v3380_v31 = vmax.f32 %v3284_v18, 0.0  ;;  %v4857_v45 = vsel %vm3808_vm11, %v10710_v47, %v4856_v53 }
 0x2fe   : > { %4931 = vmatprep.subr.mxu1 %v6422_v60  ;;  %v4858_v55 = vsel %vm3810_vm12, %v4814_v42, %v4857_v45 }
 0x2ff   : > { %4932 = vmatpush1.msra.mxu1 %v6421_v24  ;;  %v4818_v23 = vrot.slane %v3380_v31, %v10597_v50  ;;  %v3944_v21 = vpop.f32.mrf.mxu1 }
 0x300   : > { %6380 = vmatmul.mubr.msk.f32.gmra.mxu1 %vm3861_vm13, %v4342_v13  ;;  %4933 = vmatprep.subr.mxu1 %v6420_v56 }
 0x301   : > { %4934 = vmatpush1.msra.mxu1 %v6419_v7  ;;  %4967 = vmatprep.mubr.f32.mxu1 %v10606_v32  ;;  %v4865_v52 = vsel %vm3810_vm12, %v4818_v23, %v4864_v27  ;;  %v3946_v60 = vpop.f32.mrf.mxu1 }
 0x302   : > { %6551 = vmatprep.subr.mxu1 %v10606_v32 }
 0x304   : > { %6449 = vmatmul.mubr.msk.f32.vlgmr.msra.gmra.mxu1 %vm3861_vm13, %v4837_v11 }
 0x305   : > { %4973 = vmatprep.mubr.f32.mxu1 %v10606_v32  ;;  %v4697_v39 = vpop.f32.mrf.mxu0 }
 0x307   : > { %v4699_v33 = vpop.f32.mrf.mxu0 }
 0x308   : > { %6450 = vmatmul.mubr.msk.f32.gmra.mxu1 %vm3861_vm13, %v4844_v34 }
 0x309   : > { %4979 = vmatprep.mubr.f32.mxu1 %v10606_v32 }
 0x30c   : > { %6451 = vmatmul.mubr.msk.f32.gmra.mxu1 %vm3861_vm13, %v4851_v14 }
 0x30d   : > { %4985 = vmatprep.mubr.f32.mxu1 %v10606_v32 }
 0x310   : > { %6452 = vmatmul.mubr.msk.f32.gmra.mxu1 %vm3861_vm13, %v4858_v55 }
 0x311   : > { %4991 = vmatprep.mubr.f32.mxu1 %v10606_v32 }
 0x314   : > { %6453 = vmatmul.mubr.msk.f32.gmra.mxu1 %vm3861_vm13, %v4865_v52  ;;  %v3950_v40 = vpop.f32.mrf.mxu1 }
 0x315   : > { %4997 = vmatprep.mubr.f32.mxu1 %v10606_v32 }
 0x316   : > { %v3952_v49 = vpop.f32.mrf.mxu1 }
 0x318   : > { %6454 = vmatmul.mubr.msk.f32.gmra.mxu1 %vm3861_vm13, %v9683_v30 }
 0x319   : > { %5003 = vmatprep.mubr.f32.mxu1 %v10606_v32 }
 0x31c   : > { %6455 = vmatmul.mubr.msk.f32.gmra.mxu1 %vm3861_vm13, %v9704_v5 }
 0x31d   : > { %5009 = vmatprep.mubr.f32.mxu1 %v10606_v32  ;;  %v4703_v34 = vpop.f32.mrf.mxu0 }
 0x31f   : > { %v4705_v0 = vpop.f32.mrf.mxu0 }
 0x320   : > { %6456 = vmatmul.mubr.msk.f32.gmra.mxu1 %vm3861_vm13, %v9730_v63 }
 0x32a   : > { %v9894_v24 = vpop.f32.mrf.mxu1 }
 0x32c   : > { %v9896_v51 = vpop.f32.mrf.mxu1 }
 0x32f   : > { %v4709_v12 = vpop.f32.mrf.mxu0 }
 0x331   : > { %v4711_v47 = vpop.f32.mrf.mxu0 }
 0x33e   : > { %v9898_v56 = vpop.f32.mrf.mxu1 }
 0x340   : > { %v9900_v30 = vpop.f32.mrf.mxu1 }
 0x345   : > { %v4715_v62 = vpop.f32.mrf.mxu0 }
 0x353   : > { %v9902_v4 = vpop.f32.mrf.mxu1 }
 0x355   : > { %v9904_v5 = vpop.f32.mrf.mxu1 }
 0x368   : > { %v9906_v36 = vpop.f32.mrf.mxu1 }
 0x36a   : > { %v9908_v19 = vpop.f32.mrf.mxu1 }
 0x37b   : > { %v9910_v63 = vpop.f32.mrf.mxu1 }
 0x37d   : > { %v9912_v54 = vpop.f32.mrf.mxu1 }
 0x380   : > { %v9914_v48 = vpop.f32.mrf.mxu1 }
 0x382   : > { %v9916_v7 = vpop.f32.mrf.mxu1 }
 0x383   : > { %10712 = vst [vmem:[#allocation30_spill] sm:$0xff] %v9916_v7 }
 0x384   : > { %v4169_v61 = vpop.f32.mrf.mxu1 }
 0x385   : > { %v4170_v9 = vadd.f32 %v4169_v61, %v3944_v21  ;;  %v9956_v21 = vrot.slane %v5032_v8, %v10597_v50  ;;  %v10715_v61 = vld [vmem:[#allocation44_spill] sm:$0xff] }
 0x386   : > { %v4171_v16 = vpop.f32.mrf.mxu1 }
 0x387   : > { %v4172_v42 = vadd.f32 %v4171_v16, %v3946_v60  ;;  %v10716_v16 = vsub.s32 1, %v10715_v61 }
 0x388   : > { %v4175_v1 = vpop.f32.mrf.mxu1 }
 0x389   : > { %v4176_v55 = vadd.f32 %v4175_v1, %v3950_v40  ;;  %v4717_v1 = vpop.f32.mrf.mxu0 }
 0x38a   : > { %v4177_v17 = vpop.f32.mrf.mxu1 }
 0x38b   : > { %v4178_v52 = vadd.f32 %v4177_v17, %v3952_v49 }
 0x38c   : > { %v4181_v13 = vpop.f32.mrf.mxu1 }
 0x38e   : > { %v4183_v58 = vpop.f32.mrf.mxu1 }
 0x390   : > { %v4187_v2 = vpop.f32.mrf.mxu1 }
 0x392   : > { %v9918_v29 = vpop.f32.mrf.mxu1 }
 0x394   : > { %v9920_v28 = vpop.f32.mrf.mxu1 }
 0x396   : > { %v9922_v38 = vpop.f32.mrf.mxu1 }
 0x398   : > { %v9924_v46 = vpop.f32.mrf.mxu1 }
 0x39a   : > { %v9926_v35 = vpop.f32.mrf.mxu1 }
 0x39c   : > { %v9928_v6 = vpop.f32.mrf.mxu1 }
 0x39e   : > { %v9930_v43 = vpop.f32.mrf.mxu1 }
 0x3a0   : > { %v9932_v15 = vpop.f32.mrf.mxu1 }
 0x3a2   : > { %v9934_v10 = vpop.f32.mrf.mxu1 }
 0x3a3   : > { %10713 = vst [vmem:[#allocation19_spill] sm:$0xff] %v9934_v10 }
 0x3a4   : > { %v4425_v11 = vpop.f32.mrf.mxu1 }
 0x3a5   : > { %v4472_v31 = vadd.f32 %v4425_v11, %v4170_v9  ;;  %v9960_v11 = vrot.slane %v5032_v8, %v10716_v16  ;;  %v4182_v9 = vadd.f32 %v4181_v13, %v9894_v24 }
 0x3a6   : > { %v4427_v44 = vpop.f32.mrf.mxu1 }
 0x3a7   : > { %v4473_v23 = vadd.f32 %v4427_v44, %v4172_v42  ;;  %v4744_v10 = vadd.f32 %v4697_v39, %v4472_v31  ;;  %v4184_v44 = vadd.f32 %v4183_v58, %v9896_v51  ;;  %v4721_v31 = vpop.f32.mrf.mxu0  ;;  %v4190_v58 = vadd.f32 %v9918_v29, %v9900_v30 }
 0x3a8   : > { %v4431_v41 = vpop.f32.mrf.mxu1 }
 0x3a9   : > { %v4474_v32 = vadd.f32 %v4431_v41, %v4176_v55  ;;  %v4745_v40 = vadd.f32 %v4699_v33, %v4473_v23  ;;  %v4188_v55 = vadd.f32 %v4187_v2, %v9898_v56  ;;  %v4723_v2 = vpop.f32.mrf.mxu0 }
 0x3aa   : > { %v4433_v3 = vpop.f32.mrf.mxu1 }
 0x3ab   : > { %v4746_v39 = vadd.f32 %v4703_v34, %v4474_v32  ;;  %v4727_v29 = vpop.f32.mrf.mxu0 }
 0x3ac   : > { %v4437_v25 = vpop.f32.mrf.mxu1 }
 0x3ad   : > { %v4476_v49 = vadd.f32 %v4437_v25, %v4182_v9  ;;  %v4194_v25 = vadd.f32 %v9920_v28, %v9902_v4 }
 0x3ae   : > { %v4439_v22 = vpop.f32.mrf.mxu1 }
 0x3af   : > { %v4477_v61 = vadd.f32 %v4439_v22, %v4184_v44  ;;  %v4748_v56 = vadd.f32 %v4709_v12, %v4476_v49  ;;  %v4206_v44 = vadd.f32 %v9928_v6, %v9910_v63 }
 0x3b0   : > { %v4443_v26 = vpop.f32.mrf.mxu1 }
 0x3b1   : > { %v4749_v30 = vadd.f32 %v4711_v47, %v4477_v61 }
 0x3b2   : > { %v4445_v57 = vpop.f32.mrf.mxu1 }
 0x3b3   : > { %v4479_v33 = vadd.f32 %v4445_v57, %v4190_v58  ;;  %v4200_v57 = vadd.f32 %v9924_v46, %v9906_v36 }
 0x3b4   : > { %v9936_v20 = vpop.f32.mrf.mxu1 }
 0x3b5   : > { %v4480_v12 = vadd.f32 %v9936_v20, %v4194_v25  ;;  %v4202_v20 = vadd.f32 %v9926_v35, %v9908_v19 }
 0x3b6   : > { %v9938_v59 = vpop.f32.mrf.mxu1 }
 0x3b7   : > { %v4752_v46 = vadd.f32 %v4721_v31, %v4480_v12 }
 0x3b8   : > { %v9940_v18 = vpop.f32.mrf.mxu1 }
 0x3ba   : > { %v9942_v37 = vpop.f32.mrf.mxu1 }
 0x3bc   : > { %v9944_v53 = vpop.f32.mrf.mxu1 }
 0x3be   : > { %v9946_v14 = vpop.f32.mrf.mxu1 }
 0x3c0   : > { %v9948_v45 = vpop.f32.mrf.mxu1 }
 0x3c1   : > { %10714 = vst [vmem:[#allocation9_spill] sm:$0xff] %v9948_v45  ;;  %v4475_v45 = vadd.f32 %v4433_v3, %v4178_v52 }
 0x3c2   : > { %v9953_v27 = vpop.f32.mrf.mxu1 }
 0x3c3   : > { %v4747_v51 = vadd.f32 %v4705_v0, %v4475_v45 }
 0x3c4   : > { %v4969_v60 = vpop.f32.mrf.mxu1 }
 0x3c5   : > { %v5016_v7 = vadd.f32 %v4969_v60, %v4744_v10  ;;  %v4478_v10 = vadd.f32 %v4443_v26, %v4188_v55  ;;  %v4196_v26 = vadd.f32 %v9922_v38, %v9904_v5  ;;  %v4751_v5 = vadd.f32 %v4717_v1, %v4479_v33  ;;  %v4729_v38 = vpop.f32.mrf.mxu0 }
 0x3c6   : > { %v4971_v42 = vpop.f32.mrf.mxu1  ;;  %v4483_v1 = vadd.f32 %v9942_v37, %v4202_v20  ;;  %v4212_v55 = vadd.f32 %v9932_v15, %v9914_v48  ;;  %v5686_v20 = vld [vmem:[%s10411_s5 + $0x68] sm:$0xff] }
 0x3c7   : > { %v9965_v17 = vadd.f32 %v9956_v21, %v5016_v7  ;;  %v5017_v41 = vadd.f32 %v4971_v42, %v4745_v40  ;;  %v4750_v28 = vadd.f32 %v4715_v62, %v4478_v10  ;;  %v4481_v47 = vadd.f32 %v9938_v59, %v4196_v26  ;;  %v4733_v59 = vpop.f32.mrf.mxu0 }
 0x3c8   : > { %v4975_v8 = vpop.f32.mrf.mxu1  ;;  %v4482_v62 = vadd.f32 %v9940_v18, %v4200_v57  ;;  %v4208_v18 = vadd.f32 %v9930_v43, %v9912_v54  ;;  %v4755_v43 = vadd.f32 %v4729_v38, %v4483_v1  ;;  %v5712_v38 = vld [vmem:[%s10411_s5 + $0x138] sm:$0xff]  ;;  %v5709_v1 = vld [vmem:[%s10411_s5 + $0x120] sm:$0xff] }
 0x3c9   : > { %v5045_v24 = vadd.f32 %v9960_v11, %v5017_v41  ;;  %v5018_v13 = vadd.f32 %v4975_v8, %v4746_v39  ;;  %5076 = vrot.lane.b32.xlu0 %v9965_v17, %s6699_s22  ;;  %v4753_v35 = vadd.f32 %v4723_v2, %v4481_v47  ;;  %v4484_v39 = vadd.f32 %v9944_v53, %v4206_v44  ;;  %v4735_v37 = vpop.f32.mrf.mxu0  ;;  %v10717_v53 = vld [vmem:[#allocation30_spill] sm:$0xff]  ;;  %v5710_v44 = vld [vmem:[%s10411_s5 + $0x128] sm:$0xff] }
 0x3ca   : > { %v4977_v7 = vpop.f32.mrf.mxu1  ;;  %v4754_v6 = vadd.f32 %v4727_v29, %v4482_v62  ;;  %v4485_v61 = vadd.f32 %v9946_v14, %v4208_v18  ;;  %6552 = vmatpush3.msra.mxu1 %v5712_v38  ;;  %v10720_v62 = vmov 0.0   ;;  %v5698_v18 = vld [vmem:[%s10411_s5 + $0xc8] sm:$0xff] }
 0x3cb   : > { %v9974_v32 = vadd.f32 %v9956_v21, %v5018_v13  ;;  %v5019_v3 = vadd.f32 %v4977_v7, %v4747_v51  ;;  %5078 = vrot.lane.b32.xlu1 %v5045_v24, %s6699_s22  ;;  %v10718_v13 = vld [vmem:[#allocation19_spill] sm:$0xff]  ;;  %v10719_v7 = vld [vmem:[#allocation9_spill] sm:$0xff]  ;;  %v4756_v15 = vadd.f32 %v4733_v59, %v4484_v39  ;;  %v4739_v14 = vpop.f32.mrf.mxu0  ;;  %6553 = vmatprep.subr.mxu1 %v10720_v62  ;;  %v5700_v59 = vld [vmem:[%s10411_s5 + $0xd8] sm:$0xff] }
 0x3cc   : > { %v4981_v22 = vpop.f32.mrf.mxu1  ;;  %v4214_v51 = vadd.f32 %v10718_v13, %v10717_v53  ;;  %v4486_v10 = vadd.f32 %v10719_v7, %v4212_v55  ;;  %v4757_v33 = vadd.f32 %v4735_v37, %v4485_v61  ;;  %v5682_v39 = vld [vmem:[%s10411_s5 + $0x48] sm:$0xff]  ;;  %v5696_v37 = vld [vmem:[%s10411_s5 + $0xb8] sm:$0xff]  ;;  %v5679_v61 = vld [vmem:[%s10411_s5 + $0x30] sm:$0xff]  ;;  %6567 = vmatprep.mubr.msk.f32.mxu1 %vm6702_vm15, %v10720_v62 }
 0x3cd   : > { %v5047_v34 = vadd.f32 %v9960_v11, %v5019_v3  ;;  %v5020_v0 = vadd.f32 %v4981_v22, %v4748_v56  ;;  %5080 = vrot.lane.b32.xlu0 %v9974_v32, %s6699_s22  ;;  %v4741_v26 = vpop.f32.mrf.mxu0  ;;  %v5680_v55 = vld [vmem:[%s10411_s5 + $0x38] sm:$0xff]  ;;  %v5677_v53 = vld [vmem:[%s10411_s5 + $0x20] sm:$0xff] }
 0x3ce   : > { %v4983_v45 = vpop.f32.mrf.mxu1  ;;  %v4487_v2 = vadd.f32 %v9953_v27, %v4214_v51  ;;  %v4758_v29 = vadd.f32 %v4739_v14, %v4486_v10  ;;  %v5692_v13 = vld [vmem:[%s10411_s5 + $0x98] sm:$0xff] }
 0x3cf   : > { %v9986_v23 = vadd.f32 %v9956_v21, %v5020_v0  ;;  %v5021_v4 = vadd.f32 %v4983_v45, %v4749_v30  ;;  %5082 = vrot.lane.b32.xlu1 %v5047_v34, %s6699_s22  ;;  %v5676_v51 = vld [vmem:[%s10411_s5 + $0x18] sm:$0xff] }
 0x3d0   : > { %v4987_v52 = vpop.f32.mrf.mxu1 }
 0x3d1   : > { %v5049_v60 = vadd.f32 %v9960_v11, %v5021_v4  ;;  %v5022_v16 = vadd.f32 %v4987_v52, %v4750_v28  ;;  %5084 = vrot.lane.b32.xlu0 %v9986_v23, %s6699_s22  ;;  %v4759_v4 = vadd.f32 %v4741_v26, %v4487_v2  ;;  %v10721_v2 = vld [vmem:[#allocation8_spill] sm:$0xff] }
 0x3d2   : > { %v4989_v9 = vpop.f32.mrf.mxu1 }
 0x3d3   : > { %v9999_v40 = vadd.f32 %v9956_v21, %v5022_v16  ;;  %v5023_v36 = vadd.f32 %v4989_v9, %v4751_v5  ;;  %5086 = vrot.lane.b32.xlu1 %v5049_v60, %s6699_s22  ;;  %v5704_v60 = vld [vmem:[%s10411_s5 + $0xf8] sm:$0xff]  ;;  %v5702_v5 = vld [vmem:[%s10411_s5 + $0xe8] sm:$0xff]  ;;  %v5701_v9 = vld [vmem:[%s10411_s5 + $0xe0] sm:$0xff] }
 0x3d4   : > { %v4993_v42 = vpop.f32.mrf.mxu1  ;;  %v5688_v16 = vld [vmem:[%s10411_s5 + $0x78] sm:$0xff]  ;;  %6499 = vmatprep.subr.mxu0 %v5704_v60 }
 0x3d5   : > { %v5051_v49 = vadd.f32 %v9960_v11, %v5023_v36  ;;  %v5024_v19 = vadd.f32 %v4993_v42, %v4752_v46  ;;  %5088 = vrot.lane.b32.xlu0 %v9999_v40, %s6699_s22  ;;  %6500 = vmatpush3.msra.mxu0 %v5688_v16  ;;  %v5711_v36 = vld [vmem:[%s10411_s5 + $0x130] sm:$0xff]  ;;  %v5685_v46 = vld [vmem:[%s10411_s5 + $0x60] sm:$0xff]  ;;  %v5684_v42 = vld [vmem:[%s10411_s5 + $0x58] sm:$0xff] }
 0x3d6   : > { %v4995_v41 = vpop.f32.mrf.mxu1  ;;  %6554 = vmatpush3.msra.mxu1 %v5711_v36 }
 0x3d7   : > { %v10012_v31 = vadd.f32 %v9956_v21, %v5024_v19  ;;  %v5025_v63 = vadd.f32 %v4995_v41, %v4753_v35  ;;  %5090 = vrot.lane.b32.xlu1 %v5051_v49, %s6699_s22  ;;  %6555 = vmatprep.subr.mxu1 %v10720_v62  ;;  %v5699_v49 = vld [vmem:[%s10411_s5 + $0xd0] sm:$0xff]  ;;  %v5708_v35 = vld [vmem:[%s10411_s5 + $0x118] sm:$0xff] }
 0x3d8   : > { %v4999_v8 = vpop.f32.mrf.mxu1  ;;  %6556 = vmatpush3.msra.mxu1 %v5710_v44  ;;  %v5683_v19 = vld [vmem:[%s10411_s5 + $0x50] sm:$0xff] }
 0x3d9   : > { %v5053_v24 = vadd.f32 %v9960_v11, %v5025_v63  ;;  %v5026_v54 = vadd.f32 %v4999_v8, %v4754_v6  ;;  %5092 = vrot.lane.b32.xlu0 %v10012_v31, %s6699_s22  ;;  %6557 = vmatprep.subr.mxu1 %v10720_v62  ;;  %v5707_v41 = vld [vmem:[%s10411_s5 + $0x110] sm:$0xff]  ;;  %v5697_v63 = vld [vmem:[%s10411_s5 + $0xc0] sm:$0xff] }
 0x3da   : > { %v5001_v58 = vpop.f32.mrf.mxu1  ;;  %6558 = vmatpush3.msra.mxu1 %v5709_v1  ;;  %v5681_v6 = vld [vmem:[%s10411_s5 + $0x40] sm:$0xff]  ;;  %v5695_v8 = vld [vmem:[%s10411_s5 + $0xb0] sm:$0xff] }
 0x3db   : > { %v10025_v3 = vadd.f32 %v9956_v21, %v5026_v54  ;;  %v5027_v48 = vadd.f32 %v5001_v58, %v4755_v43  ;;  %5094 = vrot.lane.b32.xlu1 %v5053_v24, %s6699_s22  ;;  %6559 = vmatprep.subr.mxu1 %v10720_v62  ;;  %v5694_v24 = vld [vmem:[%s10411_s5 + $0xa8] sm:$0xff]  ;;  %v5693_v43 = vld [vmem:[%s10411_s5 + $0xa0] sm:$0xff]  ;;  %v5691_v58 = vld [vmem:[%s10411_s5 + $0x90] sm:$0xff] }
 0x3dc   : > { %v5005_v56 = vpop.f32.mrf.mxu1  ;;  %6560 = vmatpush3.msra.mxu1 %v5708_v35  ;;  %v5678_v54 = vld [vmem:[%s10411_s5 + $0x28] sm:$0xff] }
 0x3dd   : > { %v5055_v25 = vadd.f32 %v9960_v11, %v5027_v48  ;;  %v5028_v22 = vadd.f32 %v5005_v56, %v4756_v15  ;;  %5096 = vrot.lane.b32.xlu0 %v10025_v3, %s6699_s22  ;;  %6561 = vmatprep.subr.mxu1 %v10720_v62 }
 0x3de   : > { %v5007_v34 = vpop.f32.mrf.mxu1  ;;  %6562 = vmatpush3.msra.mxu1 %v5707_v41 }
 0x3df   : > { %v10033_v0 = vadd.f32 %v9956_v21, %v5028_v22  ;;  %v5029_v30 = vadd.f32 %v5007_v34, %v4757_v33  ;;  %5098 = vrot.lane.b32.xlu1 %v5055_v25, %s6699_s22  ;;  %6563 = vmatprep.subr.mxu1 %v10720_v62 }
 0x3e0   : > { %v5011_v45 = vpop.f32.mrf.mxu1 }
 0x3e1   : > { %v5057_v12 = vadd.f32 %v9960_v11, %v5029_v30  ;;  %v5030_v27 = vadd.f32 %v5011_v45, %v4758_v29  ;;  %5100 = vrot.lane.b32.xlu0 %v10033_v0, %s6699_s22 }
 0x3e2   : > { %v5013_v28 = vpop.f32.mrf.mxu1 }
 0x3e3   : > { %v10040_v57 = vadd.f32 %v9956_v21, %v5030_v27  ;;  %v5031_v52 = vadd.f32 %v5013_v28, %v4759_v4  ;;  %5102 = vrot.lane.b32.xlu1 %v5057_v12, %s6699_s22  ;;  %v5703_v21 = vld [vmem:[%s10411_s5 + $0xf0] sm:$0xff] }
 0x3e4   : > { %6501 = vmatprep.subr.mxu0 %v5703_v21 }
 0x3e5   : > { %v5059_v47 = vadd.f32 %v9960_v11, %v5031_v52  ;;  %5104 = vrot.lane.b32.xlu0 %v10040_v57, %s6699_s22  ;;  %v5687_v11 = vld [vmem:[%s10411_s5 + $0x70] sm:$0xff] }
 0x3e6   : > { %6502 = vmatpush3.msra.mxu0 %v5687_v11 }
 0x3e7   : > { %5106 = vrot.lane.b32.xlu1 %v5059_v47, %s6699_s22  ;;  %6503 = vmatprep.subr.mxu0 %v5702_v5 }
 0x3e8   : > { %6504 = vmatpush3.msra.mxu0 %v5686_v20 }
 0x3e9   : > { %6505 = vmatprep.subr.mxu0 %v5701_v9 }
 0x3ea   : > { %6506 = vmatpush3.msra.mxu0 %v5685_v46 }
 0x3eb   : > { %6507 = vmatprep.subr.mxu0 %v5700_v59 }
 0x3ec   : > { %6508 = vmatpush3.msra.mxu0 %v5684_v42 }
 0x3ed   : > { %6509 = vmatprep.subr.mxu0 %v5699_v49 }
 0x3ee   : > { %6510 = vmatpush3.msra.mxu0 %v5683_v19 }
 0x3ef   : > { %6511 = vmatprep.subr.mxu0 %v5698_v18 }
 0x3f0   : > { %6512 = vmatpush3.msra.mxu0 %v5682_v39 }
 0x3f1   : > { %6513 = vmatprep.subr.mxu0 %v5697_v63 }
 0x3f2   : > { %6514 = vmatpush3.msra.mxu0 %v5681_v6 }
 0x3f3   : > { %6515 = vmatprep.subr.mxu0 %v5696_v37 }
 0x3f4   : > { %6516 = vmatpush3.msra.mxu0 %v5680_v55 }
 0x3f5   : > { %6517 = vmatprep.subr.mxu0 %v5695_v8 }
 0x3f6   : > { %6518 = vmatpush3.msra.mxu0 %v5679_v61 }
 0x3f7   : > { %6519 = vmatprep.subr.mxu0 %v5694_v24 }
 0x3f8   : > { %6520 = vmatpush3.msra.mxu0 %v5678_v54 }
 0x3f9   : > { %6521 = vmatprep.subr.mxu0 %v5693_v43 }
 0x3fa   : > { %6522 = vmatpush3.msra.mxu0 %v5677_v53 }
 0x3fb   : > { %6523 = vmatprep.subr.mxu0 %v5692_v13 }
 0x3fc   : > { %6524 = vmatpush3.msra.mxu0 %v5676_v51 }
 0x3fd   : > { %6525 = vmatprep.subr.mxu0 %v5691_v58 }
 0x43b   : > { %v5077_v7 = vpop.permute.xlu0 %5076 }
 0x43d   : > { %v5079_v10 = vpop.permute.xlu1 %5078 }
 0x43e   : > { %v5109_v48 = vsel %vm5108_vm14, %v5077_v7, %v5079_v10 }
 0x43f   : > { %v5125_v15 = vmax.f32 %v9965_v17, %v5109_v48  ;;  %v5081_v14 = vpop.permute.xlu0 %5080 }
 0x441   : > { %v5141_v56 = vcombine.high %v5125_v15, %v5125_v15  ;;  %v5148_v25 = vrot.slane %v5125_v15, %v10721_v2  ;;  %v5083_v22 = vpop.permute.xlu1 %5082 }
 0x442   : > { %v5110_v33 = vsel %vm5108_vm14, %v5081_v14, %v5083_v22 }
 0x443   : > { %v5155_v34 = vrot.slane %v5141_v56, %v10721_v2  ;;  %v5156_v30 = vcombine.high %v5148_v25, %v5148_v25  ;;  %v6457_v29 = vrot.slane %v5148_v25, 9  ;;  %v5126_v26 = vmax.f32 %v9974_v32, %v5110_v33  ;;  %v5085_v45 = vpop.permute.xlu0 %5084 }
 0x445   : > { %v5157_v12 = vcombine.high %v5155_v34, %v5155_v34  ;;  %v6458_v27 = vrot.slane %v5156_v30, 9  ;;  %v6459_v4 = vrot.slane %v5155_v34, 9  ;;  %v5405_v28 = vmax.f32 %v5148_v25, %v6457_v29  ;;  %v5087_v52 = vpop.permute.xlu1 %5086 }
 0x446   : > { %v5158_v17 = vcombine.high %v5126_v26, %v5126_v26  ;;  %v5165_v47 = vrot.slane %v5126_v26, %v10721_v2  ;;  %v5111_v60 = vsel %vm5108_vm14, %v5085_v45, %v5087_v52 }
 0x447   : > { %v6460_v16 = vrot.slane %v5157_v12, 9  ;;  %v5406_v21 = vmax.f32 %v5156_v30, %v6458_v27  ;;  %v5407_v11 = vmax.f32 %v5155_v34, %v6459_v4  ;;  %v5437_v5 = vmax.f32 %v5405_v28, 0.0  ;;  %v5089_v38 = vpop.permute.xlu0 %5088 }
 0x448   : > { %v5172_v20 = vrot.slane %v5158_v17, %v10721_v2  ;;  %v5173_v9 = vcombine.high %v5165_v47, %v5165_v47  ;;  %v6461_v32 = vrot.slane %v5165_v47, 9  ;;  %v5127_v36 = vmax.f32 %v9986_v23, %v5111_v60 }
 0x449   : > { %v5408_v46 = vmax.f32 %v5157_v12, %v6460_v16  ;;  %v5438_v59 = vmax.f32 %v5406_v21, 0.0  ;;  %v5439_v44 = vmax.f32 %v5407_v11, 0.0  ;;  %v5091_v42 = vpop.permute.xlu1 %5090  ;;  %v5480_v41 = vrot.slane %v5437_v5, %v10597_v50 }
 0x44a   : > { %v5174_v1 = vcombine.high %v5172_v20, %v5172_v20  ;;  %v6462_v49 = vrot.slane %v5173_v9, 9  ;;  %v6463_v19 = vrot.slane %v5172_v20, 9  ;;  %v5409_v35 = vmax.f32 %v5165_v47, %v6461_v32 }
 0x44b   : > { %v5440_v18 = vmax.f32 %v5408_v46, 0.0  ;;  %v5175_v39 = vcombine.high %v5127_v36, %v5127_v36  ;;  %v5093_v63 = vpop.permute.xlu0 %5092  ;;  %v10164_v61 = vrot.slane %v5438_v59, %v10597_v50  ;;  %v10167_v23 = vrot.slane %v5439_v44, %v10597_v50 }
 0x44c   : > { %v6464_v6 = vrot.slane %v5174_v1, 9  ;;  %v5410_v37 = vmax.f32 %v5173_v9, %v6462_v49  ;;  %v5411_v55 = vmax.f32 %v5172_v20, %v6463_v19  ;;  %v5441_v8 = vmax.f32 %v5409_v35, 0.0 }
 0x44d   : > { %v5182_v24 = vrot.slane %v5127_v36, %v10721_v2  ;;  %v5189_v54 = vrot.slane %v5175_v39, %v10721_v2  ;;  %v5095_v43 = vpop.permute.xlu1 %5094  ;;  %v5112_v58 = vsel %vm5108_vm14, %v5089_v38, %v5091_v42  ;;  %v10174_v14 = vrot.slane %v5440_v18, %v10597_v50 }
 0x44e   : > { %v5412_v53 = vmax.f32 %v5174_v1, %v6464_v6  ;;  %v5442_v13 = vmax.f32 %v5410_v37, 0.0  ;;  %v5484_v51 = vrot.slane %v5441_v8, %v10597_v50  ;;  %v5443_v56 = vmax.f32 %v5411_v55, 0.0 }
 0x44f   : > { %v5190_v7 = vcombine.high %v5182_v24, %v5182_v24  ;;  %v5191_v10 = vcombine.high %v5189_v54, %v5189_v54  ;;  %v6465_v48 = vrot.slane %v5182_v24, 9  ;;  %v6467_v15 = vrot.slane %v5189_v54, 9  ;;  %v5097_v26 = vpop.permute.xlu0 %5096 }
 0x450   : > { %v5444_v25 = vmax.f32 %v5412_v53, 0.0  ;;  %v10177_v22 = vsel %vm3798_vm6, %v5484_v51, %v5480_v41  ;;  %v10180_v12 = vrot.slane %v5442_v13, %v10597_v50  ;;  %v5128_v27 = vmax.f32 %v9999_v40, %v5112_v58 }
 0x451   : > { %v6466_v33 = vrot.slane %v5190_v7, 9  ;;  %v6468_v34 = vrot.slane %v5191_v10, 9  ;;  %v5413_v30 = vmax.f32 %v5182_v24, %v6465_v48  ;;  %v5415_v29 = vmax.f32 %v5189_v54, %v6467_v15  ;;  %v5099_v45 = vpop.permute.xlu1 %5098 }
 0x452   : > { %v5113_v4 = vsel %vm5108_vm14, %v5093_v63, %v5095_v43  ;;  %v5114_v28 = vsel %vm5108_vm14, %v5097_v26, %v5099_v45  ;;  %v10186_v16 = vrot.slane %v5443_v56, %v10597_v50  ;;  %v5192_v21 = vcombine.high %v5128_v27, %v5128_v27 }
 0x453   : > { %v5414_v52 = vmax.f32 %v5190_v7, %v6466_v33  ;;  %v5416_v17 = vmax.f32 %v5191_v10, %v6468_v34  ;;  %v5445_v47 = vmax.f32 %v5413_v30, 0.0  ;;  %v5447_v60 = vmax.f32 %v5415_v29, 0.0  ;;  %v5101_v54 = vpop.permute.xlu0 %5100 }
 0x454   : > { %v5199_v11 = vrot.slane %v5128_v27, %v10721_v2  ;;  %v5129_v5 = vmax.f32 %v10012_v31, %v5113_v4  ;;  %v10191_v38 = vrot.slane %v5444_v25, %v10597_v50  ;;  %v5130_v9 = vmax.f32 %v10025_v3, %v5114_v28 }
 0x455   : > { %v5446_v40 = vmax.f32 %v5414_v52, 0.0  ;;  %v5448_v20 = vmax.f32 %v5416_v17, 0.0  ;;  %v5206_v32 = vrot.slane %v5192_v21, %v10721_v2  ;;  %v10196_v44 = vrot.slane %v5445_v47, %v10597_v50  ;;  %v5103_v3 = vpop.permute.xlu1 %5102 }
 0x456   : > { %v5207_v36 = vcombine.high %v5199_v11, %v5199_v11  ;;  %v6469_v46 = vrot.slane %v5199_v11, 9  ;;  %v5209_v59 = vcombine.high %v5129_v5, %v5129_v5  ;;  %v10200_v1 = vrot.slane %v5447_v60, %v10597_v50 }
 0x457   : > { %v5536_v42 = vrot.slane %v5446_v40, %v10597_v50  ;;  %v5216_v31 = vrot.slane %v5129_v5, %v10721_v2  ;;  %v5208_v49 = vcombine.high %v5206_v32, %v5206_v32  ;;  %v6471_v35 = vrot.slane %v5206_v32, 9 }
 0x458   : > { %v6470_v19 = vrot.slane %v5207_v36, 9  ;;  %v5417_v18 = vmax.f32 %v5199_v11, %v6469_v46  ;;  %v5223_v41 = vrot.slane %v5209_v59, %v10721_v2  ;;  %v5226_v6 = vcombine.high %v5130_v9, %v5130_v9  ;;  %v5105_v11 = vpop.permute.xlu0 %5104 }
 0x459   : > { %v5224_v39 = vcombine.high %v5216_v31, %v5216_v31  ;;  %v6473_v63 = vrot.slane %v5216_v31, 9  ;;  %v6472_v37 = vrot.slane %v5208_v49, 9  ;;  %v5419_v8 = vmax.f32 %v5206_v32, %v6471_v35  ;;  %v5107_v45 = vpop.permute.xlu1 %5106 }
 0x45a   : > { %v5418_v55 = vmax.f32 %v5207_v36, %v6470_v19  ;;  %v5449_v24 = vmax.f32 %v5417_v18, 0.0  ;;  %v5225_v43 = vcombine.high %v5223_v41, %v5223_v41  ;;  %v6475_v13 = vrot.slane %v5223_v41, 9 }
 0x45b   : > { %v6474_v53 = vrot.slane %v5224_v39, 9  ;;  %v10204_v51 = vmax.f32 %v5216_v31, %v6473_v63  ;;  %v10207_v58 = vrot.slane %v5448_v20, %v10597_v50  ;;  %v10209_v7 = vmax.f32 %v5208_v49, %v6472_v37 }
 0x45c   : > { %v5450_v10 = vmax.f32 %v5418_v55, 0.0  ;;  %v5233_v48 = vrot.slane %v5130_v9, %v10721_v2  ;;  %v5451_v15 = vmax.f32 %v5419_v8, 0.0  ;;  %v6476_v56 = vrot.slane %v5225_v43, 9 }
 0x45d   : > { %v5422_v25 = vmax.f32 %v5224_v39, %v6474_v53  ;;  %v5423_v33 = vmax.f32 %v5223_v41, %v6475_v13  ;;  %v5452_v34 = vmax.f32 %v10209_v7, 0.0  ;;  %v10214_v30 = vrot.slane %v5449_v24, %v10597_v50 }
 0x45e   : > { %v5453_v29 = vmax.f32 %v10204_v51, 0.0  ;;  %v5240_v26 = vrot.slane %v5226_v6, %v10721_v2  ;;  %v5540_v27 = vrot.slane %v5450_v10, %v10597_v50  ;;  %v10219_v4 = vmax.f32 %v5225_v43, %v6476_v56  ;;  %v5674_v10 = vld [vmem:[%s10411_s5 + $0x8] sm:$0xff] }
 0x45f   : > { %v5454_v28 = vmax.f32 %v5422_v25, 0.0  ;;  %v5455_v52 = vmax.f32 %v5423_v33, 0.0  ;;  %v5241_v17 = vcombine.high %v5233_v48, %v5233_v48  ;;  %v6477_v60 = vrot.slane %v5233_v48, 9 }
 0x460   : > { %v10221_v47 = vcombine.high %v5240_v26, %v5240_v26  ;;  %v6479_v21 = vrot.slane %v5240_v26, 9  ;;  %v10224_v5 = vrot.slane %v5451_v15, %v10597_v50  ;;  %v5456_v40 = vmax.f32 %v10219_v4, 0.0  ;;  %v5705_v15 = vld [vmem:[%s10411_s5 + $0x100] sm:$0xff] }
 0x461   : > { %v5115_v20 = vsel %vm5108_vm14, %v5101_v54, %v5103_v3  ;;  %v5116_v9 = vsel %vm5108_vm14, %v5105_v11, %v5107_v45  ;;  %v6478_v32 = vrot.slane %v5241_v17, 9  ;;  %v10229_v36 = vmax.f32 %v5233_v48, %v6477_v60  ;;  %v5689_v48 = vld [vmem:[%s10411_s5 + $0x80] sm:$0xff] }
 0x462   : > { %v5427_v46 = vmax.f32 %v5240_v26, %v6479_v21  ;;  %v5544_v59 = vrot.slane %v5454_v28, %v10597_v50  ;;  %v6480_v31 = vrot.slane %v10221_v47, 9  ;;  %v5131_v49 = vmax.f32 %v10033_v0, %v5115_v20 }
 0x463   : > { %v5132_v19 = vmax.f32 %v10040_v57, %v5116_v9  ;;  %v5557_v35 = vsel %vm3798_vm6, %v10180_v12, %v10164_v61  ;;  %v5426_v18 = vmax.f32 %v5241_v17, %v6478_v32  ;;  %v5594_v39 = vrot.slane %v5455_v52, %v10597_v50  ;;  %v5675_v61 = vld [vmem:[%s10411_s5 + $0x10] sm:$0xff]  ;;  %v5690_v12 = vld [vmem:[%s10411_s5 + $0x88] sm:$0xff] }
 0x464   : > { %v5459_v3 = vmax.f32 %v5427_v46, 0.0  ;;  %v5558_v41 = vsel %vm3800_vm7, %v5536_v42, %v5557_v35  ;;  %v5243_v63 = vcombine.high %v5131_v49, %v5131_v49  ;;  %v5250_v6 = vrot.slane %v5131_v49, %v10721_v2  ;;  %v5706_v42 = vld [vmem:[%s10411_s5 + $0x108] sm:$0xff]  ;;  %6526 = vmatpush3.msra.mxu0 %v5675_v61  ;;  %v5673_v35 = vld [vmem:[%s10411_s5] sm:$0xff] }
 0x465   : > { %v5260_v37 = vcombine.high %v5132_v19, %v5132_v19  ;;  %v5267_v55 = vrot.slane %v5132_v19, %v10721_v2  ;;  %v5457_v0 = vmax.f32 %v10229_v36, 0.0  ;;  %v5458_v8 = vmax.f32 %v5426_v18, 0.0  ;;  %6564 = vmatpush3.msra.mxu1 %v5706_v42  ;;  %6527 = vmatprep.subr.mxu0 %v5690_v12 }
 0x466   : > { %v5559_v57 = vsel %vm3802_vm8, %v5540_v27, %v5558_v41  ;;  %v5598_v24 = vrot.slane %v5459_v3, %v10597_v50  ;;  %v5257_v54 = vrot.slane %v5243_v63, %v10721_v2  ;;  %v5258_v43 = vcombine.high %v5250_v6, %v5250_v6  ;;  %6565 = vmatprep.subr.mxu1 %v10720_v62 }
 0x467   : > { %v6481_v53 = vrot.slane %v5250_v6, 9  ;;  %v5274_v13 = vrot.slane %v5260_v37, %v10721_v2  ;;  %v5275_v56 = vcombine.high %v5267_v55, %v5267_v55  ;;  %v6485_v25 = vrot.slane %v5267_v55, 9  ;;  %6528 = vmatpush3.msra.mxu0 %v5674_v10  ;;  %6566 = vmatpush3.msra.mxu1 %v5705_v15 }
 0x468   : > { %v5548_v33 = vrot.slane %v5458_v8, %v10597_v50  ;;  %v5560_v2 = vsel %vm3804_vm9, %v5544_v59, %v5559_v57  ;;  %v5259_v26 = vcombine.high %v5257_v54, %v5257_v54  ;;  %v6482_v45 = vrot.slane %v5258_v43, 9  ;;  %6529 = vmatprep.subr.mxu0 %v5689_v48 }
 0x469   : > { %v6483_v27 = vrot.slane %v5257_v54, 9  ;;  %v5429_v28 = vmax.f32 %v5250_v6, %v6481_v53  ;;  %v5433_v52 = vmax.f32 %v5267_v55, %v6485_v25  ;;  %v6486_v17 = vrot.slane %v5275_v56, 9  ;;  %6530 = vmatpush3.msra.mxu0 %v5673_v35  ;;  %v6489_v35 = vld [vmem:[%s10412_s6] ss:$0 sm:$0xff] }
 0x46a   : > { %v5561_v60 = vsel %vm3806_vm10, %v5548_v33, %v5560_v2  ;;  %v6487_v21 = vrot.slane %v5274_v13, 9  ;;  %v5430_v20 = vmax.f32 %v5258_v43, %v6482_v45  ;;  %v5607_v32 = vsel %vm3798_vm6, %v10186_v16, %v10167_v23  ;;  %6570 = vmatprep.subr.mxu0 %v10720_v62 }
 0x46b   : > { %v5461_v11 = vmax.f32 %v5429_v28, 0.0  ;;  %v5431_v9 = vmax.f32 %v5257_v54, %v6483_v27  ;;  %v5465_v46 = vmax.f32 %v5433_v52, 0.0  ;;  %v5434_v59 = vmax.f32 %v5275_v56, %v6486_v17 }
 0x46c   : > { %v5435_v49 = vmax.f32 %v5274_v13, %v6487_v21  ;;  %v5608_v19 = vsel %vm3800_vm7, %v10200_v1, %v5607_v32  ;;  %v5462_v18 = vmax.f32 %v5430_v20, 0.0  ;;  %v5276_v63 = vcombine.high %v5274_v13, %v5274_v13  ;;  %v5869_v21 = vld [vmem:[%s10413_s7 + $0x28] sm:$0xff]  ;;  %v5867_v20 = vld [vmem:[%s10413_s7 + $0x18] sm:$0xff] }
 0x46d   : > { %v5463_v3 = vmax.f32 %v5431_v9, 0.0  ;;  %v5609_v41 = vsel %vm3802_vm8, %v10224_v5, %v5608_v19  ;;  %v5466_v6 = vmax.f32 %v5434_v59, 0.0  ;;  %v6484_v16 = vrot.slane %v5259_v26, 9  ;;  %v5866_v9 = vld [vmem:[%s10413_s7 + $0x10] sm:$0xff]  ;;  %v5865_v32 = vld [vmem:[%s10413_s7 + $0x8] sm:$0xff] }
 0x46e   : > { %v5467_v37 = vmax.f32 %v5435_v49, 0.0  ;;  %v5610_v23 = vsel %vm3804_vm9, %v5594_v39, %v5609_v41  ;;  %v5552_v1 = vrot.slane %v5462_v18, %v10597_v50  ;;  %v6488_v57 = vrot.slane %v5276_v63, 9 }
 0x46f   : > { %v5602_v55 = vrot.slane %v5463_v3, %v10597_v50  ;;  %v5611_v8 = vsel %vm3806_vm10, %v5598_v24, %v5610_v23  ;;  %v5556_v61 = vrot.slane %v5466_v6, %v10597_v50  ;;  %v5428_v12 = vmax.f32 %v10221_v47, %v6480_v31 }
 0x470   : > { %v5606_v5 = vrot.slane %v5467_v37, %v10597_v50  ;;  %v5432_v42 = vmax.f32 %v5259_v26, %v6484_v16  ;;  %v5562_v39 = vsel %vm3808_vm11, %v5552_v1, %v5561_v60  ;;  %v5436_v43 = vmax.f32 %v5276_v63, %v6488_v57  ;;  %v5870_v60 = vld [vmem:[%s10413_s7 + $0x30] sm:$0x3] }
 0x471   : > { %v5612_v54 = vsel %vm3808_vm11, %v5602_v55, %v5611_v8  ;;  %v5640_v53 = vrot.slane %v5452_v34, %v10597_v50  ;;  %v5563_v24 = vsel %vm3810_vm12, %v5556_v61, %v5562_v39  ;;  %v5460_v10 = vmax.f32 %v5428_v12, 0.0 }
 0x472   : > { %v5613_v13 = vsel %vm3810_vm12, %v5606_v5, %v5612_v54  ;;  %v5464_v48 = vmax.f32 %v5432_v42, 0.0  ;;  %v5496_v47 = vrot.slane %v5453_v29, %v10597_v50  ;;  %5564 = vrot.lane.b32.xlu0 %v5563_v24, %s6700_s17  ;;  %v5468_v31 = vmax.f32 %v5436_v43, 0.0  ;;  %s328_s17 = scalar_lea.vmem [#allocation2], %s6035_s29  ;;  %s6638_s29 = sshll.u32 %s6704_s13, 4  ;;  %s6639_s29 = int_to_ptr.vmem [resolvable:$false] %s6638_s29 }
 0x473   : > { %5614 = vrot.lane.b32.xlu1 %v5613_v13, %s6701_s24  ;;  %v5644_v7 = vrot.slane %v5456_v40, %v10597_v50  ;;  %v5657_v34 = vsel %vm3798_vm6, %v10191_v38, %v10174_v14  ;;  %v5500_v15 = vrot.slane %v5457_v0, %v10597_v50  ;;  %v5648_v51 = vrot.slane %v5460_v10, %v10597_v50  ;;  %s5972_s24 = sshll.u32 %s328_s17, 4  ;;  %s6640_s27 = scalar_lea.vmem %s6639_s29, 256  ;;  %s5973_s24 = int_to_ptr.vmem [resolvable:$true] %s5972_s24 }
 0x474   : > { %v5652_v29 = vrot.slane %v5464_v48, %v10597_v50  ;;  %v5658_v56 = vsel %vm3800_vm7, %v10207_v58, %v5657_v34  ;;  %v5656_v25 = vrot.slane %v5468_v31, %v10597_v50  ;;  %v5504_v40 = vrot.slane %v5461_v11, %v10597_v50  ;;  %v5868_v11 = vld [vmem:[%s10413_s7 + $0x20] sm:$0xff]  ;;  %s6634_s26 = scalar_lea.vmem %s5973_s24, 128  ;;  %p6641_p0 = scmp.lt.s32.totalorder %s5973_s24, %s6639_s29 }
 0x475   : > { %v5659_v4 = vsel %vm3802_vm8, %v5640_v53, %v5658_v56  ;;  %v5510_v14 = vsel %vm3800_vm7, %v10196_v44, %v10177_v22  ;;  %v5508_v36 = vrot.slane %v5465_v46, %v10597_v50  ;;  %v5864_v46 = vld [vmem:[%s10413_s7] sm:$0xff]  ;;  %vm5956_vm6 = vcmask 80896   ;;  %p6635_p11 = scmp.ne.s32.totalorder %s5973_s24, %s6634_s26  ;;  %p6642_p1 = scmp.lt.s32.totalorder %s6640_s27, %s6634_s26 }
 0x476   : > { %v5660_v38 = vsel %vm3804_vm9, %v5644_v7, %v5659_v4  ;;  %v5511_v0 = vsel %vm3802_vm8, %v10214_v30, %v5510_v14 }
 0x477   : > { %v5661_v33 = vsel %vm3806_vm10, %v5648_v51, %v5660_v38  ;;  %v5512_v58 = vsel %vm3804_vm9, %v5496_v47, %v5511_v0  ;;  %p6636_p12 = pnand %p6635_p11, %p6793_p5  ;;  %p6643_p2 = por %p6642_p1, %p6641_p0 }
 0x478   : > { %v5662_v2 = vsel %vm3808_vm11, %v5652_v29, %v5661_v33  ;;  %v5513_v26 = vsel %vm3806_vm10, %v5500_v15, %v5512_v58 }
 0x479   : > { %v5663_v22 = vsel %vm3810_vm12, %v5656_v25, %v5662_v2  ;;  %v5514_v44 = vsel %vm3808_vm11, %v5504_v40, %v5513_v26  ;;  %p6637_p13 = pneg %p6636_p12 }
 0x47a   : > { %5664 = vrot.lane.b32.xlu0 %v5663_v22, %s6703_s21  ;;  %v5515_v50 = vsel %vm3810_vm12, %v5508_v36, %v5514_v44 }
 0x47b   : > { %p6644_p3 = pnand %p6643_p2, %p6637_p13 }
 0x4e4   : > { %v5565_v30 = vpop.permute.xlu0 %5564 }
 0x4e5   : > { %v5615_v45 = vpop.permute.xlu1 %5614  ;;  %v5668_v17 = vsel %vm5667_vm3, %v5515_v50, %v5565_v30 }
 0x4e6   : > { %v5670_v27 = vsel %vm5669_vm0, %v5565_v30, %v5615_v45 }
 0x4ec   : > { %v5665_v28 = vpop.permute.xlu0 %5664 }
 0x4ed   : > { %6568 = vmatmul.mubr.msk.f32.vlgmr.msra.gmra.mxu1 %vm5720_vm1, %v5665_v28  ;;  %v5672_v52 = vsel %vm5671_vm2, %v5670_v27, %v5665_v28 }
 0x4ee   : > { %5787 = vmatprep.mubr.f32.mxu0 %v5672_v52 }
 0x4ef   : > { %5788 = vmatmul.mubr.f32.vlgmr.msra.gmra.mxu0 %v5668_v17 }
 0x4f0   : > { %6584 = vmatprep.mubr.msk.f32.mxu0 %vm6702_vm15, %v10720_v62  ;;  %6571 = vmatpush3.msk.msra.mxu0 %vm5882_vm4, %v5870_v60 }
 0x4f1   : > { %6572 = vmatprep.subr.mxu0 %v10720_v62 }
 0x4f2   : > { %6573 = vmatpush3.msra.mxu0 %v5869_v21 }
 0x4f3   : > { %6574 = vmatprep.subr.mxu0 %v10720_v62 }
 0x4f4   : > { %6575 = vmatpush3.msra.mxu0 %v5868_v11 }
 0x4f5   : > { %6576 = vmatprep.subr.mxu0 %v10720_v62 }
 0x4f6   : > { %6577 = vmatpush3.msra.mxu0 %v5867_v20 }
 0x4f7   : > { %6578 = vmatprep.subr.mxu0 %v10720_v62 }
 0x4f8   : > { %6579 = vmatpush3.msra.mxu0 %v5866_v9 }
 0x4f9   : > { %6580 = vmatprep.subr.mxu0 %v10720_v62 }
 0x4fa   : > { %6581 = vmatpush3.msra.mxu0 %v5865_v32 }
 0x4fb   : > { %6582 = vmatprep.subr.mxu0 %v10720_v62  ;;  %v6491_v62 = vld [vmem:[%s10414_s8] ss:$0 sm:$0xff] }
 0x4fc   : > { %6583 = vmatpush3.msra.mxu0 %v5864_v46 }
 0x5ad   : > { %v5859_v59 = vpop.f32.mrf.mxu1 }
 0x5af   : > { %v6531_v49 = vpop.f32.mrf.mxu0  ;;  %v6569_v19 = vpop.f32.mrf.mxu1 }
 0x5b1   : > { %v6532_v18 = vpop.f32.mrf.mxu0 }
 0x5b2   : > { %v6533_v3 = vadd.f32 %v6532_v18, %v6531_v49 }
 0x5b4   : > { %v5790_v41 = vadd.f32 %v6533_v3, %v6489_v35 }
 0x5b6   : > { %v5860_v63 = vadd.f32 %v5859_v59, %v5790_v41 }
 0x5b8   : > { %v5863_v6 = vmax.f32 %v5860_v63, 0.0 }
 0x5ba   : > { %6585 = vmatmul.mubr.msk.f32.vlgmr.msra.gmra.mxu0 %vm5878_vm5, %v5863_v6 }
 0x67a   : > { %v5952_v37 = vpop.f32.mrf.mxu0 }
 0x67b   : > { %v5953_v23 = vadd.f32 %v6491_v62, %v5952_v37 }
 0x67c   : > { %v6586_v16 = vpop.f32.mrf.mxu0 }
 0x67d   : > { %5957 = vst.msk [vmem:[%s328_s17] sm:$0xff] %vm5956_vm6, %v5953_v23 }
 0x67e   : > { %6647 = shalt.err (!%p6644_p3)
}
 0x67f   : > { %s6648_s14 = scalar_lea.hbm %s10371_s23, 128  ;;  %s6652_s17 = scalar_lea.hbm %s10415_s9, 256 }
 0x680   : > { %p6649_p4 = scmp.ne.s32.totalorder %s10371_s23, %s6648_s14  ;;  %p6653_p9 = scmp.lt.s32.totalorder %s10371_s23, %s10415_s9 }
 0x681   : > { %p6654_p10 = scmp.lt.s32.totalorder %s6652_s17, %s6648_s14 }
 0x682   : > { %p6650_p7 = pnand %p6649_p4, %p6793_p5 }
 0x683   : > { %p6655_p11 = por %p6654_p10, %p6653_p9 }
 0x684   : > { %p6651_p8 = pneg %p6650_p7 }
 0x686   : > { %p6656_p12 = pnand %p6655_p11, %p6651_p8 }
 0x688   : > { %6659 = shalt.err (!%p6656_p12)
}
 0x689   : > { %6587 = dma.vmem_to_hbm [thread:$0]  (%p6793_p5), %s5973_s24, 128, %s10371_s23, %s5959_s25  }
 0x68a PF: > { %p6593_p13 = scmp.ge.s32.totalorder %s6694_s12, 2  ;;  %s5984_s26 = sand.u32 1, %s6682_s30  }
 0x68b   : > { %s5985_s13 = scalar_lea.sflag [#allocation3], %s5984_s26 }
 0x68c   : > { %p6590_p0 = pnand %p6593_p13, %p6797_p6 }
 0x68e   : > { %p6591_p1 = pneg %p6590_p0 }
 0x690   : > { %6677 = dma.done.wait (%p6591_p1), %s5985_s13, 128  }
 0x691   : > { %6679 = vsyncadd (%p6591_p1), %s5985_s13, 4294967168  ;;  %p19_p2 = scmp.ge.s32.totalorder %s6780_s15, 4   ;;  %s10722_s30 = smov %s6686_s10 }
 0x692   : > { %s10723_s10 = smov %s6690_s11  ;;  %s10724_s11 = smov %s6791_s18 }
 0x693   : > { %s10725_s12 = smov %s6780_s15  ;;  %21 = sbr.rel (!%p19_p2) target bundleno = 3 (0x3), region = 99 }
 0x698   :  { %5990 = vsyncpa [#allocation3], 1 }
 0x699   :  { %5992 = vsyncpa [#allocation3 + $0x1], 1 }

</bundles_post_ra>
